<compile_context>
chip_gen: v7x
topology: tpu7x:2x2x1
jax: 0.10.0
libtpu: 0.0.40
codegen_flags: <defaults>
</compile_context>

<pallas_src>
import functools
import math

import jax
import jax.numpy as jnp
from jax.experimental import pallas as pl
from jax.experimental.pallas import tpu as pltpu


def gate_layer_kernel(i_ref, im_ref, t_ref, wp_ref, bp_ref, w1_ref, b1_ref,
                      w2_ref, b2_ref, mavg_ref, g_ref, ctxv_ref, ctxt_ref,
                      *, bb, fs, st, d_model, heads):
    dk = d_model // heads
    scale = 1.0 / math.sqrt(dk)

    i2 = i_ref[...]     # [bb*fs, D]  queries for both attentions
    im2 = im_ref[...]   # [bb*fs, D]  keys/values of vis_att + residual term
    t2 = t_ref[...]     # [bb*st, D]  keys/values of txt_att

    def lin(x, idx):
        # Weights are pre-transposed to [in, out] -> no in-kernel transpose.
        return (jnp.dot(x, wp_ref[idx], preferred_element_type=jnp.float32)
                + bp_ref[idx])

    # Batched q/k/v projections: the batch block is folded into the matmul M.
    q_v, k_v, v_v = lin(i2, 0), lin(im2, 1), lin(im2, 2)   # vis_att
    q_t, k_t, v_t = lin(i2, 4), lin(t2, 5), lin(t2, 6)     # txt_att

    def sdpa_into(ctx_ref, q, k, v, b, kv_len):
        # Scaled dot-product attention for one batch element; heads handled
        # via static slices of the lane dimension (dk columns each).
        qb = q[b * fs:(b + 1) * fs]                  # [fs, D]
        kb = k[b * kv_len:(b + 1) * kv_len]          # [kv, D]
        vb = v[b * kv_len:(b + 1) * kv_len]          # [kv, D]
        for h in range(heads):
            qh = qb[:, h * dk:(h + 1) * dk]
            kh = kb[:, h * dk:(h + 1) * dk]
            vh = vb[:, h * dk:(h + 1) * dk]
            # q @ k^T expressed as a last-dim contraction (no transpose).
            s = jax.lax.dot_general(
                qh, kh, (((1,), (1,)), ((), ())),
                preferred_element_type=jnp.float32) * scale
            m = jnp.max(s, axis=-1, keepdims=True)
            e = jnp.exp(s - m)
            denom = jnp.sum(e, axis=-1, keepdims=True)
            # NOTE: pl.reciprocal(denom, approx=True) is a free EUP win at
            # scale; exact division kept for tight parity with the reference.
            p = e / denom
            head_out = jnp.dot(p, vh, preferred_element_type=jnp.float32)
            ctx_ref[pl.ds(b * fs, fs), pl.ds(h * dk, dk)] = head_out

    for b in range(bb):
        sdpa_into(ctxv_ref, q_v, k_v, v_v, b, fs)
        sdpa_into(ctxt_ref, q_t, k_t, v_t, b, st)

    # Output projections, again batched across the whole batch block.
    ve = lin(ctxv_ref[...], 3)                       # [bb*fs, D]
    te = lin(ctxt_ref[...], 7)                       # [bb*fs, D]
    diff = i2 - im2                                  # [bb*fs, D]

    # Per-batch mean over the fs rows via a block-diagonal averaging matmul.
    m_avg = mavg_ref[...]                            # [bb, bb*fs], entries 1/fs
    m_te = jnp.dot(m_avg, te, preferred_element_type=jnp.float32)     # [bb, D]
    m_ve = jnp.dot(m_avg, ve, preferred_element_type=jnp.float32)
    m_df = jnp.dot(m_avg, diff, preferred_element_type=jnp.float32)

    # <te_, ve_> per batch: segmented sum of te*ve (mean rescaled by fs).
    dot_tv = jnp.sum(
        jnp.dot(m_avg, te * ve, preferred_element_type=jnp.float32),
        axis=-1, keepdims=True) * float(fs)                           # [bb, 1]

    # MLP: Linear(3D->D) on the (te | ve | diff) means, tanh, then the D->1
    # head as a VPU multiply + lane reduction (no width-1 matmul).
    w1 = w1_ref[...]                                 # [3D, D], pre-transposed
    d = d_model
    h1 = jnp.tanh(
        jnp.dot(m_te, w1[0:d], preferred_element_type=jnp.float32)
        + jnp.dot(m_ve, w1[d:2 * d], preferred_element_type=jnp.float32)
        + jnp.dot(m_df, w1[2 * d:3 * d], preferred_element_type=jnp.float32)
        + b1_ref[...])                               # [bb, D]
    g_mlp = jnp.sum(h1 * w2_ref[...], axis=-1, keepdims=True) + b2_ref[...]

    # Single full-tile store of the block result.
    g_ref[...] = (g_mlp + dot_tv).astype(g_ref.dtype)


def gate_layer(I, I_, T_, params, *, heads=8, batch_block=None):
    B, fs, D = I.shape
    st = T_.shape[1]
    bb = B if batch_block is None else batch_block
    assert B % bb == 0, "batch must be divisible by the batch block"
    assert D % heads == 0

    # Flatten batch into the matmul M dimension: lane-dense 2-D operands.
    i2 = I.reshape(B * fs, D)
    im2 = I_.reshape(B * fs, D)
    t2 = T_.reshape(B * st, D)

    t = jnp.transpose
    # Projection weights pre-transposed to [in, out]; order:
    #   0..3 vis_att (q, k, v, out), 4..7 txt_att (q, k, v, out).
    wp = jnp.stack([t(params['vq_w']), t(params['vk_w']), t(params['vv_w']),
                    t(params['vo_w']), t(params['tq_w']), t(params['tk_w']),
                    t(params['tv_w']), t(params['to_w'])], axis=0)   # [8, D, D]
    bp = jnp.stack([params['vq_b'], params['vk_b'], params['vv_b'],
                    params['vo_b'], params['tq_b'], params['tk_b'],
                    params['tv_b'], params['to_b']], axis=0)[:, None, :]  # [8,1,D]
    w1 = t(params['mlp1_w'])            # [3D, D]
    b1 = params['mlp1_b'][None, :]      # [1, D]
    w2 = params['mlp2_w']               # [1, D]  (row vector of Linear(D, 1))
    b2 = params['mlp2_b'][None, :]      # [1, 1]

    # Block-diagonal averaging matrix: mean over each batch element's fs rows.
    seg = (jnp.arange(bb * fs) // fs)[None, :] == jnp.arange(bb)[:, None]
    m_avg = jnp.where(seg, 1.0 / fs, 0.0).astype(jnp.float32)       # [bb, bb*fs]

    kernel = functools.partial(gate_layer_kernel, bb=bb, fs=fs, st=st,
                               d_model=D, heads=heads)

    return pl.pallas_call(
        kernel,
        out_shape=jax.ShapeDtypeStruct((B, 1), I.dtype),
        grid_spec=pltpu.PrefetchScalarGridSpec(
            num_scalar_prefetch=0,
            grid=(B // bb,),
            in_specs=[
                pl.BlockSpec((bb * fs, D), lambda i: (i, 0)),    # I   (flat)
                pl.BlockSpec((bb * fs, D), lambda i: (i, 0)),    # I_  (flat)
                pl.BlockSpec((bb * st, D), lambda i: (i, 0)),    # T_  (flat)
                pl.BlockSpec((8, D, D), lambda i: (0, 0, 0)),    # proj weights
                pl.BlockSpec((8, 1, D), lambda i: (0, 0, 0)),    # proj biases
                pl.BlockSpec((3 * D, D), lambda i: (0, 0)),      # mlp W1^T
                pl.BlockSpec((1, D), lambda i: (0, 0)),          # mlp b1
                pl.BlockSpec((1, D), lambda i: (0, 0)),          # mlp w2 row
                pl.BlockSpec((1, 1), lambda i: (0, 0)),          # mlp b2
                pl.BlockSpec((bb, bb * fs), lambda i: (0, 0)),   # mean matrix
            ],
            out_specs=pl.BlockSpec((bb, 1), lambda i: (i, 0)),
            scratch_shapes=[
                pltpu.VMEM((bb * fs, D), jnp.float32),   # vis attention context
                pltpu.VMEM((bb * fs, D), jnp.float32),   # txt attention context
            ],
        ),
        compiler_params=pltpu.CompilerParams(
            dimension_semantics=("parallel",)),
    )(i2, im2, t2, wp, bp, w1, b1, w2, b2, m_avg)


def reference_gate_layer(I, I_, T_, params, *, heads=8):
    # Pure-JAX reference matching the PyTorch module semantics (eval mode).
    def linear(x, w, b):
        return jnp.einsum('...i,oi->...o', x, w) + b

    def mha(q_in, kv_in, prefix):
        B, lq, D = q_in.shape
        lk = kv_in.shape[1]
        dk = D // heads
        q = linear(q_in, params[prefix + 'q_w'], params[prefix + 'q_b'])
        k = linear(kv_in, params[prefix + 'k_w'], params[prefix + 'k_b'])
        v = linear(kv_in, params[prefix + 'v_w'], params[prefix + 'v_b'])
        q = q.reshape(B, lq, heads, dk).transpose(0, 2, 1, 3)
        k = k.reshape(B, lk, heads, dk).transpose(0, 2, 1, 3)
        v = v.reshape(B, lk, heads, dk).transpose(0, 2, 1, 3)
        s = jnp.einsum('bhqd,bhkd->bhqk', q, k) / math.sqrt(dk)
        a = jax.nn.softmax(s, axis=-1)
        o = jnp.einsum('bhqk,bhkd->bhqd', a, v)
        o = o.transpose(0, 2, 1, 3).reshape(B, lq, D)
        return linear(o, params[prefix + 'o_w'], params[prefix + 'o_b'])

    ve = mha(I, I_, 'v')
    te = mha(I, T_, 't')
    g_cat = jnp.concatenate([te, ve, I - I_], axis=2)
    g_ = jnp.mean(g_cat, axis=1)
    h1 = jnp.tanh(linear(g_, params['mlp1_w'], params['mlp1_b']))
    g = linear(h1, params['mlp2_w'], params['mlp2_b'])
    dot_tv = jnp.einsum('bsd,bsd->b', te, ve)[:, None]
    return g + dot_tv


def _linear_params(key, out_features, in_features):
    kw, kb = jax.random.split(key)
    bound = 1.0 / math.sqrt(in_features)
    w = jax.random.uniform(kw, (out_features, in_features), jnp.float32,
                           minval=-bound, maxval=bound)
    b = jax.random.uniform(kb, (out_features,), jnp.float32,
                           minval=-bound, maxval=bound)
    return w, b


if __name__ == "__main__":
    B, fs, st, D, heads = 2, 8, 8, 32, 8   # batch, #vis feats, #txt feats, hidden

    key = jax.random.PRNGKey(0)
    k_in, k_par = jax.random.split(key)
    k_i, k_im, k_t = jax.random.split(k_in, 3)
    I = jax.random.normal(k_i, (B, fs, D), dtype=jnp.float32)
    I_ = jax.random.normal(k_im, (B, fs, D), dtype=jnp.float32)
    T_ = jax.random.normal(k_t, (B, st, D), dtype=jnp.float32)

    names = ['vq', 'vk', 'vv', 'vo', 'tq', 'tk', 'tv', 'to']
    pkeys = jax.random.split(k_par, len(names) + 2)
    params = {}
    for name, pk in zip(names, pkeys[:len(names)]):
        w, b = _linear_params(pk, D, D)
        params[name + '_w'] = w
        params[name + '_b'] = b
    params['mlp1_w'], params['mlp1_b'] = _linear_params(pkeys[-2], D, 3 * D)
    params['mlp2_w'], params['mlp2_b'] = _linear_params(pkeys[-1], 1, D)

    g = gate_layer(I, I_, T_, params, heads=heads)
    g = jax.block_until_ready(g)

    ref = reference_gate_layer(I, I_, T_, params, heads=heads)
    assert g.shape == (B, 1)
    assert jnp.allclose(g, ref, atol=1e-3, rtol=1e-3), (
        f"mismatch vs JAX reference: max abs err {jnp.max(jnp.abs(g - ref))}")

    print("KERNEL_OK")
</pallas_src>

<mosaic_0001>
module attributes {stable_mosaic.version = 11 : i64} {
  func.func @gate_layer_kernel(%arg0: i32, %arg1: memref<16x32xf32, #tpu.memory_space<vmem>>, %arg2: memref<16x32xf32, #tpu.memory_space<vmem>>, %arg3: memref<16x32xf32, #tpu.memory_space<vmem>>, %arg4: memref<8x32x32xf32, #tpu.memory_space<vmem>>, %arg5: memref<8x1x32xf32, #tpu.memory_space<vmem>>, %arg6: memref<96x32xf32, #tpu.memory_space<vmem>>, %arg7: memref<1x32xf32, #tpu.memory_space<vmem>>, %arg8: memref<1x32xf32, #tpu.memory_space<vmem>>, %arg9: memref<1x1xf32, #tpu.memory_space<vmem>>, %arg10: memref<2x16xf32, #tpu.memory_space<vmem>>, %arg11: memref<2x1xf32, #tpu.memory_space<vmem>>, %arg12: memref<16x32xf32, #tpu.memory_space<vmem>>, %arg13: memref<16x32xf32, #tpu.memory_space<vmem>>) attributes {dimension_semantics = [#tpu.dimension_semantics<parallel>], iteration_bounds = array<i64: 1>, scalar_prefetch = 0 : i64, scratch_operands = 2 : i64, tpu.core_type = #tpu.core_type<tc>, window_params = [{transform_indices = @transform_0, window_bounds = array<i64: 16, 32>}, {transform_indices = @transform_1, window_bounds = array<i64: 16, 32>}, {transform_indices = @transform_2, window_bounds = array<i64: 16, 32>}, {pipeline_mode = #tpu.pipeline_mode<synchronous>, transform_indices = @transform_3, window_bounds = array<i64: 8, 32, 32>}, {pipeline_mode = #tpu.pipeline_mode<synchronous>, transform_indices = @transform_4, window_bounds = array<i64: 8, 1, 32>}, {pipeline_mode = #tpu.pipeline_mode<synchronous>, transform_indices = @transform_5, window_bounds = array<i64: 96, 32>}, {pipeline_mode = #tpu.pipeline_mode<synchronous>, transform_indices = @transform_6, window_bounds = array<i64: 1, 32>}, {pipeline_mode = #tpu.pipeline_mode<synchronous>, transform_indices = @transform_7, window_bounds = array<i64: 1, 32>}, {pipeline_mode = #tpu.pipeline_mode<synchronous>, transform_indices = @transform_8, window_bounds = array<i64: 1, 1>}, {pipeline_mode = #tpu.pipeline_mode<synchronous>, transform_indices = @transform_9, window_bounds = array<i64: 2, 16>}, {transform_indices = @transform_10, window_bounds = array<i64: 2, 1>}]} {
    %c0 = arith.constant 0 : index
    %c0_0 = arith.constant 0 : index
    %0 = vector.load %arg1[%c0, %c0_0] : memref<16x32xf32, #tpu.memory_space<vmem>>, vector<16x32xf32>
    %c0_1 = arith.constant 0 : index
    %c0_2 = arith.constant 0 : index
    %1 = vector.load %arg2[%c0_1, %c0_2] : memref<16x32xf32, #tpu.memory_space<vmem>>, vector<16x32xf32>
    %c0_3 = arith.constant 0 : index
    %c0_4 = arith.constant 0 : index
    %2 = vector.load %arg3[%c0_3, %c0_4] : memref<16x32xf32, #tpu.memory_space<vmem>>, vector<16x32xf32>
    %c0_5 = arith.constant 0 : index
    %c0_6 = arith.constant 0 : index
    %c0_7 = arith.constant 0 : index
    %3 = vector.load %arg4[%c0_5, %c0_6, %c0_7] : memref<8x32x32xf32, #tpu.memory_space<vmem>>, vector<1x32x32xf32>
    %4 = vector.shape_cast %3 : vector<1x32x32xf32> to vector<32x32xf32>
    %cst = arith.constant dense<0.000000e+00> : vector<16x32xf32>
    %5 = tpu.matmul %0, %4, %cst {dimension_numbers = #tpu.dot_dimension_numbers<[1], [0], [0], [1], [0, 0, 1, 1], [], []>} : vector<16x32xf32>, vector<32x32xf32>, vector<16x32xf32> -> vector<16x32xf32>
    %c0_8 = arith.constant 0 : index
    %c0_9 = arith.constant 0 : index
    %c0_10 = arith.constant 0 : index
    %6 = vector.load %arg5[%c0_8, %c0_9, %c0_10] : memref<8x1x32xf32, #tpu.memory_space<vmem>>, vector<1x1x32xf32>
    %7 = vector.shape_cast %6 : vector<1x1x32xf32> to vector<1x32xf32>
    %8 = vector.broadcast %7 : vector<1x32xf32> to vector<16x32xf32>
    %9 = arith.addf %5, %8 : vector<16x32xf32>
    %c1 = arith.constant 1 : index
    %c0_11 = arith.constant 0 : index
    %c0_12 = arith.constant 0 : index
    %10 = vector.load %arg4[%c1, %c0_11, %c0_12] : memref<8x32x32xf32, #tpu.memory_space<vmem>>, vector<1x32x32xf32>
    %11 = vector.shape_cast %10 : vector<1x32x32xf32> to vector<32x32xf32>
    %cst_13 = arith.constant dense<0.000000e+00> : vector<16x32xf32>
    %12 = tpu.matmul %1, %11, %cst_13 {dimension_numbers = #tpu.dot_dimension_numbers<[1], [0], [0], [1], [0, 0, 1, 1], [], []>} : vector<16x32xf32>, vector<32x32xf32>, vector<16x32xf32> -> vector<16x32xf32>
    %c1_14 = arith.constant 1 : index
    %c0_15 = arith.constant 0 : index
    %c0_16 = arith.constant 0 : index
    %13 = vector.load %arg5[%c1_14, %c0_15, %c0_16] : memref<8x1x32xf32, #tpu.memory_space<vmem>>, vector<1x1x32xf32>
    %14 = vector.shape_cast %13 : vector<1x1x32xf32> to vector<1x32xf32>
    %15 = vector.broadcast %14 : vector<1x32xf32> to vector<16x32xf32>
    %16 = arith.addf %12, %15 : vector<16x32xf32>
    %c2 = arith.constant 2 : index
    %c0_17 = arith.constant 0 : index
    %c0_18 = arith.constant 0 : index
    %17 = vector.load %arg4[%c2, %c0_17, %c0_18] : memref<8x32x32xf32, #tpu.memory_space<vmem>>, vector<1x32x32xf32>
    %18 = vector.shape_cast %17 : vector<1x32x32xf32> to vector<32x32xf32>
    %cst_19 = arith.constant dense<0.000000e+00> : vector<16x32xf32>
    %19 = tpu.matmul %1, %18, %cst_19 {dimension_numbers = #tpu.dot_dimension_numbers<[1], [0], [0], [1], [0, 0, 1, 1], [], []>} : vector<16x32xf32>, vector<32x32xf32>, vector<16x32xf32> -> vector<16x32xf32>
    %c2_20 = arith.constant 2 : index
    %c0_21 = arith.constant 0 : index
    %c0_22 = arith.constant 0 : index
    %20 = vector.load %arg5[%c2_20, %c0_21, %c0_22] : memref<8x1x32xf32, #tpu.memory_space<vmem>>, vector<1x1x32xf32>
    %21 = vector.shape_cast %20 : vector<1x1x32xf32> to vector<1x32xf32>
    %22 = vector.broadcast %21 : vector<1x32xf32> to vector<16x32xf32>
    %23 = arith.addf %19, %22 : vector<16x32xf32>
    %c4 = arith.constant 4 : index
    %c0_23 = arith.constant 0 : index
    %c0_24 = arith.constant 0 : index
    %24 = vector.load %arg4[%c4, %c0_23, %c0_24] : memref<8x32x32xf32, #tpu.memory_space<vmem>>, vector<1x32x32xf32>
    %25 = vector.shape_cast %24 : vector<1x32x32xf32> to vector<32x32xf32>
    %cst_25 = arith.constant dense<0.000000e+00> : vector<16x32xf32>
    %26 = tpu.matmul %0, %25, %cst_25 {dimension_numbers = #tpu.dot_dimension_numbers<[1], [0], [0], [1], [0, 0, 1, 1], [], []>} : vector<16x32xf32>, vector<32x32xf32>, vector<16x32xf32> -> vector<16x32xf32>
    %c4_26 = arith.constant 4 : index
    %c0_27 = arith.constant 0 : index
    %c0_28 = arith.constant 0 : index
    %27 = vector.load %arg5[%c4_26, %c0_27, %c0_28] : memref<8x1x32xf32, #tpu.memory_space<vmem>>, vector<1x1x32xf32>
    %28 = vector.shape_cast %27 : vector<1x1x32xf32> to vector<1x32xf32>
    %29 = vector.broadcast %28 : vector<1x32xf32> to vector<16x32xf32>
    %30 = arith.addf %26, %29 : vector<16x32xf32>
    %c5 = arith.constant 5 : index
    %c0_29 = arith.constant 0 : index
    %c0_30 = arith.constant 0 : index
    %31 = vector.load %arg4[%c5, %c0_29, %c0_30] : memref<8x32x32xf32, #tpu.memory_space<vmem>>, vector<1x32x32xf32>
    %32 = vector.shape_cast %31 : vector<1x32x32xf32> to vector<32x32xf32>
    %cst_31 = arith.constant dense<0.000000e+00> : vector<16x32xf32>
    %33 = tpu.matmul %2, %32, %cst_31 {dimension_numbers = #tpu.dot_dimension_numbers<[1], [0], [0], [1], [0, 0, 1, 1], [], []>} : vector<16x32xf32>, vector<32x32xf32>, vector<16x32xf32> -> vector<16x32xf32>
    %c5_32 = arith.constant 5 : index
    %c0_33 = arith.constant 0 : index
    %c0_34 = arith.constant 0 : index
    %34 = vector.load %arg5[%c5_32, %c0_33, %c0_34] : memref<8x1x32xf32, #tpu.memory_space<vmem>>, vector<1x1x32xf32>
    %35 = vector.shape_cast %34 : vector<1x1x32xf32> to vector<1x32xf32>
    %36 = vector.broadcast %35 : vector<1x32xf32> to vector<16x32xf32>
    %37 = arith.addf %33, %36 : vector<16x32xf32>
    %c6 = arith.constant 6 : index
    %c0_35 = arith.constant 0 : index
    %c0_36 = arith.constant 0 : index
    %38 = vector.load %arg4[%c6, %c0_35, %c0_36] : memref<8x32x32xf32, #tpu.memory_space<vmem>>, vector<1x32x32xf32>
    %39 = vector.shape_cast %38 : vector<1x32x32xf32> to vector<32x32xf32>
    %cst_37 = arith.constant dense<0.000000e+00> : vector<16x32xf32>
    %40 = tpu.matmul %2, %39, %cst_37 {dimension_numbers = #tpu.dot_dimension_numbers<[1], [0], [0], [1], [0, 0, 1, 1], [], []>} : vector<16x32xf32>, vector<32x32xf32>, vector<16x32xf32> -> vector<16x32xf32>
    %c6_38 = arith.constant 6 : index
    %c0_39 = arith.constant 0 : index
    %c0_40 = arith.constant 0 : index
    %41 = vector.load %arg5[%c6_38, %c0_39, %c0_40] : memref<8x1x32xf32, #tpu.memory_space<vmem>>, vector<1x1x32xf32>
    %42 = vector.shape_cast %41 : vector<1x1x32xf32> to vector<1x32xf32>
    %43 = vector.broadcast %42 : vector<1x32xf32> to vector<16x32xf32>
    %44 = arith.addf %40, %43 : vector<16x32xf32>
    %45 = vector.extract_strided_slice %9 {offsets = [0, 0], sizes = [8, 32], strides = [1, 1]} : vector<16x32xf32> to vector<8x32xf32>
    %46 = vector.extract_strided_slice %16 {offsets = [0, 0], sizes = [8, 32], strides = [1, 1]} : vector<16x32xf32> to vector<8x32xf32>
    %47 = vector.extract_strided_slice %23 {offsets = [0, 0], sizes = [8, 32], strides = [1, 1]} : vector<16x32xf32> to vector<8x32xf32>
    %48 = vector.extract_strided_slice %45 {offsets = [0, 0], sizes = [8, 4], strides = [1, 1]} : vector<8x32xf32> to vector<8x4xf32>
    %49 = vector.extract_strided_slice %46 {offsets = [0, 0], sizes = [8, 4], strides = [1, 1]} : vector<8x32xf32> to vector<8x4xf32>
    %50 = vector.extract_strided_slice %47 {offsets = [0, 0], sizes = [8, 4], strides = [1, 1]} : vector<8x32xf32> to vector<8x4xf32>
    %cst_41 = arith.constant dense<0.000000e+00> : vector<8x8xf32>
    %51 = tpu.matmul %48, %49, %cst_41 {dimension_numbers = #tpu.dot_dimension_numbers<[1], [1], [0], [0], [0, 0, 1, 0], [], []>} : vector<8x4xf32>, vector<8x4xf32>, vector<8x8xf32> -> vector<8x8xf32>
    %cst_42 = arith.constant 5.000000e-01 : f32
    %52 = vector.broadcast %cst_42 : f32 to vector<8x8xf32>
    %53 = arith.mulf %51, %52 : vector<8x8xf32>
    %cst_43 = arith.constant dense<0xFF800000> : vector<8xf32>
    %54 = vector.multi_reduction <maximumf>, %53, %cst_43 [1] : vector<8x8xf32> to vector<8xf32>
    %55 = vector.shape_cast %54 : vector<8xf32> to vector<8x1xf32>
    %56 = vector.broadcast %55 : vector<8x1xf32> to vector<8x8xf32>
    %57 = arith.subf %53, %56 : vector<8x8xf32>
    %58 = math.exp %57 : vector<8x8xf32>
    %cst_44 = arith.constant dense<0.000000e+00> : vector<8xf32>
    %59 = vector.multi_reduction <add>, %58, %cst_44 [1] : vector<8x8xf32> to vector<8xf32>
    %60 = vector.shape_cast %59 : vector<8xf32> to vector<8x1xf32>
    %61 = vector.broadcast %60 : vector<8x1xf32> to vector<8x8xf32>
    %62 = arith.divf %58, %61 : vector<8x8xf32>
    %cst_45 = arith.constant dense<0.000000e+00> : vector<8x4xf32>
    %63 = tpu.matmul %62, %50, %cst_45 {dimension_numbers = #tpu.dot_dimension_numbers<[1], [0], [0], [1], [0, 0, 1, 1], [], []>} : vector<8x8xf32>, vector<8x4xf32>, vector<8x4xf32> -> vector<8x4xf32>
    %c0_46 = arith.constant 0 : index
    %c0_47 = arith.constant 0 : index
    %64 = vector.load %arg12[%c0_46, %c0_47] : memref<16x32xf32, #tpu.memory_space<vmem>>, vector<8x4xf32>
    tpu.vector_store %arg12[%c0_46, %c0_47], %63 {strides = array<i32>} : memref<16x32xf32, #tpu.memory_space<vmem>>, vector<8x4xf32>,
    %65 = vector.extract_strided_slice %45 {offsets = [0, 4], sizes = [8, 4], strides = [1, 1]} : vector<8x32xf32> to vector<8x4xf32>
    %66 = vector.extract_strided_slice %46 {offsets = [0, 4], sizes = [8, 4], strides = [1, 1]} : vector<8x32xf32> to vector<8x4xf32>
    %67 = vector.extract_strided_slice %47 {offsets = [0, 4], sizes = [8, 4], strides = [1, 1]} : vector<8x32xf32> to vector<8x4xf32>
    %cst_48 = arith.constant dense<0.000000e+00> : vector<8x8xf32>
    %68 = tpu.matmul %65, %66, %cst_48 {dimension_numbers = #tpu.dot_dimension_numbers<[1], [1], [0], [0], [0, 0, 1, 0], [], []>} : vector<8x4xf32>, vector<8x4xf32>, vector<8x8xf32> -> vector<8x8xf32>
    %cst_49 = arith.constant 5.000000e-01 : f32
    %69 = vector.broadcast %cst_49 : f32 to vector<8x8xf32>
    %70 = arith.mulf %68, %69 : vector<8x8xf32>
    %cst_50 = arith.constant dense<0xFF800000> : vector<8xf32>
    %71 = vector.multi_reduction <maximumf>, %70, %cst_50 [1] : vector<8x8xf32> to vector<8xf32>
    %72 = vector.shape_cast %71 : vector<8xf32> to vector<8x1xf32>
    %73 = vector.broadcast %72 : vector<8x1xf32> to vector<8x8xf32>
    %74 = arith.subf %70, %73 : vector<8x8xf32>
    %75 = math.exp %74 : vector<8x8xf32>
    %cst_51 = arith.constant dense<0.000000e+00> : vector<8xf32>
    %76 = vector.multi_reduction <add>, %75, %cst_51 [1] : vector<8x8xf32> to vector<8xf32>
    %77 = vector.shape_cast %76 : vector<8xf32> to vector<8x1xf32>
    %78 = vector.broadcast %77 : vector<8x1xf32> to vector<8x8xf32>
    %79 = arith.divf %75, %78 : vector<8x8xf32>
    %cst_52 = arith.constant dense<0.000000e+00> : vector<8x4xf32>
    %80 = tpu.matmul %79, %67, %cst_52 {dimension_numbers = #tpu.dot_dimension_numbers<[1], [0], [0], [1], [0, 0, 1, 1], [], []>} : vector<8x8xf32>, vector<8x4xf32>, vector<8x4xf32> -> vector<8x4xf32>
    %c0_53 = arith.constant 0 : index
    %c4_54 = arith.constant 4 : index
    %81 = vector.load %arg12[%c0_53, %c4_54] : memref<16x32xf32, #tpu.memory_space<vmem>>, vector<8x4xf32>
    tpu.vector_store %arg12[%c0_53, %c4_54], %80 {strides = array<i32>} : memref<16x32xf32, #tpu.memory_space<vmem>>, vector<8x4xf32>,
    %82 = vector.extract_strided_slice %45 {offsets = [0, 8], sizes = [8, 4], strides = [1, 1]} : vector<8x32xf32> to vector<8x4xf32>
    %83 = vector.extract_strided_slice %46 {offsets = [0, 8], sizes = [8, 4], strides = [1, 1]} : vector<8x32xf32> to vector<8x4xf32>
    %84 = vector.extract_strided_slice %47 {offsets = [0, 8], sizes = [8, 4], strides = [1, 1]} : vector<8x32xf32> to vector<8x4xf32>
    %cst_55 = arith.constant dense<0.000000e+00> : vector<8x8xf32>
    %85 = tpu.matmul %82, %83, %cst_55 {dimension_numbers = #tpu.dot_dimension_numbers<[1], [1], [0], [0], [0, 0, 1, 0], [], []>} : vector<8x4xf32>, vector<8x4xf32>, vector<8x8xf32> -> vector<8x8xf32>
    %cst_56 = arith.constant 5.000000e-01 : f32
    %86 = vector.broadcast %cst_56 : f32 to vector<8x8xf32>
    %87 = arith.mulf %85, %86 : vector<8x8xf32>
    %cst_57 = arith.constant dense<0xFF800000> : vector<8xf32>
    %88 = vector.multi_reduction <maximumf>, %87, %cst_57 [1] : vector<8x8xf32> to vector<8xf32>
    %89 = vector.shape_cast %88 : vector<8xf32> to vector<8x1xf32>
    %90 = vector.broadcast %89 : vector<8x1xf32> to vector<8x8xf32>
    %91 = arith.subf %87, %90 : vector<8x8xf32>
    %92 = math.exp %91 : vector<8x8xf32>
    %cst_58 = arith.constant dense<0.000000e+00> : vector<8xf32>
    %93 = vector.multi_reduction <add>, %92, %cst_58 [1] : vector<8x8xf32> to vector<8xf32>
    %94 = vector.shape_cast %93 : vector<8xf32> to vector<8x1xf32>
    %95 = vector.broadcast %94 : vector<8x1xf32> to vector<8x8xf32>
    %96 = arith.divf %92, %95 : vector<8x8xf32>
    %cst_59 = arith.constant dense<0.000000e+00> : vector<8x4xf32>
    %97 = tpu.matmul %96, %84, %cst_59 {dimension_numbers = #tpu.dot_dimension_numbers<[1], [0], [0], [1], [0, 0, 1, 1], [], []>} : vector<8x8xf32>, vector<8x4xf32>, vector<8x4xf32> -> vector<8x4xf32>
    %c0_60 = arith.constant 0 : index
    %c8 = arith.constant 8 : index
    %98 = vector.load %arg12[%c0_60, %c8] : memref<16x32xf32, #tpu.memory_space<vmem>>, vector<8x4xf32>
    tpu.vector_store %arg12[%c0_60, %c8], %97 {strides = array<i32>} : memref<16x32xf32, #tpu.memory_space<vmem>>, vector<8x4xf32>,
    %99 = vector.extract_strided_slice %45 {offsets = [0, 12], sizes = [8, 4], strides = [1, 1]} : vector<8x32xf32> to vector<8x4xf32>
    %100 = vector.extract_strided_slice %46 {offsets = [0, 12], sizes = [8, 4], strides = [1, 1]} : vector<8x32xf32> to vector<8x4xf32>
    %101 = vector.extract_strided_slice %47 {offsets = [0, 12], sizes = [8, 4], strides = [1, 1]} : vector<8x32xf32> to vector<8x4xf32>
    %cst_61 = arith.constant dense<0.000000e+00> : vector<8x8xf32>
    %102 = tpu.matmul %99, %100, %cst_61 {dimension_numbers = #tpu.dot_dimension_numbers<[1], [1], [0], [0], [0, 0, 1, 0], [], []>} : vector<8x4xf32>, vector<8x4xf32>, vector<8x8xf32> -> vector<8x8xf32>
    %cst_62 = arith.constant 5.000000e-01 : f32
    %103 = vector.broadcast %cst_62 : f32 to vector<8x8xf32>
    %104 = arith.mulf %102, %103 : vector<8x8xf32>
    %cst_63 = arith.constant dense<0xFF800000> : vector<8xf32>
    %105 = vector.multi_reduction <maximumf>, %104, %cst_63 [1] : vector<8x8xf32> to vector<8xf32>
    %106 = vector.shape_cast %105 : vector<8xf32> to vector<8x1xf32>
    %107 = vector.broadcast %106 : vector<8x1xf32> to vector<8x8xf32>
    %108 = arith.subf %104, %107 : vector<8x8xf32>
    %109 = math.exp %108 : vector<8x8xf32>
    %cst_64 = arith.constant dense<0.000000e+00> : vector<8xf32>
    %110 = vector.multi_reduction <add>, %109, %cst_64 [1] : vector<8x8xf32> to vector<8xf32>
    %111 = vector.shape_cast %110 : vector<8xf32> to vector<8x1xf32>
    %112 = vector.broadcast %111 : vector<8x1xf32> to vector<8x8xf32>
    %113 = arith.divf %109, %112 : vector<8x8xf32>
    %cst_65 = arith.constant dense<0.000000e+00> : vector<8x4xf32>
    %114 = tpu.matmul %113, %101, %cst_65 {dimension_numbers = #tpu.dot_dimension_numbers<[1], [0], [0], [1], [0, 0, 1, 1], [], []>} : vector<8x8xf32>, vector<8x4xf32>, vector<8x4xf32> -> vector<8x4xf32>
    %c0_66 = arith.constant 0 : index
    %c12 = arith.constant 12 : index
    %115 = vector.load %arg12[%c0_66, %c12] : memref<16x32xf32, #tpu.memory_space<vmem>>, vector<8x4xf32>
    tpu.vector_store %arg12[%c0_66, %c12], %114 {strides = array<i32>} : memref<16x32xf32, #tpu.memory_space<vmem>>, vector<8x4xf32>,
    %116 = vector.extract_strided_slice %45 {offsets = [0, 16], sizes = [8, 4], strides = [1, 1]} : vector<8x32xf32> to vector<8x4xf32>
    %117 = vector.extract_strided_slice %46 {offsets = [0, 16], sizes = [8, 4], strides = [1, 1]} : vector<8x32xf32> to vector<8x4xf32>
    %118 = vector.extract_strided_slice %47 {offsets = [0, 16], sizes = [8, 4], strides = [1, 1]} : vector<8x32xf32> to vector<8x4xf32>
    %cst_67 = arith.constant dense<0.000000e+00> : vector<8x8xf32>
    %119 = tpu.matmul %116, %117, %cst_67 {dimension_numbers = #tpu.dot_dimension_numbers<[1], [1], [0], [0], [0, 0, 1, 0], [], []>} : vector<8x4xf32>, vector<8x4xf32>, vector<8x8xf32> -> vector<8x8xf32>
    %cst_68 = arith.constant 5.000000e-01 : f32
    %120 = vector.broadcast %cst_68 : f32 to vector<8x8xf32>
    %121 = arith.mulf %119, %120 : vector<8x8xf32>
    %cst_69 = arith.constant dense<0xFF800000> : vector<8xf32>
    %122 = vector.multi_reduction <maximumf>, %121, %cst_69 [1] : vector<8x8xf32> to vector<8xf32>
    %123 = vector.shape_cast %122 : vector<8xf32> to vector<8x1xf32>
    %124 = vector.broadcast %123 : vector<8x1xf32> to vector<8x8xf32>
    %125 = arith.subf %121, %124 : vector<8x8xf32>
    %126 = math.exp %125 : vector<8x8xf32>
    %cst_70 = arith.constant dense<0.000000e+00> : vector<8xf32>
    %127 = vector.multi_reduction <add>, %126, %cst_70 [1] : vector<8x8xf32> to vector<8xf32>
    %128 = vector.shape_cast %127 : vector<8xf32> to vector<8x1xf32>
    %129 = vector.broadcast %128 : vector<8x1xf32> to vector<8x8xf32>
    %130 = arith.divf %126, %129 : vector<8x8xf32>
    %cst_71 = arith.constant dense<0.000000e+00> : vector<8x4xf32>
    %131 = tpu.matmul %130, %118, %cst_71 {dimension_numbers = #tpu.dot_dimension_numbers<[1], [0], [0], [1], [0, 0, 1, 1], [], []>} : vector<8x8xf32>, vector<8x4xf32>, vector<8x4xf32> -> vector<8x4xf32>
    %c0_72 = arith.constant 0 : index
    %c16 = arith.constant 16 : index
    %132 = vector.load %arg12[%c0_72, %c16] : memref<16x32xf32, #tpu.memory_space<vmem>>, vector<8x4xf32>
    tpu.vector_store %arg12[%c0_72, %c16], %131 {strides = array<i32>} : memref<16x32xf32, #tpu.memory_space<vmem>>, vector<8x4xf32>,
    %133 = vector.extract_strided_slice %45 {offsets = [0, 20], sizes = [8, 4], strides = [1, 1]} : vector<8x32xf32> to vector<8x4xf32>
    %134 = vector.extract_strided_slice %46 {offsets = [0, 20], sizes = [8, 4], strides = [1, 1]} : vector<8x32xf32> to vector<8x4xf32>
    %135 = vector.extract_strided_slice %47 {offsets = [0, 20], sizes = [8, 4], strides = [1, 1]} : vector<8x32xf32> to vector<8x4xf32>
    %cst_73 = arith.constant dense<0.000000e+00> : vector<8x8xf32>
    %136 = tpu.matmul %133, %134, %cst_73 {dimension_numbers = #tpu.dot_dimension_numbers<[1], [1], [0], [0], [0, 0, 1, 0], [], []>} : vector<8x4xf32>, vector<8x4xf32>, vector<8x8xf32> -> vector<8x8xf32>
    %cst_74 = arith.constant 5.000000e-01 : f32
    %137 = vector.broadcast %cst_74 : f32 to vector<8x8xf32>
    %138 = arith.mulf %136, %137 : vector<8x8xf32>
    %cst_75 = arith.constant dense<0xFF800000> : vector<8xf32>
    %139 = vector.multi_reduction <maximumf>, %138, %cst_75 [1] : vector<8x8xf32> to vector<8xf32>
    %140 = vector.shape_cast %139 : vector<8xf32> to vector<8x1xf32>
    %141 = vector.broadcast %140 : vector<8x1xf32> to vector<8x8xf32>
    %142 = arith.subf %138, %141 : vector<8x8xf32>
    %143 = math.exp %142 : vector<8x8xf32>
    %cst_76 = arith.constant dense<0.000000e+00> : vector<8xf32>
    %144 = vector.multi_reduction <add>, %143, %cst_76 [1] : vector<8x8xf32> to vector<8xf32>
    %145 = vector.shape_cast %144 : vector<8xf32> to vector<8x1xf32>
    %146 = vector.broadcast %145 : vector<8x1xf32> to vector<8x8xf32>
    %147 = arith.divf %143, %146 : vector<8x8xf32>
    %cst_77 = arith.constant dense<0.000000e+00> : vector<8x4xf32>
    %148 = tpu.matmul %147, %135, %cst_77 {dimension_numbers = #tpu.dot_dimension_numbers<[1], [0], [0], [1], [0, 0, 1, 1], [], []>} : vector<8x8xf32>, vector<8x4xf32>, vector<8x4xf32> -> vector<8x4xf32>
    %c0_78 = arith.constant 0 : index
    %c20 = arith.constant 20 : index
    %149 = vector.load %arg12[%c0_78, %c20] : memref<16x32xf32, #tpu.memory_space<vmem>>, vector<8x4xf32>
    tpu.vector_store %arg12[%c0_78, %c20], %148 {strides = array<i32>} : memref<16x32xf32, #tpu.memory_space<vmem>>, vector<8x4xf32>,
    %150 = vector.extract_strided_slice %45 {offsets = [0, 24], sizes = [8, 4], strides = [1, 1]} : vector<8x32xf32> to vector<8x4xf32>
    %151 = vector.extract_strided_slice %46 {offsets = [0, 24], sizes = [8, 4], strides = [1, 1]} : vector<8x32xf32> to vector<8x4xf32>
    %152 = vector.extract_strided_slice %47 {offsets = [0, 24], sizes = [8, 4], strides = [1, 1]} : vector<8x32xf32> to vector<8x4xf32>
    %cst_79 = arith.constant dense<0.000000e+00> : vector<8x8xf32>
    %153 = tpu.matmul %150, %151, %cst_79 {dimension_numbers = #tpu.dot_dimension_numbers<[1], [1], [0], [0], [0, 0, 1, 0], [], []>} : vector<8x4xf32>, vector<8x4xf32>, vector<8x8xf32> -> vector<8x8xf32>
    %cst_80 = arith.constant 5.000000e-01 : f32
    %154 = vector.broadcast %cst_80 : f32 to vector<8x8xf32>
    %155 = arith.mulf %153, %154 : vector<8x8xf32>
    %cst_81 = arith.constant dense<0xFF800000> : vector<8xf32>
    %156 = vector.multi_reduction <maximumf>, %155, %cst_81 [1] : vector<8x8xf32> to vector<8xf32>
    %157 = vector.shape_cast %156 : vector<8xf32> to vector<8x1xf32>
    %158 = vector.broadcast %157 : vector<8x1xf32> to vector<8x8xf32>
    %159 = arith.subf %155, %158 : vector<8x8xf32>
    %160 = math.exp %159 : vector<8x8xf32>
    %cst_82 = arith.constant dense<0.000000e+00> : vector<8xf32>
    %161 = vector.multi_reduction <add>, %160, %cst_82 [1] : vector<8x8xf32> to vector<8xf32>
    %162 = vector.shape_cast %161 : vector<8xf32> to vector<8x1xf32>
    %163 = vector.broadcast %162 : vector<8x1xf32> to vector<8x8xf32>
    %164 = arith.divf %160, %163 : vector<8x8xf32>
    %cst_83 = arith.constant dense<0.000000e+00> : vector<8x4xf32>
    %165 = tpu.matmul %164, %152, %cst_83 {dimension_numbers = #tpu.dot_dimension_numbers<[1], [0], [0], [1], [0, 0, 1, 1], [], []>} : vector<8x8xf32>, vector<8x4xf32>, vector<8x4xf32> -> vector<8x4xf32>
    %c0_84 = arith.constant 0 : index
    %c24 = arith.constant 24 : index
    %166 = vector.load %arg12[%c0_84, %c24] : memref<16x32xf32, #tpu.memory_space<vmem>>, vector<8x4xf32>
    tpu.vector_store %arg12[%c0_84, %c24], %165 {strides = array<i32>} : memref<16x32xf32, #tpu.memory_space<vmem>>, vector<8x4xf32>,
    %167 = vector.extract_strided_slice %45 {offsets = [0, 28], sizes = [8, 4], strides = [1, 1]} : vector<8x32xf32> to vector<8x4xf32>
    %168 = vector.extract_strided_slice %46 {offsets = [0, 28], sizes = [8, 4], strides = [1, 1]} : vector<8x32xf32> to vector<8x4xf32>
    %169 = vector.extract_strided_slice %47 {offsets = [0, 28], sizes = [8, 4], strides = [1, 1]} : vector<8x32xf32> to vector<8x4xf32>
    %cst_85 = arith.constant dense<0.000000e+00> : vector<8x8xf32>
    %170 = tpu.matmul %167, %168, %cst_85 {dimension_numbers = #tpu.dot_dimension_numbers<[1], [1], [0], [0], [0, 0, 1, 0], [], []>} : vector<8x4xf32>, vector<8x4xf32>, vector<8x8xf32> -> vector<8x8xf32>
    %cst_86 = arith.constant 5.000000e-01 : f32
    %171 = vector.broadcast %cst_86 : f32 to vector<8x8xf32>
    %172 = arith.mulf %170, %171 : vector<8x8xf32>
    %cst_87 = arith.constant dense<0xFF800000> : vector<8xf32>
    %173 = vector.multi_reduction <maximumf>, %172, %cst_87 [1] : vector<8x8xf32> to vector<8xf32>
    %174 = vector.shape_cast %173 : vector<8xf32> to vector<8x1xf32>
    %175 = vector.broadcast %174 : vector<8x1xf32> to vector<8x8xf32>
    %176 = arith.subf %172, %175 : vector<8x8xf32>
    %177 = math.exp %176 : vector<8x8xf32>
    %cst_88 = arith.constant dense<0.000000e+00> : vector<8xf32>
    %178 = vector.multi_reduction <add>, %177, %cst_88 [1] : vector<8x8xf32> to vector<8xf32>
    %179 = vector.shape_cast %178 : vector<8xf32> to vector<8x1xf32>
    %180 = vector.broadcast %179 : vector<8x1xf32> to vector<8x8xf32>
    %181 = arith.divf %177, %180 : vector<8x8xf32>
    %cst_89 = arith.constant dense<0.000000e+00> : vector<8x4xf32>
    %182 = tpu.matmul %181, %169, %cst_89 {dimension_numbers = #tpu.dot_dimension_numbers<[1], [0], [0], [1], [0, 0, 1, 1], [], []>} : vector<8x8xf32>, vector<8x4xf32>, vector<8x4xf32> -> vector<8x4xf32>
    %c0_90 = arith.constant 0 : index
    %c28 = arith.constant 28 : index
    %183 = vector.load %arg12[%c0_90, %c28] : memref<16x32xf32, #tpu.memory_space<vmem>>, vector<8x4xf32>
    tpu.vector_store %arg12[%c0_90, %c28], %182 {strides = array<i32>} : memref<16x32xf32, #tpu.memory_space<vmem>>, vector<8x4xf32>,
    %184 = vector.extract_strided_slice %30 {offsets = [0, 0], sizes = [8, 32], strides = [1, 1]} : vector<16x32xf32> to vector<8x32xf32>
    %185 = vector.extract_strided_slice %37 {offsets = [0, 0], sizes = [8, 32], strides = [1, 1]} : vector<16x32xf32> to vector<8x32xf32>
    %186 = vector.extract_strided_slice %44 {offsets = [0, 0], sizes = [8, 32], strides = [1, 1]} : vector<16x32xf32> to vector<8x32xf32>
    %187 = vector.extract_strided_slice %184 {offsets = [0, 0], sizes = [8, 4], strides = [1, 1]} : vector<8x32xf32> to vector<8x4xf32>
    %188 = vector.extract_strided_slice %185 {offsets = [0, 0], sizes = [8, 4], strides = [1, 1]} : vector<8x32xf32> to vector<8x4xf32>
    %189 = vector.extract_strided_slice %186 {offsets = [0, 0], sizes = [8, 4], strides = [1, 1]} : vector<8x32xf32> to vector<8x4xf32>
    %cst_91 = arith.constant dense<0.000000e+00> : vector<8x8xf32>
    %190 = tpu.matmul %187, %188, %cst_91 {dimension_numbers = #tpu.dot_dimension_numbers<[1], [1], [0], [0], [0, 0, 1, 0], [], []>} : vector<8x4xf32>, vector<8x4xf32>, vector<8x8xf32> -> vector<8x8xf32>
    %cst_92 = arith.constant 5.000000e-01 : f32
    %191 = vector.broadcast %cst_92 : f32 to vector<8x8xf32>
    %192 = arith.mulf %190, %191 : vector<8x8xf32>
    %cst_93 = arith.constant dense<0xFF800000> : vector<8xf32>
    %193 = vector.multi_reduction <maximumf>, %192, %cst_93 [1] : vector<8x8xf32> to vector<8xf32>
    %194 = vector.shape_cast %193 : vector<8xf32> to vector<8x1xf32>
    %195 = vector.broadcast %194 : vector<8x1xf32> to vector<8x8xf32>
    %196 = arith.subf %192, %195 : vector<8x8xf32>
    %197 = math.exp %196 : vector<8x8xf32>
    %cst_94 = arith.constant dense<0.000000e+00> : vector<8xf32>
    %198 = vector.multi_reduction <add>, %197, %cst_94 [1] : vector<8x8xf32> to vector<8xf32>
    %199 = vector.shape_cast %198 : vector<8xf32> to vector<8x1xf32>
    %200 = vector.broadcast %199 : vector<8x1xf32> to vector<8x8xf32>
    %201 = arith.divf %197, %200 : vector<8x8xf32>
    %cst_95 = arith.constant dense<0.000000e+00> : vector<8x4xf32>
    %202 = tpu.matmul %201, %189, %cst_95 {dimension_numbers = #tpu.dot_dimension_numbers<[1], [0], [0], [1], [0, 0, 1, 1], [], []>} : vector<8x8xf32>, vector<8x4xf32>, vector<8x4xf32> -> vector<8x4xf32>
    %c0_96 = arith.constant 0 : index
    %c0_97 = arith.constant 0 : index
    %203 = vector.load %arg13[%c0_96, %c0_97] : memref<16x32xf32, #tpu.memory_space<vmem>>, vector<8x4xf32>
    tpu.vector_store %arg13[%c0_96, %c0_97], %202 {strides = array<i32>} : memref<16x32xf32, #tpu.memory_space<vmem>>, vector<8x4xf32>,
    %204 = vector.extract_strided_slice %184 {offsets = [0, 4], sizes = [8, 4], strides = [1, 1]} : vector<8x32xf32> to vector<8x4xf32>
    %205 = vector.extract_strided_slice %185 {offsets = [0, 4], sizes = [8, 4], strides = [1, 1]} : vector<8x32xf32> to vector<8x4xf32>
    %206 = vector.extract_strided_slice %186 {offsets = [0, 4], sizes = [8, 4], strides = [1, 1]} : vector<8x32xf32> to vector<8x4xf32>
    %cst_98 = arith.constant dense<0.000000e+00> : vector<8x8xf32>
    %207 = tpu.matmul %204, %205, %cst_98 {dimension_numbers = #tpu.dot_dimension_numbers<[1], [1], [0], [0], [0, 0, 1, 0], [], []>} : vector<8x4xf32>, vector<8x4xf32>, vector<8x8xf32> -> vector<8x8xf32>
    %cst_99 = arith.constant 5.000000e-01 : f32
    %208 = vector.broadcast %cst_99 : f32 to vector<8x8xf32>
    %209 = arith.mulf %207, %208 : vector<8x8xf32>
    %cst_100 = arith.constant dense<0xFF800000> : vector<8xf32>
    %210 = vector.multi_reduction <maximumf>, %209, %cst_100 [1] : vector<8x8xf32> to vector<8xf32>
    %211 = vector.shape_cast %210 : vector<8xf32> to vector<8x1xf32>
    %212 = vector.broadcast %211 : vector<8x1xf32> to vector<8x8xf32>
    %213 = arith.subf %209, %212 : vector<8x8xf32>
    %214 = math.exp %213 : vector<8x8xf32>
    %cst_101 = arith.constant dense<0.000000e+00> : vector<8xf32>
    %215 = vector.multi_reduction <add>, %214, %cst_101 [1] : vector<8x8xf32> to vector<8xf32>
    %216 = vector.shape_cast %215 : vector<8xf32> to vector<8x1xf32>
    %217 = vector.broadcast %216 : vector<8x1xf32> to vector<8x8xf32>
    %218 = arith.divf %214, %217 : vector<8x8xf32>
    %cst_102 = arith.constant dense<0.000000e+00> : vector<8x4xf32>
    %219 = tpu.matmul %218, %206, %cst_102 {dimension_numbers = #tpu.dot_dimension_numbers<[1], [0], [0], [1], [0, 0, 1, 1], [], []>} : vector<8x8xf32>, vector<8x4xf32>, vector<8x4xf32> -> vector<8x4xf32>
    %c0_103 = arith.constant 0 : index
    %c4_104 = arith.constant 4 : index
    %220 = vector.load %arg13[%c0_103, %c4_104] : memref<16x32xf32, #tpu.memory_space<vmem>>, vector<8x4xf32>
    tpu.vector_store %arg13[%c0_103, %c4_104], %219 {strides = array<i32>} : memref<16x32xf32, #tpu.memory_space<vmem>>, vector<8x4xf32>,
    %221 = vector.extract_strided_slice %184 {offsets = [0, 8], sizes = [8, 4], strides = [1, 1]} : vector<8x32xf32> to vector<8x4xf32>
    %222 = vector.extract_strided_slice %185 {offsets = [0, 8], sizes = [8, 4], strides = [1, 1]} : vector<8x32xf32> to vector<8x4xf32>
    %223 = vector.extract_strided_slice %186 {offsets = [0, 8], sizes = [8, 4], strides = [1, 1]} : vector<8x32xf32> to vector<8x4xf32>
    %cst_105 = arith.constant dense<0.000000e+00> : vector<8x8xf32>
    %224 = tpu.matmul %221, %222, %cst_105 {dimension_numbers = #tpu.dot_dimension_numbers<[1], [1], [0], [0], [0, 0, 1, 0], [], []>} : vector<8x4xf32>, vector<8x4xf32>, vector<8x8xf32> -> vector<8x8xf32>
    %cst_106 = arith.constant 5.000000e-01 : f32
    %225 = vector.broadcast %cst_106 : f32 to vector<8x8xf32>
    %226 = arith.mulf %224, %225 : vector<8x8xf32>
    %cst_107 = arith.constant dense<0xFF800000> : vector<8xf32>
    %227 = vector.multi_reduction <maximumf>, %226, %cst_107 [1] : vector<8x8xf32> to vector<8xf32>
    %228 = vector.shape_cast %227 : vector<8xf32> to vector<8x1xf32>
    %229 = vector.broadcast %228 : vector<8x1xf32> to vector<8x8xf32>
    %230 = arith.subf %226, %229 : vector<8x8xf32>
    %231 = math.exp %230 : vector<8x8xf32>
    %cst_108 = arith.constant dense<0.000000e+00> : vector<8xf32>
    %232 = vector.multi_reduction <add>, %231, %cst_108 [1] : vector<8x8xf32> to vector<8xf32>
    %233 = vector.shape_cast %232 : vector<8xf32> to vector<8x1xf32>
    %234 = vector.broadcast %233 : vector<8x1xf32> to vector<8x8xf32>
    %235 = arith.divf %231, %234 : vector<8x8xf32>
    %cst_109 = arith.constant dense<0.000000e+00> : vector<8x4xf32>
    %236 = tpu.matmul %235, %223, %cst_109 {dimension_numbers = #tpu.dot_dimension_numbers<[1], [0], [0], [1], [0, 0, 1, 1], [], []>} : vector<8x8xf32>, vector<8x4xf32>, vector<8x4xf32> -> vector<8x4xf32>
    %c0_110 = arith.constant 0 : index
    %c8_111 = arith.constant 8 : index
    %237 = vector.load %arg13[%c0_110, %c8_111] : memref<16x32xf32, #tpu.memory_space<vmem>>, vector<8x4xf32>
    tpu.vector_store %arg13[%c0_110, %c8_111], %236 {strides = array<i32>} : memref<16x32xf32, #tpu.memory_space<vmem>>, vector<8x4xf32>,
    %238 = vector.extract_strided_slice %184 {offsets = [0, 12], sizes = [8, 4], strides = [1, 1]} : vector<8x32xf32> to vector<8x4xf32>
    %239 = vector.extract_strided_slice %185 {offsets = [0, 12], sizes = [8, 4], strides = [1, 1]} : vector<8x32xf32> to vector<8x4xf32>
    %240 = vector.extract_strided_slice %186 {offsets = [0, 12], sizes = [8, 4], strides = [1, 1]} : vector<8x32xf32> to vector<8x4xf32>
    %cst_112 = arith.constant dense<0.000000e+00> : vector<8x8xf32>
    %241 = tpu.matmul %238, %239, %cst_112 {dimension_numbers = #tpu.dot_dimension_numbers<[1], [1], [0], [0], [0, 0, 1, 0], [], []>} : vector<8x4xf32>, vector<8x4xf32>, vector<8x8xf32> -> vector<8x8xf32>
    %cst_113 = arith.constant 5.000000e-01 : f32
    %242 = vector.broadcast %cst_113 : f32 to vector<8x8xf32>
    %243 = arith.mulf %241, %242 : vector<8x8xf32>
    %cst_114 = arith.constant dense<0xFF800000> : vector<8xf32>
    %244 = vector.multi_reduction <maximumf>, %243, %cst_114 [1] : vector<8x8xf32> to vector<8xf32>
    %245 = vector.shape_cast %244 : vector<8xf32> to vector<8x1xf32>
    %246 = vector.broadcast %245 : vector<8x1xf32> to vector<8x8xf32>
    %247 = arith.subf %243, %246 : vector<8x8xf32>
    %248 = math.exp %247 : vector<8x8xf32>
    %cst_115 = arith.constant dense<0.000000e+00> : vector<8xf32>
    %249 = vector.multi_reduction <add>, %248, %cst_115 [1] : vector<8x8xf32> to vector<8xf32>
    %250 = vector.shape_cast %249 : vector<8xf32> to vector<8x1xf32>
    %251 = vector.broadcast %250 : vector<8x1xf32> to vector<8x8xf32>
    %252 = arith.divf %248, %251 : vector<8x8xf32>
    %cst_116 = arith.constant dense<0.000000e+00> : vector<8x4xf32>
    %253 = tpu.matmul %252, %240, %cst_116 {dimension_numbers = #tpu.dot_dimension_numbers<[1], [0], [0], [1], [0, 0, 1, 1], [], []>} : vector<8x8xf32>, vector<8x4xf32>, vector<8x4xf32> -> vector<8x4xf32>
    %c0_117 = arith.constant 0 : index
    %c12_118 = arith.constant 12 : index
    %254 = vector.load %arg13[%c0_117, %c12_118] : memref<16x32xf32, #tpu.memory_space<vmem>>, vector<8x4xf32>
    tpu.vector_store %arg13[%c0_117, %c12_118], %253 {strides = array<i32>} : memref<16x32xf32, #tpu.memory_space<vmem>>, vector<8x4xf32>,
    %255 = vector.extract_strided_slice %184 {offsets = [0, 16], sizes = [8, 4], strides = [1, 1]} : vector<8x32xf32> to vector<8x4xf32>
    %256 = vector.extract_strided_slice %185 {offsets = [0, 16], sizes = [8, 4], strides = [1, 1]} : vector<8x32xf32> to vector<8x4xf32>
    %257 = vector.extract_strided_slice %186 {offsets = [0, 16], sizes = [8, 4], strides = [1, 1]} : vector<8x32xf32> to vector<8x4xf32>
    %cst_119 = arith.constant dense<0.000000e+00> : vector<8x8xf32>
    %258 = tpu.matmul %255, %256, %cst_119 {dimension_numbers = #tpu.dot_dimension_numbers<[1], [1], [0], [0], [0, 0, 1, 0], [], []>} : vector<8x4xf32>, vector<8x4xf32>, vector<8x8xf32> -> vector<8x8xf32>
    %cst_120 = arith.constant 5.000000e-01 : f32
    %259 = vector.broadcast %cst_120 : f32 to vector<8x8xf32>
    %260 = arith.mulf %258, %259 : vector<8x8xf32>
    %cst_121 = arith.constant dense<0xFF800000> : vector<8xf32>
    %261 = vector.multi_reduction <maximumf>, %260, %cst_121 [1] : vector<8x8xf32> to vector<8xf32>
    %262 = vector.shape_cast %261 : vector<8xf32> to vector<8x1xf32>
    %263 = vector.broadcast %262 : vector<8x1xf32> to vector<8x8xf32>
    %264 = arith.subf %260, %263 : vector<8x8xf32>
    %265 = math.exp %264 : vector<8x8xf32>
    %cst_122 = arith.constant dense<0.000000e+00> : vector<8xf32>
    %266 = vector.multi_reduction <add>, %265, %cst_122 [1] : vector<8x8xf32> to vector<8xf32>
    %267 = vector.shape_cast %266 : vector<8xf32> to vector<8x1xf32>
    %268 = vector.broadcast %267 : vector<8x1xf32> to vector<8x8xf32>
    %269 = arith.divf %265, %268 : vector<8x8xf32>
    %cst_123 = arith.constant dense<0.000000e+00> : vector<8x4xf32>
    %270 = tpu.matmul %269, %257, %cst_123 {dimension_numbers = #tpu.dot_dimension_numbers<[1], [0], [0], [1], [0, 0, 1, 1], [], []>} : vector<8x8xf32>, vector<8x4xf32>, vector<8x4xf32> -> vector<8x4xf32>
    %c0_124 = arith.constant 0 : index
    %c16_125 = arith.constant 16 : index
    %271 = vector.load %arg13[%c0_124, %c16_125] : memref<16x32xf32, #tpu.memory_space<vmem>>, vector<8x4xf32>
    tpu.vector_store %arg13[%c0_124, %c16_125], %270 {strides = array<i32>} : memref<16x32xf32, #tpu.memory_space<vmem>>, vector<8x4xf32>,
    %272 = vector.extract_strided_slice %184 {offsets = [0, 20], sizes = [8, 4], strides = [1, 1]} : vector<8x32xf32> to vector<8x4xf32>
    %273 = vector.extract_strided_slice %185 {offsets = [0, 20], sizes = [8, 4], strides = [1, 1]} : vector<8x32xf32> to vector<8x4xf32>
    %274 = vector.extract_strided_slice %186 {offsets = [0, 20], sizes = [8, 4], strides = [1, 1]} : vector<8x32xf32> to vector<8x4xf32>
    %cst_126 = arith.constant dense<0.000000e+00> : vector<8x8xf32>
    %275 = tpu.matmul %272, %273, %cst_126 {dimension_numbers = #tpu.dot_dimension_numbers<[1], [1], [0], [0], [0, 0, 1, 0], [], []>} : vector<8x4xf32>, vector<8x4xf32>, vector<8x8xf32> -> vector<8x8xf32>
    %cst_127 = arith.constant 5.000000e-01 : f32
    %276 = vector.broadcast %cst_127 : f32 to vector<8x8xf32>
    %277 = arith.mulf %275, %276 : vector<8x8xf32>
    %cst_128 = arith.constant dense<0xFF800000> : vector<8xf32>
    %278 = vector.multi_reduction <maximumf>, %277, %cst_128 [1] : vector<8x8xf32> to vector<8xf32>
    %279 = vector.shape_cast %278 : vector<8xf32> to vector<8x1xf32>
    %280 = vector.broadcast %279 : vector<8x1xf32> to vector<8x8xf32>
    %281 = arith.subf %277, %280 : vector<8x8xf32>
    %282 = math.exp %281 : vector<8x8xf32>
    %cst_129 = arith.constant dense<0.000000e+00> : vector<8xf32>
    %283 = vector.multi_reduction <add>, %282, %cst_129 [1] : vector<8x8xf32> to vector<8xf32>
    %284 = vector.shape_cast %283 : vector<8xf32> to vector<8x1xf32>
    %285 = vector.broadcast %284 : vector<8x1xf32> to vector<8x8xf32>
    %286 = arith.divf %282, %285 : vector<8x8xf32>
    %cst_130 = arith.constant dense<0.000000e+00> : vector<8x4xf32>
    %287 = tpu.matmul %286, %274, %cst_130 {dimension_numbers = #tpu.dot_dimension_numbers<[1], [0], [0], [1], [0, 0, 1, 1], [], []>} : vector<8x8xf32>, vector<8x4xf32>, vector<8x4xf32> -> vector<8x4xf32>
    %c0_131 = arith.constant 0 : index
    %c20_132 = arith.constant 20 : index
    %288 = vector.load %arg13[%c0_131, %c20_132] : memref<16x32xf32, #tpu.memory_space<vmem>>, vector<8x4xf32>
    tpu.vector_store %arg13[%c0_131, %c20_132], %287 {strides = array<i32>} : memref<16x32xf32, #tpu.memory_space<vmem>>, vector<8x4xf32>,
    %289 = vector.extract_strided_slice %184 {offsets = [0, 24], sizes = [8, 4], strides = [1, 1]} : vector<8x32xf32> to vector<8x4xf32>
    %290 = vector.extract_strided_slice %185 {offsets = [0, 24], sizes = [8, 4], strides = [1, 1]} : vector<8x32xf32> to vector<8x4xf32>
    %291 = vector.extract_strided_slice %186 {offsets = [0, 24], sizes = [8, 4], strides = [1, 1]} : vector<8x32xf32> to vector<8x4xf32>
    %cst_133 = arith.constant dense<0.000000e+00> : vector<8x8xf32>
    %292 = tpu.matmul %289, %290, %cst_133 {dimension_numbers = #tpu.dot_dimension_numbers<[1], [1], [0], [0], [0, 0, 1, 0], [], []>} : vector<8x4xf32>, vector<8x4xf32>, vector<8x8xf32> -> vector<8x8xf32>
    %cst_134 = arith.constant 5.000000e-01 : f32
    %293 = vector.broadcast %cst_134 : f32 to vector<8x8xf32>
    %294 = arith.mulf %292, %293 : vector<8x8xf32>
    %cst_135 = arith.constant dense<0xFF800000> : vector<8xf32>
    %295 = vector.multi_reduction <maximumf>, %294, %cst_135 [1] : vector<8x8xf32> to vector<8xf32>
    %296 = vector.shape_cast %295 : vector<8xf32> to vector<8x1xf32>
    %297 = vector.broadcast %296 : vector<8x1xf32> to vector<8x8xf32>
    %298 = arith.subf %294, %297 : vector<8x8xf32>
    %299 = math.exp %298 : vector<8x8xf32>
    %cst_136 = arith.constant dense<0.000000e+00> : vector<8xf32>
    %300 = vector.multi_reduction <add>, %299, %cst_136 [1] : vector<8x8xf32> to vector<8xf32>
    %301 = vector.shape_cast %300 : vector<8xf32> to vector<8x1xf32>
    %302 = vector.broadcast %301 : vector<8x1xf32> to vector<8x8xf32>
    %303 = arith.divf %299, %302 : vector<8x8xf32>
    %cst_137 = arith.constant dense<0.000000e+00> : vector<8x4xf32>
    %304 = tpu.matmul %303, %291, %cst_137 {dimension_numbers = #tpu.dot_dimension_numbers<[1], [0], [0], [1], [0, 0, 1, 1], [], []>} : vector<8x8xf32>, vector<8x4xf32>, vector<8x4xf32> -> vector<8x4xf32>
    %c0_138 = arith.constant 0 : index
    %c24_139 = arith.constant 24 : index
    %305 = vector.load %arg13[%c0_138, %c24_139] : memref<16x32xf32, #tpu.memory_space<vmem>>, vector<8x4xf32>
    tpu.vector_store %arg13[%c0_138, %c24_139], %304 {strides = array<i32>} : memref<16x32xf32, #tpu.memory_space<vmem>>, vector<8x4xf32>,
    %306 = vector.extract_strided_slice %184 {offsets = [0, 28], sizes = [8, 4], strides = [1, 1]} : vector<8x32xf32> to vector<8x4xf32>
    %307 = vector.extract_strided_slice %185 {offsets = [0, 28], sizes = [8, 4], strides = [1, 1]} : vector<8x32xf32> to vector<8x4xf32>
    %308 = vector.extract_strided_slice %186 {offsets = [0, 28], sizes = [8, 4], strides = [1, 1]} : vector<8x32xf32> to vector<8x4xf32>
    %cst_140 = arith.constant dense<0.000000e+00> : vector<8x8xf32>
    %309 = tpu.matmul %306, %307, %cst_140 {dimension_numbers = #tpu.dot_dimension_numbers<[1], [1], [0], [0], [0, 0, 1, 0], [], []>} : vector<8x4xf32>, vector<8x4xf32>, vector<8x8xf32> -> vector<8x8xf32>
    %cst_141 = arith.constant 5.000000e-01 : f32
    %310 = vector.broadcast %cst_141 : f32 to vector<8x8xf32>
    %311 = arith.mulf %309, %310 : vector<8x8xf32>
    %cst_142 = arith.constant dense<0xFF800000> : vector<8xf32>
    %312 = vector.multi_reduction <maximumf>, %311, %cst_142 [1] : vector<8x8xf32> to vector<8xf32>
    %313 = vector.shape_cast %312 : vector<8xf32> to vector<8x1xf32>
    %314 = vector.broadcast %313 : vector<8x1xf32> to vector<8x8xf32>
    %315 = arith.subf %311, %314 : vector<8x8xf32>
    %316 = math.exp %315 : vector<8x8xf32>
    %cst_143 = arith.constant dense<0.000000e+00> : vector<8xf32>
    %317 = vector.multi_reduction <add>, %316, %cst_143 [1] : vector<8x8xf32> to vector<8xf32>
    %318 = vector.shape_cast %317 : vector<8xf32> to vector<8x1xf32>
    %319 = vector.broadcast %318 : vector<8x1xf32> to vector<8x8xf32>
    %320 = arith.divf %316, %319 : vector<8x8xf32>
    %cst_144 = arith.constant dense<0.000000e+00> : vector<8x4xf32>
    %321 = tpu.matmul %320, %308, %cst_144 {dimension_numbers = #tpu.dot_dimension_numbers<[1], [0], [0], [1], [0, 0, 1, 1], [], []>} : vector<8x8xf32>, vector<8x4xf32>, vector<8x4xf32> -> vector<8x4xf32>
    %c0_145 = arith.constant 0 : index
    %c28_146 = arith.constant 28 : index
    %322 = vector.load %arg13[%c0_145, %c28_146] : memref<16x32xf32, #tpu.memory_space<vmem>>, vector<8x4xf32>
    tpu.vector_store %arg13[%c0_145, %c28_146], %321 {strides = array<i32>} : memref<16x32xf32, #tpu.memory_space<vmem>>, vector<8x4xf32>,
    %323 = vector.extract_strided_slice %9 {offsets = [8, 0], sizes = [8, 32], strides = [1, 1]} : vector<16x32xf32> to vector<8x32xf32>
    %324 = vector.extract_strided_slice %16 {offsets = [8, 0], sizes = [8, 32], strides = [1, 1]} : vector<16x32xf32> to vector<8x32xf32>
    %325 = vector.extract_strided_slice %23 {offsets = [8, 0], sizes = [8, 32], strides = [1, 1]} : vector<16x32xf32> to vector<8x32xf32>
    %326 = vector.extract_strided_slice %323 {offsets = [0, 0], sizes = [8, 4], strides = [1, 1]} : vector<8x32xf32> to vector<8x4xf32>
    %327 = vector.extract_strided_slice %324 {offsets = [0, 0], sizes = [8, 4], strides = [1, 1]} : vector<8x32xf32> to vector<8x4xf32>
    %328 = vector.extract_strided_slice %325 {offsets = [0, 0], sizes = [8, 4], strides = [1, 1]} : vector<8x32xf32> to vector<8x4xf32>
    %cst_147 = arith.constant dense<0.000000e+00> : vector<8x8xf32>
    %329 = tpu.matmul %326, %327, %cst_147 {dimension_numbers = #tpu.dot_dimension_numbers<[1], [1], [0], [0], [0, 0, 1, 0], [], []>} : vector<8x4xf32>, vector<8x4xf32>, vector<8x8xf32> -> vector<8x8xf32>
    %cst_148 = arith.constant 5.000000e-01 : f32
    %330 = vector.broadcast %cst_148 : f32 to vector<8x8xf32>
    %331 = arith.mulf %329, %330 : vector<8x8xf32>
    %cst_149 = arith.constant dense<0xFF800000> : vector<8xf32>
    %332 = vector.multi_reduction <maximumf>, %331, %cst_149 [1] : vector<8x8xf32> to vector<8xf32>
    %333 = vector.shape_cast %332 : vector<8xf32> to vector<8x1xf32>
    %334 = vector.broadcast %333 : vector<8x1xf32> to vector<8x8xf32>
    %335 = arith.subf %331, %334 : vector<8x8xf32>
    %336 = math.exp %335 : vector<8x8xf32>
    %cst_150 = arith.constant dense<0.000000e+00> : vector<8xf32>
    %337 = vector.multi_reduction <add>, %336, %cst_150 [1] : vector<8x8xf32> to vector<8xf32>
    %338 = vector.shape_cast %337 : vector<8xf32> to vector<8x1xf32>
    %339 = vector.broadcast %338 : vector<8x1xf32> to vector<8x8xf32>
    %340 = arith.divf %336, %339 : vector<8x8xf32>
    %cst_151 = arith.constant dense<0.000000e+00> : vector<8x4xf32>
    %341 = tpu.matmul %340, %328, %cst_151 {dimension_numbers = #tpu.dot_dimension_numbers<[1], [0], [0], [1], [0, 0, 1, 1], [], []>} : vector<8x8xf32>, vector<8x4xf32>, vector<8x4xf32> -> vector<8x4xf32>
    %c8_152 = arith.constant 8 : index
    %c0_153 = arith.constant 0 : index
    %342 = vector.load %arg12[%c8_152, %c0_153] : memref<16x32xf32, #tpu.memory_space<vmem>>, vector<8x4xf32>
    tpu.vector_store %arg12[%c8_152, %c0_153], %341 {strides = array<i32>} : memref<16x32xf32, #tpu.memory_space<vmem>>, vector<8x4xf32>,
    %343 = vector.extract_strided_slice %323 {offsets = [0, 4], sizes = [8, 4], strides = [1, 1]} : vector<8x32xf32> to vector<8x4xf32>
    %344 = vector.extract_strided_slice %324 {offsets = [0, 4], sizes = [8, 4], strides = [1, 1]} : vector<8x32xf32> to vector<8x4xf32>
    %345 = vector.extract_strided_slice %325 {offsets = [0, 4], sizes = [8, 4], strides = [1, 1]} : vector<8x32xf32> to vector<8x4xf32>
    %cst_154 = arith.constant dense<0.000000e+00> : vector<8x8xf32>
    %346 = tpu.matmul %343, %344, %cst_154 {dimension_numbers = #tpu.dot_dimension_numbers<[1], [1], [0], [0], [0, 0, 1, 0], [], []>} : vector<8x4xf32>, vector<8x4xf32>, vector<8x8xf32> -> vector<8x8xf32>
    %cst_155 = arith.constant 5.000000e-01 : f32
    %347 = vector.broadcast %cst_155 : f32 to vector<8x8xf32>
    %348 = arith.mulf %346, %347 : vector<8x8xf32>
    %cst_156 = arith.constant dense<0xFF800000> : vector<8xf32>
    %349 = vector.multi_reduction <maximumf>, %348, %cst_156 [1] : vector<8x8xf32> to vector<8xf32>
    %350 = vector.shape_cast %349 : vector<8xf32> to vector<8x1xf32>
    %351 = vector.broadcast %350 : vector<8x1xf32> to vector<8x8xf32>
    %352 = arith.subf %348, %351 : vector<8x8xf32>
    %353 = math.exp %352 : vector<8x8xf32>
    %cst_157 = arith.constant dense<0.000000e+00> : vector<8xf32>
    %354 = vector.multi_reduction <add>, %353, %cst_157 [1] : vector<8x8xf32> to vector<8xf32>
    %355 = vector.shape_cast %354 : vector<8xf32> to vector<8x1xf32>
    %356 = vector.broadcast %355 : vector<8x1xf32> to vector<8x8xf32>
    %357 = arith.divf %353, %356 : vector<8x8xf32>
    %cst_158 = arith.constant dense<0.000000e+00> : vector<8x4xf32>
    %358 = tpu.matmul %357, %345, %cst_158 {dimension_numbers = #tpu.dot_dimension_numbers<[1], [0], [0], [1], [0, 0, 1, 1], [], []>} : vector<8x8xf32>, vector<8x4xf32>, vector<8x4xf32> -> vector<8x4xf32>
    %c8_159 = arith.constant 8 : index
    %c4_160 = arith.constant 4 : index
    %359 = vector.load %arg12[%c8_159, %c4_160] : memref<16x32xf32, #tpu.memory_space<vmem>>, vector<8x4xf32>
    tpu.vector_store %arg12[%c8_159, %c4_160], %358 {strides = array<i32>} : memref<16x32xf32, #tpu.memory_space<vmem>>, vector<8x4xf32>,
    %360 = vector.extract_strided_slice %323 {offsets = [0, 8], sizes = [8, 4], strides = [1, 1]} : vector<8x32xf32> to vector<8x4xf32>
    %361 = vector.extract_strided_slice %324 {offsets = [0, 8], sizes = [8, 4], strides = [1, 1]} : vector<8x32xf32> to vector<8x4xf32>
    %362 = vector.extract_strided_slice %325 {offsets = [0, 8], sizes = [8, 4], strides = [1, 1]} : vector<8x32xf32> to vector<8x4xf32>
    %cst_161 = arith.constant dense<0.000000e+00> : vector<8x8xf32>
    %363 = tpu.matmul %360, %361, %cst_161 {dimension_numbers = #tpu.dot_dimension_numbers<[1], [1], [0], [0], [0, 0, 1, 0], [], []>} : vector<8x4xf32>, vector<8x4xf32>, vector<8x8xf32> -> vector<8x8xf32>
    %cst_162 = arith.constant 5.000000e-01 : f32
    %364 = vector.broadcast %cst_162 : f32 to vector<8x8xf32>
    %365 = arith.mulf %363, %364 : vector<8x8xf32>
    %cst_163 = arith.constant dense<0xFF800000> : vector<8xf32>
    %366 = vector.multi_reduction <maximumf>, %365, %cst_163 [1] : vector<8x8xf32> to vector<8xf32>
    %367 = vector.shape_cast %366 : vector<8xf32> to vector<8x1xf32>
    %368 = vector.broadcast %367 : vector<8x1xf32> to vector<8x8xf32>
    %369 = arith.subf %365, %368 : vector<8x8xf32>
    %370 = math.exp %369 : vector<8x8xf32>
    %cst_164 = arith.constant dense<0.000000e+00> : vector<8xf32>
    %371 = vector.multi_reduction <add>, %370, %cst_164 [1] : vector<8x8xf32> to vector<8xf32>
    %372 = vector.shape_cast %371 : vector<8xf32> to vector<8x1xf32>
    %373 = vector.broadcast %372 : vector<8x1xf32> to vector<8x8xf32>
    %374 = arith.divf %370, %373 : vector<8x8xf32>
    %cst_165 = arith.constant dense<0.000000e+00> : vector<8x4xf32>
    %375 = tpu.matmul %374, %362, %cst_165 {dimension_numbers = #tpu.dot_dimension_numbers<[1], [0], [0], [1], [0, 0, 1, 1], [], []>} : vector<8x8xf32>, vector<8x4xf32>, vector<8x4xf32> -> vector<8x4xf32>
    %c8_166 = arith.constant 8 : index
    %c8_167 = arith.constant 8 : index
    %376 = vector.load %arg12[%c8_166, %c8_167] : memref<16x32xf32, #tpu.memory_space<vmem>>, vector<8x4xf32>
    tpu.vector_store %arg12[%c8_166, %c8_167], %375 {strides = array<i32>} : memref<16x32xf32, #tpu.memory_space<vmem>>, vector<8x4xf32>,
    %377 = vector.extract_strided_slice %323 {offsets = [0, 12], sizes = [8, 4], strides = [1, 1]} : vector<8x32xf32> to vector<8x4xf32>
    %378 = vector.extract_strided_slice %324 {offsets = [0, 12], sizes = [8, 4], strides = [1, 1]} : vector<8x32xf32> to vector<8x4xf32>
    %379 = vector.extract_strided_slice %325 {offsets = [0, 12], sizes = [8, 4], strides = [1, 1]} : vector<8x32xf32> to vector<8x4xf32>
    %cst_168 = arith.constant dense<0.000000e+00> : vector<8x8xf32>
    %380 = tpu.matmul %377, %378, %cst_168 {dimension_numbers = #tpu.dot_dimension_numbers<[1], [1], [0], [0], [0, 0, 1, 0], [], []>} : vector<8x4xf32>, vector<8x4xf32>, vector<8x8xf32> -> vector<8x8xf32>
    %cst_169 = arith.constant 5.000000e-01 : f32
    %381 = vector.broadcast %cst_169 : f32 to vector<8x8xf32>
    %382 = arith.mulf %380, %381 : vector<8x8xf32>
    %cst_170 = arith.constant dense<0xFF800000> : vector<8xf32>
    %383 = vector.multi_reduction <maximumf>, %382, %cst_170 [1] : vector<8x8xf32> to vector<8xf32>
    %384 = vector.shape_cast %383 : vector<8xf32> to vector<8x1xf32>
    %385 = vector.broadcast %384 : vector<8x1xf32> to vector<8x8xf32>
    %386 = arith.subf %382, %385 : vector<8x8xf32>
    %387 = math.exp %386 : vector<8x8xf32>
    %cst_171 = arith.constant dense<0.000000e+00> : vector<8xf32>
    %388 = vector.multi_reduction <add>, %387, %cst_171 [1] : vector<8x8xf32> to vector<8xf32>
    %389 = vector.shape_cast %388 : vector<8xf32> to vector<8x1xf32>
    %390 = vector.broadcast %389 : vector<8x1xf32> to vector<8x8xf32>
    %391 = arith.divf %387, %390 : vector<8x8xf32>
    %cst_172 = arith.constant dense<0.000000e+00> : vector<8x4xf32>
    %392 = tpu.matmul %391, %379, %cst_172 {dimension_numbers = #tpu.dot_dimension_numbers<[1], [0], [0], [1], [0, 0, 1, 1], [], []>} : vector<8x8xf32>, vector<8x4xf32>, vector<8x4xf32> -> vector<8x4xf32>
    %c8_173 = arith.constant 8 : index
    %c12_174 = arith.constant 12 : index
    %393 = vector.load %arg12[%c8_173, %c12_174] : memref<16x32xf32, #tpu.memory_space<vmem>>, vector<8x4xf32>
    tpu.vector_store %arg12[%c8_173, %c12_174], %392 {strides = array<i32>} : memref<16x32xf32, #tpu.memory_space<vmem>>, vector<8x4xf32>,
    %394 = vector.extract_strided_slice %323 {offsets = [0, 16], sizes = [8, 4], strides = [1, 1]} : vector<8x32xf32> to vector<8x4xf32>
    %395 = vector.extract_strided_slice %324 {offsets = [0, 16], sizes = [8, 4], strides = [1, 1]} : vector<8x32xf32> to vector<8x4xf32>
    %396 = vector.extract_strided_slice %325 {offsets = [0, 16], sizes = [8, 4], strides = [1, 1]} : vector<8x32xf32> to vector<8x4xf32>
    %cst_175 = arith.constant dense<0.000000e+00> : vector<8x8xf32>
    %397 = tpu.matmul %394, %395, %cst_175 {dimension_numbers = #tpu.dot_dimension_numbers<[1], [1], [0], [0], [0, 0, 1, 0], [], []>} : vector<8x4xf32>, vector<8x4xf32>, vector<8x8xf32> -> vector<8x8xf32>
    %cst_176 = arith.constant 5.000000e-01 : f32
    %398 = vector.broadcast %cst_176 : f32 to vector<8x8xf32>
    %399 = arith.mulf %397, %398 : vector<8x8xf32>
    %cst_177 = arith.constant dense<0xFF800000> : vector<8xf32>
    %400 = vector.multi_reduction <maximumf>, %399, %cst_177 [1] : vector<8x8xf32> to vector<8xf32>
    %401 = vector.shape_cast %400 : vector<8xf32> to vector<8x1xf32>
    %402 = vector.broadcast %401 : vector<8x1xf32> to vector<8x8xf32>
    %403 = arith.subf %399, %402 : vector<8x8xf32>
    %404 = math.exp %403 : vector<8x8xf32>
    %cst_178 = arith.constant dense<0.000000e+00> : vector<8xf32>
    %405 = vector.multi_reduction <add>, %404, %cst_178 [1] : vector<8x8xf32> to vector<8xf32>
    %406 = vector.shape_cast %405 : vector<8xf32> to vector<8x1xf32>
    %407 = vector.broadcast %406 : vector<8x1xf32> to vector<8x8xf32>
    %408 = arith.divf %404, %407 : vector<8x8xf32>
    %cst_179 = arith.constant dense<0.000000e+00> : vector<8x4xf32>
    %409 = tpu.matmul %408, %396, %cst_179 {dimension_numbers = #tpu.dot_dimension_numbers<[1], [0], [0], [1], [0, 0, 1, 1], [], []>} : vector<8x8xf32>, vector<8x4xf32>, vector<8x4xf32> -> vector<8x4xf32>
    %c8_180 = arith.constant 8 : index
    %c16_181 = arith.constant 16 : index
    %410 = vector.load %arg12[%c8_180, %c16_181] : memref<16x32xf32, #tpu.memory_space<vmem>>, vector<8x4xf32>
    tpu.vector_store %arg12[%c8_180, %c16_181], %409 {strides = array<i32>} : memref<16x32xf32, #tpu.memory_space<vmem>>, vector<8x4xf32>,
    %411 = vector.extract_strided_slice %323 {offsets = [0, 20], sizes = [8, 4], strides = [1, 1]} : vector<8x32xf32> to vector<8x4xf32>
    %412 = vector.extract_strided_slice %324 {offsets = [0, 20], sizes = [8, 4], strides = [1, 1]} : vector<8x32xf32> to vector<8x4xf32>
    %413 = vector.extract_strided_slice %325 {offsets = [0, 20], sizes = [8, 4], strides = [1, 1]} : vector<8x32xf32> to vector<8x4xf32>
    %cst_182 = arith.constant dense<0.000000e+00> : vector<8x8xf32>
    %414 = tpu.matmul %411, %412, %cst_182 {dimension_numbers = #tpu.dot_dimension_numbers<[1], [1], [0], [0], [0, 0, 1, 0], [], []>} : vector<8x4xf32>, vector<8x4xf32>, vector<8x8xf32> -> vector<8x8xf32>
    %cst_183 = arith.constant 5.000000e-01 : f32
    %415 = vector.broadcast %cst_183 : f32 to vector<8x8xf32>
    %416 = arith.mulf %414, %415 : vector<8x8xf32>
    %cst_184 = arith.constant dense<0xFF800000> : vector<8xf32>
    %417 = vector.multi_reduction <maximumf>, %416, %cst_184 [1] : vector<8x8xf32> to vector<8xf32>
    %418 = vector.shape_cast %417 : vector<8xf32> to vector<8x1xf32>
    %419 = vector.broadcast %418 : vector<8x1xf32> to vector<8x8xf32>
    %420 = arith.subf %416, %419 : vector<8x8xf32>
    %421 = math.exp %420 : vector<8x8xf32>
    %cst_185 = arith.constant dense<0.000000e+00> : vector<8xf32>
    %422 = vector.multi_reduction <add>, %421, %cst_185 [1] : vector<8x8xf32> to vector<8xf32>
    %423 = vector.shape_cast %422 : vector<8xf32> to vector<8x1xf32>
    %424 = vector.broadcast %423 : vector<8x1xf32> to vector<8x8xf32>
    %425 = arith.divf %421, %424 : vector<8x8xf32>
    %cst_186 = arith.constant dense<0.000000e+00> : vector<8x4xf32>
    %426 = tpu.matmul %425, %413, %cst_186 {dimension_numbers = #tpu.dot_dimension_numbers<[1], [0], [0], [1], [0, 0, 1, 1], [], []>} : vector<8x8xf32>, vector<8x4xf32>, vector<8x4xf32> -> vector<8x4xf32>
    %c8_187 = arith.constant 8 : index
    %c20_188 = arith.constant 20 : index
    %427 = vector.load %arg12[%c8_187, %c20_188] : memref<16x32xf32, #tpu.memory_space<vmem>>, vector<8x4xf32>
    tpu.vector_store %arg12[%c8_187, %c20_188], %426 {strides = array<i32>} : memref<16x32xf32, #tpu.memory_space<vmem>>, vector<8x4xf32>,
    %428 = vector.extract_strided_slice %323 {offsets = [0, 24], sizes = [8, 4], strides = [1, 1]} : vector<8x32xf32> to vector<8x4xf32>
    %429 = vector.extract_strided_slice %324 {offsets = [0, 24], sizes = [8, 4], strides = [1, 1]} : vector<8x32xf32> to vector<8x4xf32>
    %430 = vector.extract_strided_slice %325 {offsets = [0, 24], sizes = [8, 4], strides = [1, 1]} : vector<8x32xf32> to vector<8x4xf32>
    %cst_189 = arith.constant dense<0.000000e+00> : vector<8x8xf32>
    %431 = tpu.matmul %428, %429, %cst_189 {dimension_numbers = #tpu.dot_dimension_numbers<[1], [1], [0], [0], [0, 0, 1, 0], [], []>} : vector<8x4xf32>, vector<8x4xf32>, vector<8x8xf32> -> vector<8x8xf32>
    %cst_190 = arith.constant 5.000000e-01 : f32
    %432 = vector.broadcast %cst_190 : f32 to vector<8x8xf32>
    %433 = arith.mulf %431, %432 : vector<8x8xf32>
    %cst_191 = arith.constant dense<0xFF800000> : vector<8xf32>
    %434 = vector.multi_reduction <maximumf>, %433, %cst_191 [1] : vector<8x8xf32> to vector<8xf32>
    %435 = vector.shape_cast %434 : vector<8xf32> to vector<8x1xf32>
    %436 = vector.broadcast %435 : vector<8x1xf32> to vector<8x8xf32>
    %437 = arith.subf %433, %436 : vector<8x8xf32>
    %438 = math.exp %437 : vector<8x8xf32>
    %cst_192 = arith.constant dense<0.000000e+00> : vector<8xf32>
    %439 = vector.multi_reduction <add>, %438, %cst_192 [1] : vector<8x8xf32> to vector<8xf32>
    %440 = vector.shape_cast %439 : vector<8xf32> to vector<8x1xf32>
    %441 = vector.broadcast %440 : vector<8x1xf32> to vector<8x8xf32>
    %442 = arith.divf %438, %441 : vector<8x8xf32>
    %cst_193 = arith.constant dense<0.000000e+00> : vector<8x4xf32>
    %443 = tpu.matmul %442, %430, %cst_193 {dimension_numbers = #tpu.dot_dimension_numbers<[1], [0], [0], [1], [0, 0, 1, 1], [], []>} : vector<8x8xf32>, vector<8x4xf32>, vector<8x4xf32> -> vector<8x4xf32>
    %c8_194 = arith.constant 8 : index
    %c24_195 = arith.constant 24 : index
    %444 = vector.load %arg12[%c8_194, %c24_195] : memref<16x32xf32, #tpu.memory_space<vmem>>, vector<8x4xf32>
    tpu.vector_store %arg12[%c8_194, %c24_195], %443 {strides = array<i32>} : memref<16x32xf32, #tpu.memory_space<vmem>>, vector<8x4xf32>,
    %445 = vector.extract_strided_slice %323 {offsets = [0, 28], sizes = [8, 4], strides = [1, 1]} : vector<8x32xf32> to vector<8x4xf32>
    %446 = vector.extract_strided_slice %324 {offsets = [0, 28], sizes = [8, 4], strides = [1, 1]} : vector<8x32xf32> to vector<8x4xf32>
    %447 = vector.extract_strided_slice %325 {offsets = [0, 28], sizes = [8, 4], strides = [1, 1]} : vector<8x32xf32> to vector<8x4xf32>
    %cst_196 = arith.constant dense<0.000000e+00> : vector<8x8xf32>
    %448 = tpu.matmul %445, %446, %cst_196 {dimension_numbers = #tpu.dot_dimension_numbers<[1], [1], [0], [0], [0, 0, 1, 0], [], []>} : vector<8x4xf32>, vector<8x4xf32>, vector<8x8xf32> -> vector<8x8xf32>
    %cst_197 = arith.constant 5.000000e-01 : f32
    %449 = vector.broadcast %cst_197 : f32 to vector<8x8xf32>
    %450 = arith.mulf %448, %449 : vector<8x8xf32>
    %cst_198 = arith.constant dense<0xFF800000> : vector<8xf32>
    %451 = vector.multi_reduction <maximumf>, %450, %cst_198 [1] : vector<8x8xf32> to vector<8xf32>
    %452 = vector.shape_cast %451 : vector<8xf32> to vector<8x1xf32>
    %453 = vector.broadcast %452 : vector<8x1xf32> to vector<8x8xf32>
    %454 = arith.subf %450, %453 : vector<8x8xf32>
    %455 = math.exp %454 : vector<8x8xf32>
    %cst_199 = arith.constant dense<0.000000e+00> : vector<8xf32>
    %456 = vector.multi_reduction <add>, %455, %cst_199 [1] : vector<8x8xf32> to vector<8xf32>
    %457 = vector.shape_cast %456 : vector<8xf32> to vector<8x1xf32>
    %458 = vector.broadcast %457 : vector<8x1xf32> to vector<8x8xf32>
    %459 = arith.divf %455, %458 : vector<8x8xf32>
    %cst_200 = arith.constant dense<0.000000e+00> : vector<8x4xf32>
    %460 = tpu.matmul %459, %447, %cst_200 {dimension_numbers = #tpu.dot_dimension_numbers<[1], [0], [0], [1], [0, 0, 1, 1], [], []>} : vector<8x8xf32>, vector<8x4xf32>, vector<8x4xf32> -> vector<8x4xf32>
    %c8_201 = arith.constant 8 : index
    %c28_202 = arith.constant 28 : index
    %461 = vector.load %arg12[%c8_201, %c28_202] : memref<16x32xf32, #tpu.memory_space<vmem>>, vector<8x4xf32>
    tpu.vector_store %arg12[%c8_201, %c28_202], %460 {strides = array<i32>} : memref<16x32xf32, #tpu.memory_space<vmem>>, vector<8x4xf32>,
    %462 = vector.extract_strided_slice %30 {offsets = [8, 0], sizes = [8, 32], strides = [1, 1]} : vector<16x32xf32> to vector<8x32xf32>
    %463 = vector.extract_strided_slice %37 {offsets = [8, 0], sizes = [8, 32], strides = [1, 1]} : vector<16x32xf32> to vector<8x32xf32>
    %464 = vector.extract_strided_slice %44 {offsets = [8, 0], sizes = [8, 32], strides = [1, 1]} : vector<16x32xf32> to vector<8x32xf32>
    %465 = vector.extract_strided_slice %462 {offsets = [0, 0], sizes = [8, 4], strides = [1, 1]} : vector<8x32xf32> to vector<8x4xf32>
    %466 = vector.extract_strided_slice %463 {offsets = [0, 0], sizes = [8, 4], strides = [1, 1]} : vector<8x32xf32> to vector<8x4xf32>
    %467 = vector.extract_strided_slice %464 {offsets = [0, 0], sizes = [8, 4], strides = [1, 1]} : vector<8x32xf32> to vector<8x4xf32>
    %cst_203 = arith.constant dense<0.000000e+00> : vector<8x8xf32>
    %468 = tpu.matmul %465, %466, %cst_203 {dimension_numbers = #tpu.dot_dimension_numbers<[1], [1], [0], [0], [0, 0, 1, 0], [], []>} : vector<8x4xf32>, vector<8x4xf32>, vector<8x8xf32> -> vector<8x8xf32>
    %cst_204 = arith.constant 5.000000e-01 : f32
    %469 = vector.broadcast %cst_204 : f32 to vector<8x8xf32>
    %470 = arith.mulf %468, %469 : vector<8x8xf32>
    %cst_205 = arith.constant dense<0xFF800000> : vector<8xf32>
    %471 = vector.multi_reduction <maximumf>, %470, %cst_205 [1] : vector<8x8xf32> to vector<8xf32>
    %472 = vector.shape_cast %471 : vector<8xf32> to vector<8x1xf32>
    %473 = vector.broadcast %472 : vector<8x1xf32> to vector<8x8xf32>
    %474 = arith.subf %470, %473 : vector<8x8xf32>
    %475 = math.exp %474 : vector<8x8xf32>
    %cst_206 = arith.constant dense<0.000000e+00> : vector<8xf32>
    %476 = vector.multi_reduction <add>, %475, %cst_206 [1] : vector<8x8xf32> to vector<8xf32>
    %477 = vector.shape_cast %476 : vector<8xf32> to vector<8x1xf32>
    %478 = vector.broadcast %477 : vector<8x1xf32> to vector<8x8xf32>
    %479 = arith.divf %475, %478 : vector<8x8xf32>
    %cst_207 = arith.constant dense<0.000000e+00> : vector<8x4xf32>
    %480 = tpu.matmul %479, %467, %cst_207 {dimension_numbers = #tpu.dot_dimension_numbers<[1], [0], [0], [1], [0, 0, 1, 1], [], []>} : vector<8x8xf32>, vector<8x4xf32>, vector<8x4xf32> -> vector<8x4xf32>
    %c8_208 = arith.constant 8 : index
    %c0_209 = arith.constant 0 : index
    %481 = vector.load %arg13[%c8_208, %c0_209] : memref<16x32xf32, #tpu.memory_space<vmem>>, vector<8x4xf32>
    tpu.vector_store %arg13[%c8_208, %c0_209], %480 {strides = array<i32>} : memref<16x32xf32, #tpu.memory_space<vmem>>, vector<8x4xf32>,
    %482 = vector.extract_strided_slice %462 {offsets = [0, 4], sizes = [8, 4], strides = [1, 1]} : vector<8x32xf32> to vector<8x4xf32>
    %483 = vector.extract_strided_slice %463 {offsets = [0, 4], sizes = [8, 4], strides = [1, 1]} : vector<8x32xf32> to vector<8x4xf32>
    %484 = vector.extract_strided_slice %464 {offsets = [0, 4], sizes = [8, 4], strides = [1, 1]} : vector<8x32xf32> to vector<8x4xf32>
    %cst_210 = arith.constant dense<0.000000e+00> : vector<8x8xf32>
    %485 = tpu.matmul %482, %483, %cst_210 {dimension_numbers = #tpu.dot_dimension_numbers<[1], [1], [0], [0], [0, 0, 1, 0], [], []>} : vector<8x4xf32>, vector<8x4xf32>, vector<8x8xf32> -> vector<8x8xf32>
    %cst_211 = arith.constant 5.000000e-01 : f32
    %486 = vector.broadcast %cst_211 : f32 to vector<8x8xf32>
    %487 = arith.mulf %485, %486 : vector<8x8xf32>
    %cst_212 = arith.constant dense<0xFF800000> : vector<8xf32>
    %488 = vector.multi_reduction <maximumf>, %487, %cst_212 [1] : vector<8x8xf32> to vector<8xf32>
    %489 = vector.shape_cast %488 : vector<8xf32> to vector<8x1xf32>
    %490 = vector.broadcast %489 : vector<8x1xf32> to vector<8x8xf32>
    %491 = arith.subf %487, %490 : vector<8x8xf32>
    %492 = math.exp %491 : vector<8x8xf32>
    %cst_213 = arith.constant dense<0.000000e+00> : vector<8xf32>
    %493 = vector.multi_reduction <add>, %492, %cst_213 [1] : vector<8x8xf32> to vector<8xf32>
    %494 = vector.shape_cast %493 : vector<8xf32> to vector<8x1xf32>
    %495 = vector.broadcast %494 : vector<8x1xf32> to vector<8x8xf32>
    %496 = arith.divf %492, %495 : vector<8x8xf32>
    %cst_214 = arith.constant dense<0.000000e+00> : vector<8x4xf32>
    %497 = tpu.matmul %496, %484, %cst_214 {dimension_numbers = #tpu.dot_dimension_numbers<[1], [0], [0], [1], [0, 0, 1, 1], [], []>} : vector<8x8xf32>, vector<8x4xf32>, vector<8x4xf32> -> vector<8x4xf32>
    %c8_215 = arith.constant 8 : index
    %c4_216 = arith.constant 4 : index
    %498 = vector.load %arg13[%c8_215, %c4_216] : memref<16x32xf32, #tpu.memory_space<vmem>>, vector<8x4xf32>
    tpu.vector_store %arg13[%c8_215, %c4_216], %497 {strides = array<i32>} : memref<16x32xf32, #tpu.memory_space<vmem>>, vector<8x4xf32>,
    %499 = vector.extract_strided_slice %462 {offsets = [0, 8], sizes = [8, 4], strides = [1, 1]} : vector<8x32xf32> to vector<8x4xf32>
    %500 = vector.extract_strided_slice %463 {offsets = [0, 8], sizes = [8, 4], strides = [1, 1]} : vector<8x32xf32> to vector<8x4xf32>
    %501 = vector.extract_strided_slice %464 {offsets = [0, 8], sizes = [8, 4], strides = [1, 1]} : vector<8x32xf32> to vector<8x4xf32>
    %cst_217 = arith.constant dense<0.000000e+00> : vector<8x8xf32>
    %502 = tpu.matmul %499, %500, %cst_217 {dimension_numbers = #tpu.dot_dimension_numbers<[1], [1], [0], [0], [0, 0, 1, 0], [], []>} : vector<8x4xf32>, vector<8x4xf32>, vector<8x8xf32> -> vector<8x8xf32>
    %cst_218 = arith.constant 5.000000e-01 : f32
    %503 = vector.broadcast %cst_218 : f32 to vector<8x8xf32>
    %504 = arith.mulf %502, %503 : vector<8x8xf32>
    %cst_219 = arith.constant dense<0xFF800000> : vector<8xf32>
    %505 = vector.multi_reduction <maximumf>, %504, %cst_219 [1] : vector<8x8xf32> to vector<8xf32>
    %506 = vector.shape_cast %505 : vector<8xf32> to vector<8x1xf32>
    %507 = vector.broadcast %506 : vector<8x1xf32> to vector<8x8xf32>
    %508 = arith.subf %504, %507 : vector<8x8xf32>
    %509 = math.exp %508 : vector<8x8xf32>
    %cst_220 = arith.constant dense<0.000000e+00> : vector<8xf32>
    %510 = vector.multi_reduction <add>, %509, %cst_220 [1] : vector<8x8xf32> to vector<8xf32>
    %511 = vector.shape_cast %510 : vector<8xf32> to vector<8x1xf32>
    %512 = vector.broadcast %511 : vector<8x1xf32> to vector<8x8xf32>
    %513 = arith.divf %509, %512 : vector<8x8xf32>
    %cst_221 = arith.constant dense<0.000000e+00> : vector<8x4xf32>
    %514 = tpu.matmul %513, %501, %cst_221 {dimension_numbers = #tpu.dot_dimension_numbers<[1], [0], [0], [1], [0, 0, 1, 1], [], []>} : vector<8x8xf32>, vector<8x4xf32>, vector<8x4xf32> -> vector<8x4xf32>
    %c8_222 = arith.constant 8 : index
    %c8_223 = arith.constant 8 : index
    %515 = vector.load %arg13[%c8_222, %c8_223] : memref<16x32xf32, #tpu.memory_space<vmem>>, vector<8x4xf32>
    tpu.vector_store %arg13[%c8_222, %c8_223], %514 {strides = array<i32>} : memref<16x32xf32, #tpu.memory_space<vmem>>, vector<8x4xf32>,
    %516 = vector.extract_strided_slice %462 {offsets = [0, 12], sizes = [8, 4], strides = [1, 1]} : vector<8x32xf32> to vector<8x4xf32>
    %517 = vector.extract_strided_slice %463 {offsets = [0, 12], sizes = [8, 4], strides = [1, 1]} : vector<8x32xf32> to vector<8x4xf32>
    %518 = vector.extract_strided_slice %464 {offsets = [0, 12], sizes = [8, 4], strides = [1, 1]} : vector<8x32xf32> to vector<8x4xf32>
    %cst_224 = arith.constant dense<0.000000e+00> : vector<8x8xf32>
    %519 = tpu.matmul %516, %517, %cst_224 {dimension_numbers = #tpu.dot_dimension_numbers<[1], [1], [0], [0], [0, 0, 1, 0], [], []>} : vector<8x4xf32>, vector<8x4xf32>, vector<8x8xf32> -> vector<8x8xf32>
    %cst_225 = arith.constant 5.000000e-01 : f32
    %520 = vector.broadcast %cst_225 : f32 to vector<8x8xf32>
    %521 = arith.mulf %519, %520 : vector<8x8xf32>
    %cst_226 = arith.constant dense<0xFF800000> : vector<8xf32>
    %522 = vector.multi_reduction <maximumf>, %521, %cst_226 [1] : vector<8x8xf32> to vector<8xf32>
    %523 = vector.shape_cast %522 : vector<8xf32> to vector<8x1xf32>
    %524 = vector.broadcast %523 : vector<8x1xf32> to vector<8x8xf32>
    %525 = arith.subf %521, %524 : vector<8x8xf32>
    %526 = math.exp %525 : vector<8x8xf32>
    %cst_227 = arith.constant dense<0.000000e+00> : vector<8xf32>
    %527 = vector.multi_reduction <add>, %526, %cst_227 [1] : vector<8x8xf32> to vector<8xf32>
    %528 = vector.shape_cast %527 : vector<8xf32> to vector<8x1xf32>
    %529 = vector.broadcast %528 : vector<8x1xf32> to vector<8x8xf32>
    %530 = arith.divf %526, %529 : vector<8x8xf32>
    %cst_228 = arith.constant dense<0.000000e+00> : vector<8x4xf32>
    %531 = tpu.matmul %530, %518, %cst_228 {dimension_numbers = #tpu.dot_dimension_numbers<[1], [0], [0], [1], [0, 0, 1, 1], [], []>} : vector<8x8xf32>, vector<8x4xf32>, vector<8x4xf32> -> vector<8x4xf32>
    %c8_229 = arith.constant 8 : index
    %c12_230 = arith.constant 12 : index
    %532 = vector.load %arg13[%c8_229, %c12_230] : memref<16x32xf32, #tpu.memory_space<vmem>>, vector<8x4xf32>
    tpu.vector_store %arg13[%c8_229, %c12_230], %531 {strides = array<i32>} : memref<16x32xf32, #tpu.memory_space<vmem>>, vector<8x4xf32>,
    %533 = vector.extract_strided_slice %462 {offsets = [0, 16], sizes = [8, 4], strides = [1, 1]} : vector<8x32xf32> to vector<8x4xf32>
    %534 = vector.extract_strided_slice %463 {offsets = [0, 16], sizes = [8, 4], strides = [1, 1]} : vector<8x32xf32> to vector<8x4xf32>
    %535 = vector.extract_strided_slice %464 {offsets = [0, 16], sizes = [8, 4], strides = [1, 1]} : vector<8x32xf32> to vector<8x4xf32>
    %cst_231 = arith.constant dense<0.000000e+00> : vector<8x8xf32>
    %536 = tpu.matmul %533, %534, %cst_231 {dimension_numbers = #tpu.dot_dimension_numbers<[1], [1], [0], [0], [0, 0, 1, 0], [], []>} : vector<8x4xf32>, vector<8x4xf32>, vector<8x8xf32> -> vector<8x8xf32>
    %cst_232 = arith.constant 5.000000e-01 : f32
    %537 = vector.broadcast %cst_232 : f32 to vector<8x8xf32>
    %538 = arith.mulf %536, %537 : vector<8x8xf32>
    %cst_233 = arith.constant dense<0xFF800000> : vector<8xf32>
    %539 = vector.multi_reduction <maximumf>, %538, %cst_233 [1] : vector<8x8xf32> to vector<8xf32>
    %540 = vector.shape_cast %539 : vector<8xf32> to vector<8x1xf32>
    %541 = vector.broadcast %540 : vector<8x1xf32> to vector<8x8xf32>
    %542 = arith.subf %538, %541 : vector<8x8xf32>
    %543 = math.exp %542 : vector<8x8xf32>
    %cst_234 = arith.constant dense<0.000000e+00> : vector<8xf32>
    %544 = vector.multi_reduction <add>, %543, %cst_234 [1] : vector<8x8xf32> to vector<8xf32>
    %545 = vector.shape_cast %544 : vector<8xf32> to vector<8x1xf32>
    %546 = vector.broadcast %545 : vector<8x1xf32> to vector<8x8xf32>
    %547 = arith.divf %543, %546 : vector<8x8xf32>
    %cst_235 = arith.constant dense<0.000000e+00> : vector<8x4xf32>
    %548 = tpu.matmul %547, %535, %cst_235 {dimension_numbers = #tpu.dot_dimension_numbers<[1], [0], [0], [1], [0, 0, 1, 1], [], []>} : vector<8x8xf32>, vector<8x4xf32>, vector<8x4xf32> -> vector<8x4xf32>
    %c8_236 = arith.constant 8 : index
    %c16_237 = arith.constant 16 : index
    %549 = vector.load %arg13[%c8_236, %c16_237] : memref<16x32xf32, #tpu.memory_space<vmem>>, vector<8x4xf32>
    tpu.vector_store %arg13[%c8_236, %c16_237], %548 {strides = array<i32>} : memref<16x32xf32, #tpu.memory_space<vmem>>, vector<8x4xf32>,
    %550 = vector.extract_strided_slice %462 {offsets = [0, 20], sizes = [8, 4], strides = [1, 1]} : vector<8x32xf32> to vector<8x4xf32>
    %551 = vector.extract_strided_slice %463 {offsets = [0, 20], sizes = [8, 4], strides = [1, 1]} : vector<8x32xf32> to vector<8x4xf32>
    %552 = vector.extract_strided_slice %464 {offsets = [0, 20], sizes = [8, 4], strides = [1, 1]} : vector<8x32xf32> to vector<8x4xf32>
    %cst_238 = arith.constant dense<0.000000e+00> : vector<8x8xf32>
    %553 = tpu.matmul %550, %551, %cst_238 {dimension_numbers = #tpu.dot_dimension_numbers<[1], [1], [0], [0], [0, 0, 1, 0], [], []>} : vector<8x4xf32>, vector<8x4xf32>, vector<8x8xf32> -> vector<8x8xf32>
    %cst_239 = arith.constant 5.000000e-01 : f32
    %554 = vector.broadcast %cst_239 : f32 to vector<8x8xf32>
    %555 = arith.mulf %553, %554 : vector<8x8xf32>
    %cst_240 = arith.constant dense<0xFF800000> : vector<8xf32>
    %556 = vector.multi_reduction <maximumf>, %555, %cst_240 [1] : vector<8x8xf32> to vector<8xf32>
    %557 = vector.shape_cast %556 : vector<8xf32> to vector<8x1xf32>
    %558 = vector.broadcast %557 : vector<8x1xf32> to vector<8x8xf32>
    %559 = arith.subf %555, %558 : vector<8x8xf32>
    %560 = math.exp %559 : vector<8x8xf32>
    %cst_241 = arith.constant dense<0.000000e+00> : vector<8xf32>
    %561 = vector.multi_reduction <add>, %560, %cst_241 [1] : vector<8x8xf32> to vector<8xf32>
    %562 = vector.shape_cast %561 : vector<8xf32> to vector<8x1xf32>
    %563 = vector.broadcast %562 : vector<8x1xf32> to vector<8x8xf32>
    %564 = arith.divf %560, %563 : vector<8x8xf32>
    %cst_242 = arith.constant dense<0.000000e+00> : vector<8x4xf32>
    %565 = tpu.matmul %564, %552, %cst_242 {dimension_numbers = #tpu.dot_dimension_numbers<[1], [0], [0], [1], [0, 0, 1, 1], [], []>} : vector<8x8xf32>, vector<8x4xf32>, vector<8x4xf32> -> vector<8x4xf32>
    %c8_243 = arith.constant 8 : index
    %c20_244 = arith.constant 20 : index
    %566 = vector.load %arg13[%c8_243, %c20_244] : memref<16x32xf32, #tpu.memory_space<vmem>>, vector<8x4xf32>
    tpu.vector_store %arg13[%c8_243, %c20_244], %565 {strides = array<i32>} : memref<16x32xf32, #tpu.memory_space<vmem>>, vector<8x4xf32>,
    %567 = vector.extract_strided_slice %462 {offsets = [0, 24], sizes = [8, 4], strides = [1, 1]} : vector<8x32xf32> to vector<8x4xf32>
    %568 = vector.extract_strided_slice %463 {offsets = [0, 24], sizes = [8, 4], strides = [1, 1]} : vector<8x32xf32> to vector<8x4xf32>
    %569 = vector.extract_strided_slice %464 {offsets = [0, 24], sizes = [8, 4], strides = [1, 1]} : vector<8x32xf32> to vector<8x4xf32>
    %cst_245 = arith.constant dense<0.000000e+00> : vector<8x8xf32>
    %570 = tpu.matmul %567, %568, %cst_245 {dimension_numbers = #tpu.dot_dimension_numbers<[1], [1], [0], [0], [0, 0, 1, 0], [], []>} : vector<8x4xf32>, vector<8x4xf32>, vector<8x8xf32> -> vector<8x8xf32>
    %cst_246 = arith.constant 5.000000e-01 : f32
    %571 = vector.broadcast %cst_246 : f32 to vector<8x8xf32>
    %572 = arith.mulf %570, %571 : vector<8x8xf32>
    %cst_247 = arith.constant dense<0xFF800000> : vector<8xf32>
    %573 = vector.multi_reduction <maximumf>, %572, %cst_247 [1] : vector<8x8xf32> to vector<8xf32>
    %574 = vector.shape_cast %573 : vector<8xf32> to vector<8x1xf32>
    %575 = vector.broadcast %574 : vector<8x1xf32> to vector<8x8xf32>
    %576 = arith.subf %572, %575 : vector<8x8xf32>
    %577 = math.exp %576 : vector<8x8xf32>
    %cst_248 = arith.constant dense<0.000000e+00> : vector<8xf32>
    %578 = vector.multi_reduction <add>, %577, %cst_248 [1] : vector<8x8xf32> to vector<8xf32>
    %579 = vector.shape_cast %578 : vector<8xf32> to vector<8x1xf32>
    %580 = vector.broadcast %579 : vector<8x1xf32> to vector<8x8xf32>
    %581 = arith.divf %577, %580 : vector<8x8xf32>
    %cst_249 = arith.constant dense<0.000000e+00> : vector<8x4xf32>
    %582 = tpu.matmul %581, %569, %cst_249 {dimension_numbers = #tpu.dot_dimension_numbers<[1], [0], [0], [1], [0, 0, 1, 1], [], []>} : vector<8x8xf32>, vector<8x4xf32>, vector<8x4xf32> -> vector<8x4xf32>
    %c8_250 = arith.constant 8 : index
    %c24_251 = arith.constant 24 : index
    %583 = vector.load %arg13[%c8_250, %c24_251] : memref<16x32xf32, #tpu.memory_space<vmem>>, vector<8x4xf32>
    tpu.vector_store %arg13[%c8_250, %c24_251], %582 {strides = array<i32>} : memref<16x32xf32, #tpu.memory_space<vmem>>, vector<8x4xf32>,
    %584 = vector.extract_strided_slice %462 {offsets = [0, 28], sizes = [8, 4], strides = [1, 1]} : vector<8x32xf32> to vector<8x4xf32>
    %585 = vector.extract_strided_slice %463 {offsets = [0, 28], sizes = [8, 4], strides = [1, 1]} : vector<8x32xf32> to vector<8x4xf32>
    %586 = vector.extract_strided_slice %464 {offsets = [0, 28], sizes = [8, 4], strides = [1, 1]} : vector<8x32xf32> to vector<8x4xf32>
    %cst_252 = arith.constant dense<0.000000e+00> : vector<8x8xf32>
    %587 = tpu.matmul %584, %585, %cst_252 {dimension_numbers = #tpu.dot_dimension_numbers<[1], [1], [0], [0], [0, 0, 1, 0], [], []>} : vector<8x4xf32>, vector<8x4xf32>, vector<8x8xf32> -> vector<8x8xf32>
    %cst_253 = arith.constant 5.000000e-01 : f32
    %588 = vector.broadcast %cst_253 : f32 to vector<8x8xf32>
    %589 = arith.mulf %587, %588 : vector<8x8xf32>
    %cst_254 = arith.constant dense<0xFF800000> : vector<8xf32>
    %590 = vector.multi_reduction <maximumf>, %589, %cst_254 [1] : vector<8x8xf32> to vector<8xf32>
    %591 = vector.shape_cast %590 : vector<8xf32> to vector<8x1xf32>
    %592 = vector.broadcast %591 : vector<8x1xf32> to vector<8x8xf32>
    %593 = arith.subf %589, %592 : vector<8x8xf32>
    %594 = math.exp %593 : vector<8x8xf32>
    %cst_255 = arith.constant dense<0.000000e+00> : vector<8xf32>
    %595 = vector.multi_reduction <add>, %594, %cst_255 [1] : vector<8x8xf32> to vector<8xf32>
    %596 = vector.shape_cast %595 : vector<8xf32> to vector<8x1xf32>
    %597 = vector.broadcast %596 : vector<8x1xf32> to vector<8x8xf32>
    %598 = arith.divf %594, %597 : vector<8x8xf32>
    %cst_256 = arith.constant dense<0.000000e+00> : vector<8x4xf32>
    %599 = tpu.matmul %598, %586, %cst_256 {dimension_numbers = #tpu.dot_dimension_numbers<[1], [0], [0], [1], [0, 0, 1, 1], [], []>} : vector<8x8xf32>, vector<8x4xf32>, vector<8x4xf32> -> vector<8x4xf32>
    %c8_257 = arith.constant 8 : index
    %c28_258 = arith.constant 28 : index
    %600 = vector.load %arg13[%c8_257, %c28_258] : memref<16x32xf32, #tpu.memory_space<vmem>>, vector<8x4xf32>
    tpu.vector_store %arg13[%c8_257, %c28_258], %599 {strides = array<i32>} : memref<16x32xf32, #tpu.memory_space<vmem>>, vector<8x4xf32>,
    %c0_259 = arith.constant 0 : index
    %c0_260 = arith.constant 0 : index
    %601 = vector.load %arg12[%c0_259, %c0_260] : memref<16x32xf32, #tpu.memory_space<vmem>>, vector<16x32xf32>
    %c3 = arith.constant 3 : index
    %c0_261 = arith.constant 0 : index
    %c0_262 = arith.constant 0 : index
    %602 = vector.load %arg4[%c3, %c0_261, %c0_262] : memref<8x32x32xf32, #tpu.memory_space<vmem>>, vector<1x32x32xf32>
    %603 = vector.shape_cast %602 : vector<1x32x32xf32> to vector<32x32xf32>
    %cst_263 = arith.constant dense<0.000000e+00> : vector<16x32xf32>
    %604 = tpu.matmul %601, %603, %cst_263 {dimension_numbers = #tpu.dot_dimension_numbers<[1], [0], [0], [1], [0, 0, 1, 1], [], []>} : vector<16x32xf32>, vector<32x32xf32>, vector<16x32xf32> -> vector<16x32xf32>
    %c3_264 = arith.constant 3 : index
    %c0_265 = arith.constant 0 : index
    %c0_266 = arith.constant 0 : index
    %605 = vector.load %arg5[%c3_264, %c0_265, %c0_266] : memref<8x1x32xf32, #tpu.memory_space<vmem>>, vector<1x1x32xf32>
    %606 = vector.shape_cast %605 : vector<1x1x32xf32> to vector<1x32xf32>
    %607 = vector.broadcast %606 : vector<1x32xf32> to vector<16x32xf32>
    %608 = arith.addf %604, %607 : vector<16x32xf32>
    %c0_267 = arith.constant 0 : index
    %c0_268 = arith.constant 0 : index
    %609 = vector.load %arg13[%c0_267, %c0_268] : memref<16x32xf32, #tpu.memory_space<vmem>>, vector<16x32xf32>
    %c7 = arith.constant 7 : index
    %c0_269 = arith.constant 0 : index
    %c0_270 = arith.constant 0 : index
    %610 = vector.load %arg4[%c7, %c0_269, %c0_270] : memref<8x32x32xf32, #tpu.memory_space<vmem>>, vector<1x32x32xf32>
    %611 = vector.shape_cast %610 : vector<1x32x32xf32> to vector<32x32xf32>
    %cst_271 = arith.constant dense<0.000000e+00> : vector<16x32xf32>
    %612 = tpu.matmul %609, %611, %cst_271 {dimension_numbers = #tpu.dot_dimension_numbers<[1], [0], [0], [1], [0, 0, 1, 1], [], []>} : vector<16x32xf32>, vector<32x32xf32>, vector<16x32xf32> -> vector<16x32xf32>
    %c7_272 = arith.constant 7 : index
    %c0_273 = arith.constant 0 : index
    %c0_274 = arith.constant 0 : index
    %613 = vector.load %arg5[%c7_272, %c0_273, %c0_274] : memref<8x1x32xf32, #tpu.memory_space<vmem>>, vector<1x1x32xf32>
    %614 = vector.shape_cast %613 : vector<1x1x32xf32> to vector<1x32xf32>
    %615 = vector.broadcast %614 : vector<1x32xf32> to vector<16x32xf32>
    %616 = arith.addf %612, %615 : vector<16x32xf32>
    %617 = arith.subf %0, %1 : vector<16x32xf32>
    %c0_275 = arith.constant 0 : index
    %c0_276 = arith.constant 0 : index
    %618 = vector.load %arg10[%c0_275, %c0_276] : memref<2x16xf32, #tpu.memory_space<vmem>>, vector<2x16xf32>
    %cst_277 = arith.constant dense<0.000000e+00> : vector<2x32xf32>
    %619 = tpu.matmul %618, %616, %cst_277 {dimension_numbers = #tpu.dot_dimension_numbers<[1], [0], [0], [1], [0, 0, 1, 1], [], []>} : vector<2x16xf32>, vector<16x32xf32>, vector<2x32xf32> -> vector<2x32xf32>
    %cst_278 = arith.constant dense<0.000000e+00> : vector<2x32xf32>
    %620 = tpu.matmul %618, %608, %cst_278 {dimension_numbers = #tpu.dot_dimension_numbers<[1], [0], [0], [1], [0, 0, 1, 1], [], []>} : vector<2x16xf32>, vector<16x32xf32>, vector<2x32xf32> -> vector<2x32xf32>
    %cst_279 = arith.constant dense<0.000000e+00> : vector<2x32xf32>
    %621 = tpu.matmul %618, %617, %cst_279 {dimension_numbers = #tpu.dot_dimension_numbers<[1], [0], [0], [1], [0, 0, 1, 1], [], []>} : vector<2x16xf32>, vector<16x32xf32>, vector<2x32xf32> -> vector<2x32xf32>
    %622 = arith.mulf %616, %608 : vector<16x32xf32>
    %cst_280 = arith.constant dense<0.000000e+00> : vector<2x32xf32>
    %623 = tpu.matmul %618, %622, %cst_280 {dimension_numbers = #tpu.dot_dimension_numbers<[1], [0], [0], [1], [0, 0, 1, 1], [], []>} : vector<2x16xf32>, vector<16x32xf32>, vector<2x32xf32> -> vector<2x32xf32>
    %cst_281 = arith.constant dense<0.000000e+00> : vector<2xf32>
    %624 = vector.multi_reduction <add>, %623, %cst_281 [1] : vector<2x32xf32> to vector<2xf32>
    %625 = vector.shape_cast %624 : vector<2xf32> to vector<2x1xf32>
    %cst_282 = arith.constant 8.000000e+00 : f32
    %626 = vector.broadcast %cst_282 : f32 to vector<2x1xf32>
    %627 = arith.mulf %625, %626 : vector<2x1xf32>
    %c0_283 = arith.constant 0 : index
    %c0_284 = arith.constant 0 : index
    %628 = vector.load %arg6[%c0_283, %c0_284] : memref<96x32xf32, #tpu.memory_space<vmem>>, vector<96x32xf32>
    %629 = vector.extract_strided_slice %628 {offsets = [0, 0], sizes = [32, 32], strides = [1, 1]} : vector<96x32xf32> to vector<32x32xf32>
    %cst_285 = arith.constant dense<0.000000e+00> : vector<2x32xf32>
    %630 = tpu.matmul %619, %629, %cst_285 {dimension_numbers = #tpu.dot_dimension_numbers<[1], [0], [0], [1], [0, 0, 1, 1], [], []>} : vector<2x32xf32>, vector<32x32xf32>, vector<2x32xf32> -> vector<2x32xf32>
    %631 = vector.extract_strided_slice %628 {offsets = [32, 0], sizes = [32, 32], strides = [1, 1]} : vector<96x32xf32> to vector<32x32xf32>
    %cst_286 = arith.constant dense<0.000000e+00> : vector<2x32xf32>
    %632 = tpu.matmul %620, %631, %cst_286 {dimension_numbers = #tpu.dot_dimension_numbers<[1], [0], [0], [1], [0, 0, 1, 1], [], []>} : vector<2x32xf32>, vector<32x32xf32>, vector<2x32xf32> -> vector<2x32xf32>
    %633 = arith.addf %630, %632 : vector<2x32xf32>
    %634 = vector.extract_strided_slice %628 {offsets = [64, 0], sizes = [32, 32], strides = [1, 1]} : vector<96x32xf32> to vector<32x32xf32>
    %cst_287 = arith.constant dense<0.000000e+00> : vector<2x32xf32>
    %635 = tpu.matmul %621, %634, %cst_287 {dimension_numbers = #tpu.dot_dimension_numbers<[1], [0], [0], [1], [0, 0, 1, 1], [], []>} : vector<2x32xf32>, vector<32x32xf32>, vector<2x32xf32> -> vector<2x32xf32>
    %636 = arith.addf %633, %635 : vector<2x32xf32>
    %c0_288 = arith.constant 0 : index
    %c0_289 = arith.constant 0 : index
    %637 = vector.load %arg7[%c0_288, %c0_289] : memref<1x32xf32, #tpu.memory_space<vmem>>, vector<1x32xf32>
    %638 = vector.broadcast %637 : vector<1x32xf32> to vector<2x32xf32>
    %639 = arith.addf %636, %638 : vector<2x32xf32>
    %640 = math.tanh %639 : vector<2x32xf32>
    %c0_290 = arith.constant 0 : index
    %c0_291 = arith.constant 0 : index
    %641 = vector.load %arg8[%c0_290, %c0_291] : memref<1x32xf32, #tpu.memory_space<vmem>>, vector<1x32xf32>
    %642 = vector.broadcast %641 : vector<1x32xf32> to vector<2x32xf32>
    %643 = arith.mulf %640, %642 : vector<2x32xf32>
    %cst_292 = arith.constant dense<0.000000e+00> : vector<2xf32>
    %644 = vector.multi_reduction <add>, %643, %cst_292 [1] : vector<2x32xf32> to vector<2xf32>
    %645 = vector.shape_cast %644 : vector<2xf32> to vector<2x1xf32>
    %c0_293 = arith.constant 0 : index
    %c0_294 = arith.constant 0 : index
    %646 = vector.load %arg9[%c0_293, %c0_294] : memref<1x1xf32, #tpu.memory_space<vmem>>, vector<1x1xf32>
    %647 = vector.broadcast %646 : vector<1x1xf32> to vector<2x1xf32>
    %648 = arith.addf %645, %647 : vector<2x1xf32>
    %649 = arith.addf %648, %627 : vector<2x1xf32>
    %c0_295 = arith.constant 0 : index
    %c0_296 = arith.constant 0 : index
    %650 = vector.load %arg11[%c0_295, %c0_296] : memref<2x1xf32, #tpu.memory_space<vmem>>, vector<2x1xf32>
    tpu.vector_store %arg11[%c0_295, %c0_296], %649 {strides = array<i32>} : memref<2x1xf32, #tpu.memory_space<vmem>>, vector<2x1xf32>,
    return
  }
  func.func @transform_0(%arg0: i32) -> (i32, i32) {
    %c0_i32 = arith.constant 0 : i32
    %c0_i32_0 = arith.constant 0 : i32
    return %arg0, %c0_i32 : i32, i32
  }
  func.func @transform_1(%arg0: i32) -> (i32, i32) {
    %c0_i32 = arith.constant 0 : i32
    %c0_i32_0 = arith.constant 0 : i32
    return %arg0, %c0_i32 : i32, i32
  }
  func.func @transform_2(%arg0: i32) -> (i32, i32) {
    %c0_i32 = arith.constant 0 : i32
    %c0_i32_0 = arith.constant 0 : i32
    return %arg0, %c0_i32 : i32, i32
  }
  func.func @transform_3(%arg0: i32) -> (i32, i32, i32) {
    %c0_i32 = arith.constant 0 : i32
    %c0_i32_0 = arith.constant 0 : i32
    %c0_i32_1 = arith.constant 0 : i32
    %c0_i32_2 = arith.constant 0 : i32
    return %c0_i32, %c0_i32_0, %c0_i32_1 : i32, i32, i32
  }
  func.func @transform_4(%arg0: i32) -> (i32, i32, i32) {
    %c0_i32 = arith.constant 0 : i32
    %c0_i32_0 = arith.constant 0 : i32
    %c0_i32_1 = arith.constant 0 : i32
    %c0_i32_2 = arith.constant 0 : i32
    return %c0_i32, %c0_i32_0, %c0_i32_1 : i32, i32, i32
  }
  func.func @transform_5(%arg0: i32) -> (i32, i32) {
    %c0_i32 = arith.constant 0 : i32
    %c0_i32_0 = arith.constant 0 : i32
    %c0_i32_1 = arith.constant 0 : i32
    return %c0_i32, %c0_i32_0 : i32, i32
  }
  func.func @transform_6(%arg0: i32) -> (i32, i32) {
    %c0_i32 = arith.constant 0 : i32
    %c0_i32_0 = arith.constant 0 : i32
    %c0_i32_1 = arith.constant 0 : i32
    return %c0_i32, %c0_i32_0 : i32, i32
  }
  func.func @transform_7(%arg0: i32) -> (i32, i32) {
    %c0_i32 = arith.constant 0 : i32
    %c0_i32_0 = arith.constant 0 : i32
    %c0_i32_1 = arith.constant 0 : i32
    return %c0_i32, %c0_i32_0 : i32, i32
  }
  func.func @transform_8(%arg0: i32) -> (i32, i32) {
    %c0_i32 = arith.constant 0 : i32
    %c0_i32_0 = arith.constant 0 : i32
    %c0_i32_1 = arith.constant 0 : i32
    return %c0_i32, %c0_i32_0 : i32, i32
  }
  func.func @transform_9(%arg0: i32) -> (i32, i32) {
    %c0_i32 = arith.constant 0 : i32
    %c0_i32_0 = arith.constant 0 : i32
    %c0_i32_1 = arith.constant 0 : i32
    return %c0_i32, %c0_i32_0 : i32, i32
  }
  func.func @transform_10(%arg0: i32) -> (i32, i32) {
    %c0_i32 = arith.constant 0 : i32
    %c0_i32_0 = arith.constant 0 : i32
    return %arg0, %c0_i32 : i32, i32
  }
}

</mosaic_0001>

<bundles_post_ra>
// kernel: tpu_custom_call.1
= control target key start
LH: loop header
LB: loop body
LE: loop exit
PB: predicated region body
PF: predicated region fallthrough
CT: control target
= control target key end

     0   :  { %s9093_s0 = inlined_call_operand.vmem [shape: f32[16,32], index: 0, kind: input, shape index: {}]   ;;  %s9094_s1 = inlined_call_operand.vmem [shape: f32[16,32], index: 1, kind: input, shape index: {}]   ;;  %s9095_s2 = inlined_call_operand.vmem [shape: f32[16,32], index: 2, kind: input, shape index: {}]   ;;  %s9096_s3 = inlined_call_operand.hbm [shape: f32[8,32,32], index: 3, kind: input, shape index: {}]   ;;  %s9097_s4 = inlined_call_operand.vmem [shape: f32[8,1,32], index: 4, kind: input, shape index: {}]   ;;  %s9098_s5 = inlined_call_operand.vmem [shape: f32[96,32], index: 5, kind: input, shape index: {}]   ;;  %s9099_s6 = inlined_call_operand.vmem [shape: f32[1,32], index: 6, kind: input, shape index: {}]   ;;  %s9100_s7 = inlined_call_operand.vmem [shape: f32[1,32], index: 7, kind: input, shape index: {}]   ;;  %s9101_s8 = inlined_call_operand.<no memory space> [shape: f32[1,1], index: 8, kind: input, shape index: {}]   ;;  %s9102_s9 = inlined_call_operand.vmem [shape: f32[2,16], index: 9, kind: input, shape index: {}]   ;;  %s9103_s10 = inlined_call_operand.vmem [shape: f32[2,1], index: 10, kind: output, shape index: {}]  }
   0x1   :  { %v15_v0 = vstv %s9101_s8 }
   0x2   :  { %16 = vst [vmem:[#allocation4] sm:$0x1] %v15_v0 }
   0x3   :  { %17 = vsyncpa [#allocation6], 0  ;;  %s7881_s15 = smov [#allocation5]   ;;  %s7857_s19 = scalar_lea.hbm %s9096_s3, 4096 }
   0x4   :  { %s29_s16 = sshll.u32 %s7881_s15, 4  ;;  %p7858_p0 = scmp.ne.s32.totalorder %s9096_s3, %s7857_s19  ;;  %s30_s16 = int_to_ptr.vmem [resolvable:$true] %s29_s16 }
   0x5   :  { %p7861_p1 = scmp.lt.u32.totalorder %s7857_s19, %s9096_s3 }
   0x7   :  { %p7863_p2 = pnand %p7861_p1, %p7858_p0 }
   0x9   :  { %7866 = shalt.err (!%p7863_p2)
}
   0xa   :  { %s7867_s8 = scalar_lea.vmem %s30_s16, 4096  ;;  %p7872_p4 = scmp.lt.s32.totalorder %s30_s16, %s30_s16 }
   0xb   :  { %p7868_p3 = scmp.ne.s32.totalorder %s30_s16, %s7867_s8  ;;  %p7873_p5 = scmp.lt.s32.totalorder %s7867_s8, %s7867_s8 }
   0xd   :  { %p7874_p6 = por %p7873_p5, %p7872_p4 }
   0xf   :  { %p7875_p7 = pnand %p7874_p6, %p7868_p3 }
  0x11   :  { %7878 = shalt.err (!%p7875_p7)
}
  0x12   :  { %s7882_s24 = smov 128   ;;  %s7883_s25 = smov 8  }
  0x13   :  { %35 = dma.hbm_to_vmem [thread:$0]  %s9096_s3, 4096, %s30_s16, [#allocation6], %s7882_s24, %s7882_s24, %s7883_s25  }
  0x14   :  { %7879 = dma.done.wait [#allocation6], 4096  }
  0x15   :  { %7880 = vsyncadd [#allocation6], 4294963200  ;;  %v151_v1 = vld [vmem:[#allocation5 + $0x20] sm:$0xff]  ;;  %v152_v2 = vld [vmem:[#allocation5 + $0x28] sm:$0xff]  ;;  %vm68_vm0 = vcmask 261120   ;;  %v9104_v45 = vmov 0.0  }
  0x16   :  { %v57_v3 = vld [vmem:[#allocation5] sm:$0xff]  ;;  %v7622_v4 = vpack.c.bf16 %v152_v2, %v151_v1  ;;  %v58_v5 = vld [vmem:[#allocation5 + $0x8] sm:$0xff]  ;;  %v153_v6 = vld [vmem:[#allocation5 + $0x30] sm:$0xff]  ;;  %vm7885_vm1 = vmmov 0   ;;  %vm602_vm2 = vcmask 31744   ;;  %s7886_s20 = smov 120  }
  0x17   :  { %v154_v7 = vld [vmem:[#allocation5 + $0x38] sm:$0xff]  ;;  %v7614_v8 = vpack.c.bf16 %v58_v5, %v57_v3  ;;  %v59_v10 = vld [vmem:[#allocation5 + $0x10] sm:$0xff]  ;;  %v7981_v14 = vld [vmem:[%s9094_s1 + $0x8] sm:$0xff]  ;;  %s7887_s21 = smov 124   ;;  %s7888_s8 = smov 116   ;;  %vm680_vm3 = vcmask 64512  }
  0x18   :  { %v7626_v9 = vpack.c.bf16 %v154_v7, %v153_v6  ;;  %v60_v11 = vld [vmem:[#allocation5 + $0x18] sm:$0xff]  ;;  %7623 = vmatprep.subr.bf16.mxu1 %v7622_v4  ;;  %9112 = vst [vmem:[#allocation9_spill] sm:$0xff] %v7981_v14  ;;  %v7991_v16 = vld [vmem:[%s9093_s0 + $0x8] sm:$0xff]  ;;  %v247_v24 = vld [vmem:[#allocation5 + $0x50] sm:$0xff]  ;;  %s7889_s24 = smov 112   ;;  %s7890_s28 = smov 108  }
  0x19   :  { %v7974_v12 = vld [vmem:[%s9094_s1] sm:$0xff]  ;;  %v7618_v13 = vpack.c.bf16 %v60_v11, %v59_v10  ;;  %9114 = vst [vmem:[#allocation11_spill] sm:$0xff] %v7991_v16  ;;  %7625 = vmatpush3.bf16.msra.mxu1 %v7622_v4  ;;  %7615 = vmatprep.subr.bf16.mxu0 %v7614_v8  ;;  %v246_v20 = vld [vmem:[#allocation5 + $0x48] sm:$0xff]  ;;  %v335_v27 = vld [vmem:[#allocation5 + $0x90] sm:$0xff]  ;;  %s7891_s29 = smov 104   ;;  %s7892_s13 = smov 100  }
  0x1a   :  { %9111 = vst [vmem:[#allocation8_spill] sm:$0xff] %v7974_v12  ;;  %7164 = vmatprep.mubr.msk.f32.mxu1 %vm68_vm0, %v7974_v12  ;;  %v7986_v15 = vld [vmem:[%s9093_s0] sm:$0xff]  ;;  %7617 = vmatpush3.bf16.msra.mxu0 %v7614_v8  ;;  %v334_v22 = vld [vmem:[#allocation5 + $0x88] sm:$0xff]  ;;  %v423_v37 = vld [vmem:[#allocation5 + $0xb0] sm:$0xff]  ;;  %s7893_s14 = smov 4   ;;  %s7894_s0 = smov 12  }
  0x1b   :  { %9113 = vst [vmem:[#allocation10_spill] sm:$0xff] %v7986_v15  ;;  %v245_v19 = vld [vmem:[#allocation5 + $0x40] sm:$0xff]  ;;  %7627 = vmatprep.subr.bf16.mxu1 %v7626_v9  ;;  %7619 = vmatprep.subr.bf16.mxu0 %v7618_v13  ;;  %v248_v26 = vld [vmem:[#allocation5 + $0x58] sm:$0xff]  ;;  %v516_v32 = vld [vmem:[#allocation5 + $0xc8] sm:$0xff]  ;;  %s7895_s1 = smov 16   ;;  %s7896_s15 = smov 20  }
  0x1c   :  { %v333_v21 = vld [vmem:[#allocation5 + $0x80] sm:$0xff]  ;;  %7153 = vmatprep.mubr.msk.f32.mxu0 %vm68_vm0, %v7986_v15  ;;  %v7630_v23 = vpack.c.bf16 %v246_v20, %v245_v19  ;;  %v336_v28 = vld [vmem:[#allocation5 + $0x98] sm:$0xff]  ;;  %v7634_v29 = vpack.c.bf16 %v248_v26, %v247_v24  ;;  %v422_v34 = vld [vmem:[#allocation5 + $0xa8] sm:$0xff]  ;;  %s7897_s16 = smov 24   ;;  %s7898_s17 = smov 28   ;;  %vm937_vm4 = vcmask 64544  }
  0x1d   :  { %v7638_v25 = vpack.c.bf16 %v334_v22, %v333_v21  ;;  %7629 = vmatpush3.bf16.msra.mxu1 %v7626_v9  ;;  %v7642_v30 = vpack.c.bf16 %v336_v28, %v335_v27  ;;  %v515_v31 = vld [vmem:[#allocation5 + $0xc0] sm:$0xff]  ;;  %v424_v38 = vld [vmem:[#allocation5 + $0xb8] sm:$0xff]  ;;  %v517_v39 = vld [vmem:[#allocation5 + $0xd0] sm:$0xff]  ;;  %vm1109_vm5 = vcmask 97344   ;;  %vm1281_vm6 = vcmask 130144  }
  0x1e   :  { %7621 = vmatpush3.bf16.msra.mxu0 %v7618_v13  ;;  %v421_v33 = vld [vmem:[#allocation5 + $0xa0] sm:$0xff]  ;;  %v7654_v35 = vpack.c.bf16 %v516_v32, %v515_v31  ;;  %v518_v40 = vld [vmem:[#allocation5 + $0xd8] sm:$0xff]  ;;  %v7650_v41 = vpack.c.bf16 %v424_v38, %v423_v37  ;;  %vm1453_vm7 = vcmask 162944   ;;  %vm1625_vm8 = vcmask 195744  }
  0x1f   :  { %7639 = vmatprep.subr.bf16.mxu1 %v7638_v25  ;;  %7631 = vmatprep.subr.bf16.mxu0 %v7630_v23  ;;  %v7646_v36 = vpack.c.bf16 %v422_v34, %v421_v33  ;;  %v55_v42 = vld [vmem:[%s9095_s2] sm:$0xff]  ;;  %v7658_v43 = vpack.c.bf16 %v518_v40, %v517_v39  ;;  %v56_v44 = vld [vmem:[%s9095_s2 + $0x8] sm:$0xff]  ;;  %vm1797_vm9 = vcmask 228544   ;;  %vm1969_vm10 = vcmask 261344  }
  0x20   :  { %7165 = vmatmul.mubr.msk.f32.vlgmr.msra.gmra.mrb[0].mxu1 %vm68_vm0, %v7981_v14  ;;  %v8030_v46 = vld [vmem:[%s9097_s4 + $0x1] ss:$0 sm:$0xff]  ;;  %v8039_v50 = vld [vmem:[%s9097_s4] ss:$0 sm:$0xff]  ;;  %v6813_v54 = vld [vmem:[%s9097_s4 + $0x2] ss:$0 sm:$0xff] }
  0x21   :  { %7154 = vmatmul.mubr.msk.f32.vlgmr.msra.gmra.mrb[0].mxu0 %vm68_vm0, %v7991_v16  ;;  %7641 = vmatpush3.bf16.msra.mxu1 %v7638_v25  ;;  %v8069_v62 = vld [vmem:[%s9097_s4 + $0x6] ss:$0 sm:$0xff]  ;;  %v6817_v3 = vld [vmem:[%s9097_s4 + $0x4] ss:$0 sm:$0xff]  ;;  %v6821_v4 = vld [vmem:[%s9097_s4 + $0x5] ss:$0 sm:$0xff] }
  0x22   :  { %7633 = vmatpush3.bf16.msra.mxu0 %v7630_v23  ;;  %7175 = vmatprep.mubr.msk.f32.mxu0 %vm68_vm0, %v7974_v12  ;;  %vm6246_vm11 = vcmask 130048   ;;  %vm6532_vm12 = vcmask 254976   ;;  %vm6798_vm13 = vcmask 1024  }
  0x23   :  { %7635 = vmatprep.subr.bf16.mxu0 %v7634_v29  ;;  %7643 = vmatprep.subr.bf16.mxu1 %v7642_v30 }
  0x24   :  { %7186 = vmatprep.mubr.msk.f32.mxu1 %vm68_vm0, %v7986_v15 }
  0x25   :  { %7645 = vmatpush3.bf16.msra.mxu1 %v7642_v30 }
  0x26   :  { %7637 = vmatpush3.bf16.msra.mxu0 %v7634_v29  ;;  %7655 = vmatprep.subr.bf16.mxu1 %v7654_v35 }
  0x27   :  { %7647 = vmatprep.subr.bf16.mxu0 %v7646_v36 }
  0x28   :  { %7187 = vmatmul.mubr.msk.f32.vlgmr.msra.gmra.mrb[2].mxu1 %vm68_vm0, %v7991_v16 }
  0x29   :  { %7176 = vmatmul.mubr.msk.f32.vlgmr.msra.gmra.mrb[2].mxu0 %vm68_vm0, %v7981_v14  ;;  %7657 = vmatpush3.bf16.msra.mxu1 %v7654_v35 }
  0x2a   :  { %7649 = vmatpush3.bf16.msra.mxu0 %v7646_v36  ;;  %7197 = vmatprep.mubr.msk.f32.mxu0 %vm68_vm0, %v55_v42 }
  0x2b   :  { %7651 = vmatprep.subr.bf16.mxu0 %v7650_v41  ;;  %7659 = vmatprep.subr.bf16.mxu1 %v7658_v43 }
  0x2c   :  { %7208 = vmatprep.mubr.msk.f32.mxu1 %vm68_vm0, %v55_v42 }
  0x2d   :  { %7661 = vmatpush3.bf16.msra.mxu1 %v7658_v43 }
  0x2e   :  { %7653 = vmatpush3.bf16.msra.mxu0 %v7650_v41  ;;  %7211 = vmatprep.subr.mxu1 %v9104_v45 }
  0x2f   :  { %7221 = vmatprep.subr.mxu0 %v9104_v45 }
  0x30   :  { %7209 = vmatmul.mubr.msk.f32.vlgmr.msra.gmra.mrb[4].mxu1 %vm68_vm0, %v56_v44 }
  0x31   :  { %7198 = vmatmul.mubr.msk.f32.vlgmr.msra.gmra.mrb[4].mxu0 %vm68_vm0, %v56_v44  ;;  %7213 = vmatprep.mubr.msk.f32.mxu1 %vm7885_vm1, %v9104_v45 }
  0x32   :  { %7223 = vmatprep.mubr.msk.f32.mxu0 %vm7885_vm1, %v9104_v45 }
  0xf3   :  { %v8032_v47 = vpop.f32.mrb[0].mxu1 }
  0xf4   :  { %v235_v48 = vpop.f32.mrb[1].mxu1  ;;  %v8034_v49 = vpop.f32.mrb[0].mxu0  ;;  %v8127_v8 = vadd.f32 %v8032_v47, %v8030_v46 }
  0xf5   :  { %v236_v51 = vadd.f32 %v8030_v46, %v235_v48  ;;  %v141_v52 = vpop.f32.mrb[1].mxu0  ;;  %v8123_v7 = vadd.f32 %v8034_v49, %v8039_v50 }
  0xf6   :  { %v142_v53 = vadd.f32 %v8039_v50, %v141_v52 }
  0xf7   :  { %941 = vrot.lane.b32.xlu1 %v236_v51, %s7886_s20  ;;  %768 = vrot.lane.b32.xlu0 %v236_v51, %s7887_s21 }
  0xf8   :  { %7212 = vmatpush3.xpose.msk.msra.mxu1 %vm602_vm2, %v236_v51 }
  0xf9   :  { %7216 = vmatprep.subr.mxu1 %v9104_v45 }
  0xfb   :  { %7214 = vmatmul.mubr.msk.f32.vlgmr.msra.gmra.mrb[6].mxu1 %vm602_vm2, %v142_v53  ;;  %939 = vrot.lane.b32.xlu1 %v142_v53, %s7886_s20  ;;  %v8052_v55 = vpop.f32.mrb[2].mxu1 }
  0xfc   :  { %766 = vrot.lane.b32.xlu0 %v142_v53, %s7887_s21  ;;  %v7177_v56 = vpop.f32.mrb[2].mxu0  ;;  %v411_v57 = vpop.f32.mrb[3].mxu1  ;;  %7218 = vmatprep.mubr.msk.f32.mxu1 %vm7885_vm1, %v9104_v45  ;;  %v8158_v9 = vadd.f32 %v8052_v55, %v6817_v3 }
  0xfd   :  { %v8057_v58 = vadd.f32 %v7177_v56, %v6813_v54  ;;  %v323_v59 = vpop.f32.mrb[3].mxu0  ;;  %v8088_v5 = vadd.f32 %v6817_v3, %v411_v57 }
  0xfe   :  { %v8059_v60 = vadd.f32 %v6813_v54, %v323_v59 }
  0xff   :  { %9115 = vst [vmem:[#allocation12_spill] sm:$0xff] %v8057_v58  ;;  %1111 = vrot.lane.b32.xlu1 %v142_v53, %s7888_s8 }
 0x100   :  { %1113 = vrot.lane.b32.xlu0 %v236_v51, %s7888_s8  ;;  %7217 = vmatpush3.msra.mxu1 %v8059_v60 }
 0x101   :  { %7226 = vmatprep.subr.mxu1 %v9104_v45 }
 0x103   :  { %1283 = vrot.lane.b32.xlu1 %v142_v53, %s7889_s24  ;;  %v7210_v61 = vpop.f32.mrb[4].mxu1 }
 0x104   :  { %1285 = vrot.lane.b32.xlu0 %v236_v51, %s7889_s24  ;;  %v7199_v63 = vpop.f32.mrb[4].mxu0  ;;  %v8073_v0 = vadd.f32 %v7210_v61, %v8069_v62  ;;  %v8075_v1 = vpop.f32.mrb[5].mxu1 }
 0x105   :  { %v505_v2 = vpop.f32.mrb[5].mxu0  ;;  %v8160_v10 = vadd.f32 %v7199_v63, %v6821_v4  ;;  %v8223_v25 = vadd.f32 %v8069_v62, %v8075_v1 }
 0x106   :  { %v8091_v6 = vadd.f32 %v6821_v4, %v505_v2 }
 0x107   :  { %1455 = vrot.lane.b32.xlu1 %v142_v53, %s7890_s28 }
 0x108   :  { %1457 = vrot.lane.b32.xlu0 %v236_v51, %s7890_s28 }
 0x10b   :  { %1627 = vrot.lane.b32.xlu1 %v142_v53, %s7891_s29 }
 0x10c   :  { %1629 = vrot.lane.b32.xlu0 %v236_v51, %s7891_s29 }
 0x10f   :  { %1799 = vrot.lane.b32.xlu1 %v142_v53, %s7892_s13 }
 0x110   :  { %1801 = vrot.lane.b32.xlu0 %v236_v51, %s7892_s13 }
 0x113   :  { %2133 = vrot.lane.b32.xlu1 %v8088_v5, %s7887_s21 }
 0x114   :  { %2135 = vrot.lane.b32.xlu0 %v8091_v6, %s7887_s21 }
 0x117   :  { %2305 = vrot.lane.b32.xlu1 %v8088_v5, %s7886_s20 }
 0x118   :  { %2307 = vrot.lane.b32.xlu0 %v8091_v6, %s7886_s20 }
 0x11b   :  { %2476 = vrot.lane.b32.xlu1 %v8088_v5, %s7888_s8 }
 0x11c   :  { %2478 = vrot.lane.b32.xlu0 %v8091_v6, %s7888_s8 }
 0x11f   :  { %2647 = vrot.lane.b32.xlu1 %v8088_v5, %s7889_s24 }
 0x120   :  { %2649 = vrot.lane.b32.xlu0 %v8091_v6, %s7889_s24 }
 0x123   :  { %2818 = vrot.lane.b32.xlu1 %v8088_v5, %s7890_s28 }
 0x124   :  { %2820 = vrot.lane.b32.xlu0 %v8091_v6, %s7890_s28 }
 0x127   :  { %2989 = vrot.lane.b32.xlu1 %v8088_v5, %s7891_s29 }
 0x128   :  { %2991 = vrot.lane.b32.xlu0 %v8091_v6, %s7891_s29 }
 0x12b   :  { %3160 = vrot.lane.b32.xlu1 %v8088_v5, %s7892_s13 }
 0x12c   :  { %3162 = vrot.lane.b32.xlu0 %v8091_v6, %s7892_s13 }
 0x12f   :  { %3493 = vrot.lane.b32.xlu1 %v8123_v7, %s7887_s21 }
 0x130   :  { %3495 = vrot.lane.b32.xlu0 %v8127_v8, %s7887_s21 }
 0x133   :  { %3665 = vrot.lane.b32.xlu1 %v8123_v7, %s7886_s20 }
 0x134   :  { %3667 = vrot.lane.b32.xlu0 %v8127_v8, %s7886_s20 }
 0x137   :  { %3836 = vrot.lane.b32.xlu1 %v8123_v7, %s7888_s8 }
 0x138   :  { %3838 = vrot.lane.b32.xlu0 %v8127_v8, %s7888_s8 }
 0x13b   :  { %4007 = vrot.lane.b32.xlu1 %v8123_v7, %s7889_s24 }
 0x13c   :  { %4009 = vrot.lane.b32.xlu0 %v8127_v8, %s7889_s24 }
 0x13f   :  { %4178 = vrot.lane.b32.xlu1 %v8123_v7, %s7890_s28 }
 0x140   :  { %4180 = vrot.lane.b32.xlu0 %v8127_v8, %s7890_s28 }
 0x143   :  { %4349 = vrot.lane.b32.xlu1 %v8123_v7, %s7891_s29 }
 0x144   :  { %4351 = vrot.lane.b32.xlu0 %v8127_v8, %s7891_s29 }
 0x147   :  { %4520 = vrot.lane.b32.xlu1 %v8123_v7, %s7892_s13 }
 0x148   :  { %4522 = vrot.lane.b32.xlu0 %v8127_v8, %s7892_s13 }
 0x14b   :  { %4853 = vrot.lane.b32.xlu1 %v8158_v9, %s7887_s21 }
 0x14c   :  { %4855 = vrot.lane.b32.xlu0 %v8160_v10, %s7887_s21 }
 0x14f   :  { %5025 = vrot.lane.b32.xlu1 %v8158_v9, %s7886_s20 }
 0x150   :  { %5027 = vrot.lane.b32.xlu0 %v8160_v10, %s7886_s20 }
 0x153   :  { %5196 = vrot.lane.b32.xlu1 %v8158_v9, %s7888_s8 }
 0x154   :  { %5198 = vrot.lane.b32.xlu0 %v8160_v10, %s7888_s8 }
 0x157   :  { %5367 = vrot.lane.b32.xlu1 %v8158_v9, %s7889_s24 }
 0x158   :  { %5369 = vrot.lane.b32.xlu0 %v8160_v10, %s7889_s24 }
 0x15b   :  { %5538 = vrot.lane.b32.xlu1 %v8158_v9, %s7890_s28 }
 0x15c   :  { %5540 = vrot.lane.b32.xlu0 %v8160_v10, %s7890_s28 }
 0x15f   :  { %5709 = vrot.lane.b32.xlu1 %v8158_v9, %s7891_s29 }
 0x160   :  { %5711 = vrot.lane.b32.xlu0 %v8160_v10, %s7891_s29 }
 0x163   :  { %5880 = vrot.lane.b32.xlu1 %v8158_v9, %s7892_s13 }
 0x164   :  { %5882 = vrot.lane.b32.xlu0 %v8160_v10, %s7892_s13 }
 0x167   :  { %857 = vrot.lane.b32.xlu1 %v8059_v60, %s7887_s21 }
 0x168   :  { %1029 = vrot.lane.b32.xlu0 %v8059_v60, %s7886_s20 }
 0x169   :  { %v942_v11 = vpop.permute.xlu1 %941  ;;  %v769_v13 = vpop.permute.xlu0 %768 }
 0x16a   :  { %7222 = vmatpush3.xpose.msk.msra.mxu0 %vm602_vm2, %v769_v13 }
 0x16b   :  { %1201 = vrot.lane.b32.xlu1 %v8059_v60, %s7888_s8  ;;  %7231 = vmatprep.subr.mxu0 %v9104_v45 }
 0x16c   :  { %1373 = vrot.lane.b32.xlu0 %v8059_v60, %s7889_s24 }
 0x16d   :  { %v940_v19 = vpop.permute.xlu1 %939 }
 0x16e   :  { %v767_v20 = vpop.permute.xlu0 %766 }
 0x16f   :  { %7224 = vmatmul.mubr.msk.f32.vlgmr.msra.gmra.mrb[6].mxu0 %vm602_vm2, %v767_v20  ;;  %1717 = vrot.lane.b32.xlu1 %v8059_v60, %s7891_s29 }
 0x170   :  { %7232 = vmatpush3.xpose.msk.msra.mxu0 %vm602_vm2, %v942_v11  ;;  %1545 = vrot.lane.b32.xlu0 %v8059_v60, %s7890_s28 }
 0x171   :  { %v1112_v21 = vpop.permute.xlu1 %1111  ;;  %7233 = vmatprep.mubr.msk.f32.mxu0 %vm7885_vm1, %v9104_v45  ;;  %7241 = vmatprep.subr.mxu0 %v9104_v45 }
 0x172   :  { %v1114_v22 = vpop.permute.xlu0 %1113 }
 0x173   :  { %7234 = vmatmul.mubr.msk.f32.vlgmr.msra.gmra.mrb[8].mxu0 %vm602_vm2, %v940_v19  ;;  %3755 = vrot.lane.b32.xlu1 %v8057_v58, %s7886_s20 }
 0x174   :  { %7242 = vmatpush3.xpose.msk.msra.mxu0 %vm602_vm2, %v1114_v22  ;;  %1889 = vrot.lane.b32.xlu0 %v8059_v60, %s7892_s13 }
 0x175   :  { %v1284_v23 = vpop.permute.xlu1 %1283  ;;  %7243 = vmatprep.mubr.msk.f32.mxu0 %vm7885_vm1, %v9104_v45  ;;  %7251 = vmatprep.subr.mxu0 %v9104_v45 }
 0x176   :  { %v1286_v24 = vpop.permute.xlu0 %1285 }
 0x177   :  { %7244 = vmatmul.mubr.msk.f32.vlgmr.msra.gmra.mrb[10].mxu0 %vm602_vm2, %v1112_v21  ;;  %4097 = vrot.lane.b32.xlu1 %v8057_v58, %s7889_s24 }
 0x178   :  { %7252 = vmatpush3.xpose.msk.msra.mxu0 %vm602_vm2, %v1286_v24  ;;  %3584 = vrot.lane.b32.xlu0 %v8057_v58, %s7887_s21 }
 0x179   :  { %v1456_v26 = vpop.permute.xlu1 %1455  ;;  %7253 = vmatprep.mubr.msk.f32.mxu0 %vm7885_vm1, %v9104_v45  ;;  %7261 = vmatprep.subr.mxu0 %v9104_v45 }
 0x17a   :  { %v1458_v27 = vpop.permute.xlu0 %1457 }
 0x17b   :  { %7254 = vmatmul.mubr.msk.f32.vlgmr.msra.gmra.mrb[12].mxu0 %vm602_vm2, %v1284_v23  ;;  %2224 = vrot.lane.b32.xlu1 %v8223_v25, %s7887_s21 }
 0x17c   :  { %7262 = vmatpush3.xpose.msk.msra.mxu0 %vm602_vm2, %v1458_v27  ;;  %3926 = vrot.lane.b32.xlu0 %v8057_v58, %s7888_s8 }
 0x17d   :  { %v1628_v28 = vpop.permute.xlu1 %1627  ;;  %7263 = vmatprep.mubr.msk.f32.mxu0 %vm7885_vm1, %v9104_v45  ;;  %7271 = vmatprep.subr.mxu0 %v9104_v45 }
 0x17e   :  { %v1630_v29 = vpop.permute.xlu0 %1629 }
 0x17f   :  { %7264 = vmatmul.mubr.msk.f32.vlgmr.msra.gmra.mrb[14].mxu0 %vm602_vm2, %v1456_v26  ;;  %2395 = vrot.lane.b32.xlu1 %v8223_v25, %s7886_s20 }
 0x180   :  { %7272 = vmatpush3.xpose.msk.msra.mxu0 %vm602_vm2, %v1630_v29  ;;  %4268 = vrot.lane.b32.xlu0 %v8057_v58, %s7890_s28 }
 0x181   :  { %v1800_v30 = vpop.permute.xlu1 %1799  ;;  %7273 = vmatprep.mubr.msk.f32.mxu0 %vm7885_vm1, %v9104_v45  ;;  %7281 = vmatprep.subr.mxu0 %v9104_v45 }
 0x182   :  { %v1802_v31 = vpop.permute.xlu0 %1801 }
 0x183   :  { %7274 = vmatmul.mubr.msk.f32.vlgmr.msra.gmra.mrb[16].mxu0 %vm602_vm2, %v1628_v28  ;;  %2566 = vrot.lane.b32.xlu1 %v8223_v25, %s7888_s8 }
 0x184   :  { %7282 = vmatpush3.xpose.msk.msra.mxu0 %vm602_vm2, %v1802_v31  ;;  %7283 = vmatprep.mubr.msk.f32.mxu0 %vm7885_vm1, %v9104_v45 }
 0x185   :  { %v2134_v32 = vpop.permute.xlu1 %2133  ;;  %7291 = vmatprep.subr.mxu0 %v9104_v45 }
 0x186   :  { %v2136_v33 = vpop.permute.xlu0 %2135 }
 0x187   :  { %7284 = vmatmul.mubr.msk.f32.vlgmr.msra.gmra.mrb[18].mxu0 %vm602_vm2, %v1800_v30  ;;  %2737 = vrot.lane.b32.xlu1 %v8223_v25, %s7889_s24 }
 0x188   :  { %7292 = vmatpush3.xpose.msk.msra.mxu0 %vm602_vm2, %v8091_v6  ;;  %7293 = vmatprep.mubr.msk.f32.mxu0 %vm7885_vm1, %v9104_v45 }
 0x189   :  { %v2306_v34 = vpop.permute.xlu1 %2305  ;;  %7301 = vmatprep.subr.mxu0 %v9104_v45 }
 0x18a   :  { %v2308_v35 = vpop.permute.xlu0 %2307 }
 0x18b   :  { %7294 = vmatmul.mubr.msk.f32.vlgmr.msra.gmra.mrb[20].mxu0 %vm602_vm2, %v8088_v5  ;;  %2908 = vrot.lane.b32.xlu1 %v8223_v25, %s7890_s28 }
 0x18c   :  { %7302 = vmatpush3.xpose.msk.msra.mxu0 %vm602_vm2, %v2136_v33  ;;  %7303 = vmatprep.mubr.msk.f32.mxu0 %vm7885_vm1, %v9104_v45 }
 0x18d   :  { %v2477_v36 = vpop.permute.xlu1 %2476  ;;  %7311 = vmatprep.subr.mxu0 %v9104_v45 }
 0x18e   :  { %v2479_v37 = vpop.permute.xlu0 %2478 }
 0x18f   :  { %7304 = vmatmul.mubr.msk.f32.vlgmr.msra.gmra.mrb[22].mxu0 %vm602_vm2, %v2134_v32  ;;  %3079 = vrot.lane.b32.xlu1 %v8223_v25, %s7891_s29 }
 0x190   :  { %7312 = vmatpush3.xpose.msk.msra.mxu0 %vm602_vm2, %v2308_v35  ;;  %7313 = vmatprep.mubr.msk.f32.mxu0 %vm7885_vm1, %v9104_v45 }
 0x191   :  { %v2648_v38 = vpop.permute.xlu1 %2647  ;;  %7321 = vmatprep.subr.mxu0 %v9104_v45 }
 0x192   :  { %v2650_v39 = vpop.permute.xlu0 %2649 }
 0x193   :  { %7314 = vmatmul.mubr.msk.f32.vlgmr.msra.gmra.mrb[24].mxu0 %vm602_vm2, %v2306_v34  ;;  %3250 = vrot.lane.b32.xlu1 %v8223_v25, %s7892_s13 }
 0x194   :  { %7322 = vmatpush3.xpose.msk.msra.mxu0 %vm602_vm2, %v2479_v37  ;;  %7323 = vmatprep.mubr.msk.f32.mxu0 %vm7885_vm1, %v9104_v45 }
 0x195   :  { %v2819_v40 = vpop.permute.xlu1 %2818  ;;  %7331 = vmatprep.subr.mxu0 %v9104_v45 }
 0x196   :  { %v2821_v41 = vpop.permute.xlu0 %2820 }
 0x197   :  { %7324 = vmatmul.mubr.msk.f32.vlgmr.msra.gmra.mrb[26].mxu0 %vm602_vm2, %v2477_v36  ;;  %4439 = vrot.lane.b32.xlu1 %v8057_v58, %s7891_s29 }
 0x198   :  { %7332 = vmatpush3.xpose.msk.msra.mxu0 %vm602_vm2, %v2650_v39  ;;  %7333 = vmatprep.mubr.msk.f32.mxu0 %vm7885_vm1, %v9104_v45 }
 0x199   :  { %v2990_v42 = vpop.permute.xlu1 %2989  ;;  %7341 = vmatprep.subr.mxu0 %v9104_v45 }
 0x19a   :  { %v2992_v43 = vpop.permute.xlu0 %2991 }
 0x19b   :  { %7334 = vmatmul.mubr.msk.f32.vlgmr.msra.gmra.mrb[28].mxu0 %vm602_vm2, %v2648_v38 }
 0x19c   :  { %7342 = vmatpush3.xpose.msk.msra.mxu0 %vm602_vm2, %v2821_v41  ;;  %7343 = vmatprep.mubr.msk.f32.mxu0 %vm7885_vm1, %v9104_v45 }
 0x19d   :  { %v3161_v44 = vpop.permute.xlu1 %3160  ;;  %7351 = vmatprep.subr.mxu0 %v9104_v45 }
 0x19e   :  { %v3163_v46 = vpop.permute.xlu0 %3162 }
 0x19f   :  { %7344 = vmatmul.mubr.msk.f32.vlgmr.msra.gmra.mrb[30].mxu0 %vm602_vm2, %v2819_v40 }
 0x1a0   :  { %7352 = vmatpush3.xpose.msk.msra.mxu0 %vm602_vm2, %v2992_v43  ;;  %7353 = vmatprep.mubr.msk.f32.mxu0 %vm7885_vm1, %v9104_v45 }
 0x1a1   :  { %v3494_v47 = vpop.permute.xlu1 %3493  ;;  %7361 = vmatprep.subr.mxu0 %v9104_v45 }
 0x1a2   :  { %v3496_v48 = vpop.permute.xlu0 %3495 }
 0x1a3   :  { %7354 = vmatmul.mubr.msk.f32.vlgmr.msra.gmra.mrb[32].mxu0 %vm602_vm2, %v2990_v42 }
 0x1a4   :  { %7362 = vmatpush3.xpose.msk.msra.mxu0 %vm602_vm2, %v3163_v46  ;;  %7363 = vmatprep.mubr.msk.f32.mxu0 %vm7885_vm1, %v9104_v45 }
 0x1a5   :  { %v3666_v49 = vpop.permute.xlu1 %3665  ;;  %7371 = vmatprep.subr.mxu0 %v9104_v45 }
 0x1a6   :  { %v3668_v50 = vpop.permute.xlu0 %3667 }
 0x1a7   :  { %7364 = vmatmul.mubr.msk.f32.vlgmr.msra.gmra.mrb[34].mxu0 %vm602_vm2, %v3161_v44 }
 0x1a8   :  { %7372 = vmatpush3.xpose.msk.msra.mxu0 %vm602_vm2, %v8127_v8  ;;  %7373 = vmatprep.mubr.msk.f32.mxu0 %vm7885_vm1, %v9104_v45 }
 0x1a9   :  { %v3837_v51 = vpop.permute.xlu1 %3836  ;;  %7381 = vmatprep.subr.mxu0 %v9104_v45 }
 0x1aa   :  { %v3839_v52 = vpop.permute.xlu0 %3838 }
 0x1ab   :  { %7374 = vmatmul.mubr.msk.f32.vlgmr.msra.gmra.mrb[36].mxu0 %vm602_vm2, %v8123_v7 }
 0x1ac   :  { %7382 = vmatpush3.xpose.msk.msra.mxu0 %vm602_vm2, %v3496_v48  ;;  %7383 = vmatprep.mubr.msk.f32.mxu0 %vm7885_vm1, %v9104_v45 }
 0x1ad   :  { %v4008_v53 = vpop.permute.xlu1 %4007  ;;  %7391 = vmatprep.subr.mxu0 %v9104_v45 }
 0x1ae   :  { %v4010_v54 = vpop.permute.xlu0 %4009 }
 0x1af   :  { %7384 = vmatmul.mubr.msk.f32.vlgmr.msra.gmra.mrb[38].mxu0 %vm602_vm2, %v3494_v47 }
 0x1b0   :  { %7392 = vmatpush3.xpose.msk.msra.mxu0 %vm602_vm2, %v3668_v50  ;;  %7393 = vmatprep.mubr.msk.f32.mxu0 %vm7885_vm1, %v9104_v45 }
 0x1b1   :  { %v4179_v55 = vpop.permute.xlu1 %4178  ;;  %7401 = vmatprep.subr.mxu0 %v9104_v45 }
 0x1b2   :  { %v4181_v56 = vpop.permute.xlu0 %4180 }
 0x1b3   :  { %7394 = vmatmul.mubr.msk.f32.vlgmr.msra.gmra.mrb[40].mxu0 %vm602_vm2, %v3666_v49 }
 0x1b4   :  { %7402 = vmatpush3.xpose.msk.msra.mxu0 %vm602_vm2, %v3839_v52  ;;  %7403 = vmatprep.mubr.msk.f32.mxu0 %vm7885_vm1, %v9104_v45 }
 0x1b5   :  { %7411 = vmatprep.subr.mxu0 %v9104_v45  ;;  %v4350_v57 = vpop.permute.xlu1 %4349 }
 0x1b6   :  { %v4352_v59 = vpop.permute.xlu0 %4351 }
 0x1b7   :  { %7404 = vmatmul.mubr.msk.f32.vlgmr.msra.gmra.mrb[42].mxu0 %vm602_vm2, %v3837_v51 }
 0x1b8   :  { %7412 = vmatpush3.xpose.msk.msra.mxu0 %vm602_vm2, %v4010_v54  ;;  %7413 = vmatprep.mubr.msk.f32.mxu0 %vm7885_vm1, %v9104_v45 }
 0x1b9   :  { %7421 = vmatprep.subr.mxu0 %v9104_v45  ;;  %v4521_v61 = vpop.permute.xlu1 %4520 }
 0x1ba   :  { %v4523_v60 = vpop.permute.xlu0 %4522 }
 0x1bb   :  { %7414 = vmatmul.mubr.msk.f32.vlgmr.msra.gmra.mrb[44].mxu0 %vm602_vm2, %v4008_v53 }
 0x1bc   :  { %7422 = vmatpush3.xpose.msk.msra.mxu0 %vm602_vm2, %v4181_v56  ;;  %7423 = vmatprep.mubr.msk.f32.mxu0 %vm7885_vm1, %v9104_v45 }
 0x1bd   :  { %7431 = vmatprep.subr.mxu0 %v9104_v45  ;;  %v4854_v63 = vpop.permute.xlu1 %4853 }
 0x1be   :  { %v4856_v62 = vpop.permute.xlu0 %4855 }
 0x1bf   :  { %7424 = vmatmul.mubr.msk.f32.vlgmr.msra.gmra.mrb[46].mxu0 %vm602_vm2, %v4179_v55 }
 0x1c0   :  { %7432 = vmatpush3.xpose.msk.msra.mxu0 %vm602_vm2, %v4352_v59  ;;  %7433 = vmatprep.mubr.msk.f32.mxu0 %vm7885_vm1, %v9104_v45 }
 0x1c1   :  { %7441 = vmatprep.subr.mxu0 %v9104_v45  ;;  %v5026_v2 = vpop.permute.xlu1 %5025 }
 0x1c2   :  { %v5028_v1 = vpop.permute.xlu0 %5027 }
 0x1c3   :  { %7434 = vmatmul.mubr.msk.f32.vlgmr.msra.gmra.mrb[48].mxu0 %vm602_vm2, %v4350_v57 }
 0x1c4   :  { %7442 = vmatpush3.xpose.msk.msra.mxu0 %vm602_vm2, %v4523_v60  ;;  %7443 = vmatprep.mubr.msk.f32.mxu0 %vm7885_vm1, %v9104_v45 }
 0x1c5   :  { %7451 = vmatprep.subr.mxu0 %v9104_v45  ;;  %v5197_v4 = vpop.permute.xlu1 %5196 }
 0x1c6   :  { %v5199_v3 = vpop.permute.xlu0 %5198 }
 0x1c7   :  { %7444 = vmatmul.mubr.msk.f32.vlgmr.msra.gmra.mrb[50].mxu0 %vm602_vm2, %v4521_v61 }
 0x1c8   :  { %7452 = vmatpush3.xpose.msk.msra.mxu0 %vm602_vm2, %v8160_v10  ;;  %7453 = vmatprep.mubr.msk.f32.mxu0 %vm7885_vm1, %v9104_v45 }
 0x1c9   :  { %7461 = vmatprep.subr.mxu0 %v9104_v45  ;;  %v5368_v10 = vpop.permute.xlu1 %5367 }
 0x1ca   :  { %v5370_v8 = vpop.permute.xlu0 %5369 }
 0x1cb   :  { %7454 = vmatmul.mubr.msk.f32.vlgmr.msra.gmra.mrb[52].mxu0 %vm602_vm2, %v8158_v9 }
 0x1cc   :  { %7462 = vmatpush3.xpose.msk.msra.mxu0 %vm602_vm2, %v4856_v62  ;;  %7463 = vmatprep.mubr.msk.f32.mxu0 %vm7885_vm1, %v9104_v45 }
 0x1cd   :  { %7471 = vmatprep.subr.mxu0 %v9104_v45  ;;  %v5539_v13 = vpop.permute.xlu1 %5538 }
 0x1ce   :  { %v675_v5 = vpop.f32.mrb[6].mxu1  ;;  %v5541_v11 = vpop.permute.xlu0 %5540 }
 0x1cf   :  { %v8362_v6 = vmul.f32 0.5, %v675_v5  ;;  %v7215_v7 = vpop.f32.mrb[7].mxu1  ;;  %7464 = vmatmul.mubr.msk.f32.vlgmr.msra.gmra.mrb[54].mxu0 %vm602_vm2, %v4854_v63 }
 0x1d0   :  { %7472 = vmatpush3.xpose.msk.msra.mxu0 %vm602_vm2, %v5028_v1  ;;  %7473 = vmatprep.mubr.msk.f32.mxu0 %vm7885_vm1, %v9104_v45 }
 0x1d1   :  { %7481 = vmatprep.subr.mxu0 %v9104_v45  ;;  %v681_v9 = vsel %vm680_vm3, %v8362_v6, -inf  ;;  %v5710_v20 = vpop.permute.xlu1 %5709 }
 0x1d2   :  { %682 = vmax.xlane.f32.xlu0 %v681_v9  ;;  %v5712_v19 = vpop.permute.xlu0 %5711 }
 0x1d3   :  { %7474 = vmatmul.mubr.msk.f32.vlgmr.msra.gmra.mrb[56].mxu0 %vm602_vm2, %v5026_v2 }
 0x1d4   :  { %7482 = vmatpush3.xpose.msk.msra.mxu0 %vm602_vm2, %v5199_v3  ;;  %7483 = vmatprep.mubr.msk.f32.mxu0 %vm7885_vm1, %v9104_v45 }
 0x1d5   :  { %7491 = vmatprep.subr.mxu0 %v9104_v45  ;;  %v5881_v22 = vpop.permute.xlu1 %5880 }
 0x1d6   :  { %v5883_v21 = vpop.permute.xlu0 %5882 }
 0x1d7   :  { %7484 = vmatmul.mubr.msk.f32.vlgmr.msra.gmra.mrb[58].mxu0 %vm602_vm2, %v5197_v4 }
 0x1d8   :  { %7492 = vmatpush3.xpose.msk.msra.mxu0 %vm602_vm2, %v5370_v8  ;;  %7493 = vmatprep.mubr.msk.f32.mxu0 %vm7885_vm1, %v9104_v45 }
 0x1d9   :  { %7501 = vmatprep.subr.mxu0 %v9104_v45 }
 0x1da   :  { %v8396_v23 = vpop.permute.xlu0 %1029 }
 0x1db   :  { %7494 = vmatmul.mubr.msk.f32.vlgmr.msra.gmra.mrb[60].mxu0 %vm602_vm2, %v5368_v10 }
 0x1dc   :  { %7502 = vmatpush3.xpose.msk.msra.mxu0 %vm602_vm2, %v5541_v11  ;;  %7503 = vmatprep.mubr.msk.f32.mxu0 %vm7885_vm1, %v9104_v45 }
 0x1dd   :  { %7511 = vmatprep.subr.mxu0 %v9104_v45 }
 0x1de   :  { %v8398_v24 = vpop.permute.xlu0 %1373 }
 0x1df   :  { %7504 = vmatmul.mubr.msk.f32.vlgmr.msra.gmra.mrb[62].mxu0 %vm602_vm2, %v5539_v13 }
 0x1e0   :  { %7512 = vmatpush3.xpose.msk.msra.mxu0 %vm602_vm2, %v5712_v19  ;;  %7513 = vmatprep.mubr.msk.f32.mxu0 %vm7885_vm1, %v9104_v45 }
 0x1e1   :  { %7521 = vmatprep.subr.mxu0 %v9104_v45 }
 0x1e2   :  { %v8400_v27 = vpop.permute.xlu0 %1545 }
 0x1e3   :  { %7514 = vmatmul.mubr.msk.f32.vlgmr.msra.gmra.mrb[64].mxu0 %vm602_vm2, %v5710_v20 }
 0x1e4   :  { %7522 = vmatpush3.xpose.msk.msra.mxu0 %vm602_vm2, %v5883_v21  ;;  %7523 = vmatprep.mubr.msk.f32.mxu0 %vm7885_vm1, %v9104_v45 }
 0x1e6   :  { %v8408_v34 = vpop.permute.xlu0 %1889 }
 0x1e7   :  { %7524 = vmatmul.mubr.msk.f32.vlgmr.msra.gmra.mrb[66].mxu0 %vm602_vm2, %v5881_v22 }
 0x1ea   :  { %v8416_v41 = vpop.permute.xlu0 %3584 }
 0x1eb   :  { %9116 = vst [vmem:[#allocation13_spill] sm:$0xff] %v8416_v41 }
 0x1ee   :  { %v8424_v49 = vpop.permute.xlu0 %3926 }
 0x1ef   :  { %9117 = vst [vmem:[#allocation14_spill] sm:$0xff] %v8424_v49 }
 0x1f2   :  { %v8432_v56 = vpop.permute.xlu0 %4268 }
 0x1f3   :  { %9118 = vst [vmem:[#allocation15_spill] sm:$0xff] %v8432_v56 }
 0x242   :  { %v840_v26 = vpop.f32.mrb[6].mxu0 }
 0x243   :  { %v8402_v28 = vmul.f32 0.5, %v840_v26  ;;  %v7225_v29 = vpop.f32.mrb[7].mxu0 }
 0x245   :  { %v845_v30 = vsel %vm680_vm3, %v8402_v28, -inf }
 0x246   :  { %846 = vmax.xlane.f32.xlu1 %v845_v30  ;;  %v1013_v31 = vpop.f32.mrb[8].mxu0 }
 0x247   :  { %v8406_v32 = vmul.f32 0.5, %v1013_v31  ;;  %v7235_v33 = vpop.f32.mrb[9].mxu0 }
 0x249   :  { %v1018_v35 = vsel %vm680_vm3, %v8406_v32, -inf }
 0x24a   :  { %v1185_v36 = vpop.f32.mrb[10].mxu0  ;;  %1019 = vmax.xlane.f32.xlu0 %v1018_v35 }
 0x24b   :  { %v8412_v37 = vmul.f32 0.5, %v1185_v36  ;;  %v7245_v38 = vpop.f32.mrb[11].mxu0 }
 0x24d   :  { %v1190_v39 = vsel %vm680_vm3, %v8412_v37, -inf }
 0x24e   :  { %v1357_v40 = vpop.f32.mrb[12].mxu0  ;;  %1191 = vmax.xlane.f32.xlu0 %v1190_v39 }
 0x24f   :  { %v8418_v42 = vmul.f32 0.5, %v1357_v40  ;;  %v7255_v43 = vpop.f32.mrb[13].mxu0 }
 0x251   :  { %v1362_v44 = vsel %vm680_vm3, %v8418_v42, -inf }
 0x252   :  { %1363 = vmax.xlane.f32.xlu1 %v1362_v44  ;;  %v1529_v46 = vpop.f32.mrb[14].mxu0 }
 0x253   :  { %v8422_v47 = vmul.f32 0.5, %v1529_v46  ;;  %v7265_v48 = vpop.f32.mrb[15].mxu0 }
 0x255   :  { %v1534_v50 = vsel %vm680_vm3, %v8422_v47, -inf }
 0x256   :  { %v1701_v51 = vpop.f32.mrb[16].mxu0  ;;  %1535 = vmax.xlane.f32.xlu0 %v1534_v50 }
 0x257   :  { %v8428_v52 = vmul.f32 0.5, %v1701_v51  ;;  %v7275_v53 = vpop.f32.mrb[17].mxu0 }
 0x259   :  { %v1706_v54 = vsel %vm680_vm3, %v8428_v52, -inf }
 0x25a   :  { %1707 = vmax.xlane.f32.xlu1 %v1706_v54  ;;  %v1873_v55 = vpop.f32.mrb[18].mxu0 }
 0x25b   :  { %v8434_v57 = vmul.f32 0.5, %v1873_v55  ;;  %v7285_v59 = vpop.f32.mrb[19].mxu0 }
 0x25d   :  { %v1878_v60 = vsel %vm680_vm3, %v8434_v57, -inf }
 0x25e   :  { %v2043_v61 = vpop.f32.mrb[20].mxu0  ;;  %1879 = vmax.xlane.f32.xlu0 %v1878_v60 }
 0x25f   :  { %v8438_v62 = vmul.f32 0.5, %v2043_v61  ;;  %v7295_v63 = vpop.f32.mrb[21].mxu0  ;;  %v683_v1 = vpop.xlane.xlu0 %682 }
 0x260   :  { %v684_v2 = vsub.f32 %v8362_v6, %v683_v1 }
 0x261   :  { %v2048_v3 = vsel %vm680_vm3, %v8438_v62, -inf }
 0x262   :  { %v685_v4 = vmul.f32 1.442695, %v684_v2  ;;  %2049 = vmax.xlane.f32.xlu1 %v2048_v3  ;;  %v2207_v5 = vpop.f32.mrb[22].mxu0 }
 0x263   :  { %v8443_v7 = vmul.f32 0.5, %v2207_v5  ;;  %v7305_v8 = vpop.f32.mrb[23].mxu0  ;;  %v8483_v5 = vpop.permute.xlu1 %857 }
 0x264   :  { %7727 = vpow2.f32 %v685_v4 }
 0x265   :  { %v2212_v9 = vsel %vm680_vm3, %v8443_v7, -inf }
 0x266   :  { %v2379_v10 = vpop.f32.mrb[24].mxu0  ;;  %2213 = vmax.xlane.f32.xlu0 %v2212_v9 }
 0x267   :  { %v8447_v11 = vmul.f32 0.5, %v2379_v10  ;;  %v7315_v13 = vpop.f32.mrb[25].mxu0 }
 0x269   :  { %v2384_v6 = vsel %vm680_vm3, %v8447_v11, -inf }
 0x26a   :  { %2385 = vmax.xlane.f32.xlu1 %v2384_v6  ;;  %v2550_v19 = vpop.f32.mrb[26].mxu0 }
 0x26b   :  { %v8451_v20 = vmul.f32 0.5, %v2550_v19  ;;  %v7325_v21 = vpop.f32.mrb[27].mxu0 }
 0x26c   :  { %v8491_v21 = vpop.permute.xlu1 %1201 }
 0x26d   :  { %v2555_v22 = vsel %vm680_vm3, %v8451_v20, -inf }
 0x26e   :  { %v8455_v26 = vpop.eup %7727  ;;  %v2721_v29 = vpop.f32.mrb[28].mxu0  ;;  %2556 = vmax.xlane.f32.xlu0 %v2555_v22 }
 0x26f   :  { %v8457_v30 = vmul.f32 0.5, %v2721_v29  ;;  %v7335_v31 = vpop.f32.mrb[29].mxu0  ;;  %v687_v33 = vsel %vm680_vm3, %v8455_v26, 0.0 }
 0x270   :  { %688 = vadd.xlane.f32.xlu1 %v687_v33 }
 0x271   :  { %v2726_v39 = vsel %vm680_vm3, %v8457_v30, -inf }
 0x272   :  { %v2892_v35 = vpop.f32.mrb[30].mxu0 }
 0x273   :  { %v8461_v36 = vmul.f32 0.5, %v2892_v35  ;;  %v7345_v38 = vpop.f32.mrb[31].mxu0 }
 0x274   :  { %2727 = vmax.xlane.f32.xlu1 %v2726_v39  ;;  %v8499_v39 = vpop.permute.xlu1 %1717 }
 0x275   :  { %v2897_v40 = vsel %vm680_vm3, %v8461_v36, -inf }
 0x276   :  { %v3063_v43 = vpop.f32.mrb[32].mxu0  ;;  %2898 = vmax.xlane.f32.xlu0 %v2897_v40 }
 0x277   :  { %v8467_v44 = vmul.f32 0.5, %v3063_v43  ;;  %v7355_v46 = vpop.f32.mrb[33].mxu0 }
 0x279   :  { %v3068_v48 = vsel %vm680_vm3, %v8467_v44, -inf }
 0x27a   :  { %v3234_v50 = vpop.f32.mrb[34].mxu0  ;;  %3069 = vmax.xlane.f32.xlu1 %v3068_v48 }
 0x27b   :  { %v8471_v51 = vmul.f32 0.5, %v3234_v50  ;;  %v7365_v53 = vpop.f32.mrb[35].mxu0 }
 0x27d   :  { %v3239_v54 = vsel %vm680_vm3, %v8471_v51, -inf }
 0x27e   :  { %v3403_v55 = vpop.f32.mrb[36].mxu0  ;;  %3240 = vmax.xlane.f32.xlu0 %v3239_v54  ;;  %v8507_v54 = vpop.permute.xlu1 %3755 }
 0x27f   :  { %v8475_v59 = vmul.f32 0.5, %v3403_v55  ;;  %v7375_v60 = vpop.f32.mrb[37].mxu0  ;;  %9119 = vst [vmem:[#allocation16_spill] sm:$0xff] %v8507_v54 }
 0x281   :  { %v3408_v61 = vsel %vm680_vm3, %v8475_v59, -inf }
 0x282   :  { %v3567_v63 = vpop.f32.mrb[38].mxu0  ;;  %3409 = vmax.xlane.f32.xlu1 %v3408_v61 }
 0x283   :  { %v8479_v1 = vmul.f32 0.5, %v3567_v63  ;;  %v7385_v2 = vpop.f32.mrb[39].mxu0 }
 0x285   :  { %v3572_v3 = vsel %vm680_vm3, %v8479_v1, -inf }
 0x286   :  { %v3739_v4 = vpop.f32.mrb[40].mxu0  ;;  %3573 = vmax.xlane.f32.xlu0 %v3572_v3 }
 0x287   :  { %v8485_v8 = vmul.f32 0.5, %v3739_v4  ;;  %v7395_v9 = vpop.f32.mrb[41].mxu0  ;;  %v8515_v4 = vpop.permute.xlu1 %4097 }
 0x288   :  { %9120 = vst [vmem:[#allocation17_spill] sm:$0xff] %v8515_v4 }
 0x289   :  { %v3744_v10 = vsel %vm680_vm3, %v8485_v8, -inf }
 0x28a   :  { %v3910_v13 = vpop.f32.mrb[42].mxu0  ;;  %3745 = vmax.xlane.f32.xlu1 %v3744_v10 }
 0x28b   :  { %v8489_v6 = vmul.f32 0.5, %v3910_v13  ;;  %v7405_v19 = vpop.f32.mrb[43].mxu0 }
 0x28d   :  { %v3915_v22 = vsel %vm680_vm3, %v8489_v6, -inf }
 0x28e   :  { %v4081_v29 = vpop.f32.mrb[44].mxu0  ;;  %3916 = vmax.xlane.f32.xlu0 %v3915_v22 }
 0x28f   :  { %v8495_v31 = vmul.f32 0.5, %v4081_v29  ;;  %v7415_v33 = vpop.f32.mrb[45].mxu0 }
 0x290   :  { %v8523_v33 = vpop.permute.xlu1 %2224 }
 0x291   :  { %v4086_v35 = vsel %vm680_vm3, %v8495_v31, -inf }
 0x292   :  { %v4252_v38 = vpop.f32.mrb[46].mxu0  ;;  %4087 = vmax.xlane.f32.xlu1 %v4086_v35 }
 0x293   :  { %v8501_v40 = vmul.f32 0.5, %v4252_v38  ;;  %v7425_v43 = vpop.f32.mrb[47].mxu0 }
 0x295   :  { %v4257_v46 = vsel %vm680_vm3, %v8501_v40, -inf }
 0x296   :  { %v4423_v48 = vpop.f32.mrb[48].mxu0  ;;  %4258 = vmax.xlane.f32.xlu0 %v4257_v46 }
 0x297   :  { %v8505_v50 = vmul.f32 0.5, %v4423_v48  ;;  %v7435_v53 = vpop.f32.mrb[49].mxu0 }
 0x299   :  { %v4428_v55 = vsel %vm680_vm3, %v8505_v50, -inf }
 0x29a   :  { %v4594_v60 = vpop.f32.mrb[50].mxu0  ;;  %4429 = vmax.xlane.f32.xlu0 %v4428_v55  ;;  %v8531_v55 = vpop.permute.xlu1 %2395 }
 0x29b   :  { %v8511_v61 = vmul.f32 0.5, %v4594_v60  ;;  %v7445_v63 = vpop.f32.mrb[51].mxu0 }
 0x29d   :  { %v4599_v2 = vsel %vm680_vm3, %v8511_v61, -inf }
 0x29e   :  { %v4763_v3 = vpop.f32.mrb[52].mxu0  ;;  %4600 = vmax.xlane.f32.xlu0 %v4599_v2 }
 0x29f   :  { %v8517_v9 = vmul.f32 0.5, %v4763_v3  ;;  %v7455_v10 = vpop.f32.mrb[53].mxu0 }
 0x2a1   :  { %v4768_v13 = vsel %vm680_vm3, %v8517_v9, -inf }
 0x2a2   :  { %v4927_v19 = vpop.f32.mrb[54].mxu0  ;;  %4769 = vmax.xlane.f32.xlu0 %v4768_v13 }
 0x2a3   :  { %v8521_v22 = vmul.f32 0.5, %v4927_v19  ;;  %v7465_v29 = vpop.f32.mrb[55].mxu0  ;;  %v8539_v19 = vpop.permute.xlu1 %2566 }
 0x2a5   :  { %v4932_v35 = vsel %vm680_vm3, %v8521_v22, -inf }
 0x2a6   :  { %v5099_v38 = vpop.f32.mrb[56].mxu0  ;;  %4933 = vmax.xlane.f32.xlu0 %v4932_v35 }
 0x2a7   :  { %v8527_v43 = vmul.f32 0.5, %v5099_v38  ;;  %v7475_v46 = vpop.f32.mrb[57].mxu0 }
 0x2a9   :  { %v5104_v48 = vsel %vm680_vm3, %v8527_v43, -inf }
 0x2aa   :  { %v5270_v53 = vpop.f32.mrb[58].mxu0  ;;  %5105 = vmax.xlane.f32.xlu0 %v5104_v48 }
 0x2ab   :  { %v8533_v60 = vmul.f32 0.5, %v5270_v53  ;;  %v7485_v63 = vpop.f32.mrb[59].mxu0 }
 0x2ac   :  { %v8547_v63 = vpop.permute.xlu1 %2737 }
 0x2ad   :  { %v5275_v2 = vsel %vm680_vm3, %v8533_v60, -inf }
 0x2ae   :  { %v5441_v3 = vpop.f32.mrb[60].mxu0  ;;  %5276 = vmax.xlane.f32.xlu0 %v5275_v2 }
 0x2af   :  { %v8537_v10 = vmul.f32 0.5, %v5441_v3  ;;  %v7495_v13 = vpop.f32.mrb[61].mxu0 }
 0x2b1   :  { %v5446_v29 = vsel %vm680_vm3, %v8537_v10, -inf }
 0x2b2   :  { %v5612_v35 = vpop.f32.mrb[62].mxu0  ;;  %5447 = vmax.xlane.f32.xlu0 %v5446_v29 }
 0x2b3   :  { %v8543_v38 = vmul.f32 0.5, %v5612_v35  ;;  %v7505_v46 = vpop.f32.mrb[63].mxu0  ;;  %v8555_v35 = vpop.permute.xlu1 %2908 }
 0x2b5   :  { %v5617_v48 = vsel %vm680_vm3, %v8543_v38, -inf }
 0x2b6   :  { %v5783_v53 = vpop.f32.mrb[64].mxu0  ;;  %5618 = vmax.xlane.f32.xlu0 %v5617_v48 }
 0x2b7   :  { %v8549_v2 = vmul.f32 0.5, %v5783_v53  ;;  %v7515_v3 = vpop.f32.mrb[65].mxu0  ;;  %v8559_v48 = vpop.permute.xlu1 %3079 }
 0x2b8   :  { %9121 = vst [vmem:[#allocation18_spill] sm:$0xff] %v8559_v48 }
 0x2b9   :  { %v5788_v13 = vsel %vm680_vm3, %v8549_v2, -inf }
 0x2ba   :  { %v5954_v18 = vpop.f32.mrb[66].mxu0  ;;  %5789 = vmax.xlane.f32.xlu0 %v5788_v13 }
 0x2bb   :  { %v8553_v17 = vmul.f32 0.5, %v5954_v18  ;;  %v7525_v29 = vpop.f32.mrb[67].mxu0  ;;  %v8561_v45 = vpop.permute.xlu1 %3250 }
 0x2bc   :  { %9122 = vst [vmem:[#allocation19_spill] sm:$0xff] %v8561_v45 }
 0x2bd   :  { %v5959_v46 = vsel %vm680_vm3, %v8553_v17, -inf }
 0x2be   :  { %5960 = vmax.xlane.f32.xlu0 %v5959_v46 }
 0x2bf   :  { %v8563_v53 = vpop.permute.xlu1 %4439 }
 0x2c0   :  { %9123 = vst [vmem:[#allocation20_spill] sm:$0xff] %v8563_v53 }
 0x2d3   :  { %v847_v3 = vpop.xlane.xlu1 %846 }
 0x2d4   :  { %v848_v14 = vsub.f32 %v8402_v28, %v847_v3 }
 0x2d6   :  { %v849_v16 = vmul.f32 1.442695, %v848_v14 }
 0x2d7   :  { %v1020_v13 = vpop.xlane.xlu0 %1019 }
 0x2d8   :  { %7729 = vpow2.f32 %v849_v16  ;;  %v1021_v18 = vsub.f32 %v8406_v32, %v1020_v13 }
 0x2da   :  { %v1022_v29 = vmul.f32 1.442695, %v1021_v18 }
 0x2db   :  { %v1192_v12 = vpop.xlane.xlu0 %1191 }
 0x2dc   :  { %7731 = vpow2.f32 %v1022_v29  ;;  %v1193_v15 = vsub.f32 %v8412_v37, %v1192_v12 }
 0x2de   :  { %v1194_v46 = vmul.f32 1.442695, %v1193_v15 }
 0x2df   :  { %v1364_v56 = vpop.xlane.xlu1 %1363 }
 0x2e0   :  { %7733 = vpow2.f32 %v1194_v46  ;;  %v1365_v4 = vsub.f32 %v8418_v42, %v1364_v56 }
 0x2e2   :  { %v8569_v49 = vpop.eup %7729  ;;  %v1366_v53 = vmul.f32 1.442695, %v1365_v4 }
 0x2e3   :  { %v1536_v54 = vpop.xlane.xlu0 %1535  ;;  %v851_v14 = vsel %vm680_vm3, %v8569_v49, 0.0 }
 0x2e4   :  { %7735 = vpow2.f32 %v1366_v53  ;;  %v1537_v16 = vsub.f32 %v8422_v47, %v1536_v54  ;;  %852 = vadd.xlane.f32.xlu1 %v851_v14 }
 0x2e6   :  { %v8574_v28 = vpop.eup %7731  ;;  %v1538_v32 = vmul.f32 1.442695, %v1537_v16 }
 0x2e7   :  { %v1708_v12 = vpop.xlane.xlu1 %1707  ;;  %v1024_v15 = vsel %vm680_vm3, %v8574_v28, 0.0 }
 0x2e8   :  { %7737 = vpow2.f32 %v1538_v32  ;;  %v1709_v37 = vsub.f32 %v8428_v52, %v1708_v12  ;;  %1025 = vadd.xlane.f32.xlu1 %v1024_v15 }
 0x2ea   :  { %v8579_v42 = vpop.eup %7733  ;;  %v1710_v56 = vmul.f32 1.442695, %v1709_v37 }
 0x2eb   :  { %v1880_v4 = vpop.xlane.xlu0 %1879  ;;  %v1196_v53 = vsel %vm680_vm3, %v8579_v42, 0.0 }
 0x2ec   :  { %7739 = vpow2.f32 %v1710_v56  ;;  %v1881_v47 = vsub.f32 %v8434_v57, %v1880_v4  ;;  %1197 = vadd.xlane.f32.xlu1 %v1196_v53 }
 0x2ee   :  { %v8584_v54 = vpop.eup %7735  ;;  %v1882_v3 = vmul.f32 1.442695, %v1881_v47 }
 0x2ef   :  { %v2050_v13 = vpop.xlane.xlu1 %2049  ;;  %v1368_v18 = vsel %vm680_vm3, %v8584_v54, 0.0 }
 0x2f0   :  { %7741 = vpow2.f32 %v1882_v3  ;;  %v2051_v52 = vsub.f32 %v8438_v62, %v2050_v13  ;;  %1369 = vadd.xlane.f32.xlu1 %v1368_v18 }
 0x2f2   :  { %v8589_v29 = vpop.eup %7737  ;;  %v2052_v46 = vmul.f32 1.442695, %v2051_v52 }
 0x2f3   :  { %v2214_v14 = vpop.xlane.xlu0 %2213  ;;  %v1540_v16 = vsel %vm680_vm3, %v8589_v29, 0.0 }
 0x2f4   :  { %7743 = vpow2.f32 %v2052_v46  ;;  %v2215_v57 = vsub.f32 %v8443_v7, %v2214_v14  ;;  %1541 = vadd.xlane.f32.xlu1 %v1540_v16 }
 0x2f6   :  { %v8594_v32 = vpop.eup %7739  ;;  %v2216_v12 = vmul.f32 1.442695, %v2215_v57 }
 0x2f7   :  { %v2386_v15 = vpop.xlane.xlu1 %2385  ;;  %v1712_v37 = vsel %vm680_vm3, %v8594_v32, 0.0 }
 0x2f8   :  { %7745 = vpow2.f32 %v2216_v12  ;;  %v2387_v62 = vsub.f32 %v8447_v11, %v2386_v15  ;;  %1713 = vadd.xlane.f32.xlu1 %v1712_v37 }
 0x2fa   :  { %v8599_v56 = vpop.eup %7741  ;;  %v2388_v4 = vmul.f32 1.442695, %v2387_v62 }
 0x2fb   :  { %v2557_v53 = vpop.xlane.xlu0 %2556  ;;  %v1884_v47 = vsel %vm680_vm3, %v8599_v56, 0.0 }
 0x2fc   :  { %7747 = vpow2.f32 %v2388_v4  ;;  %v2558_v7 = vsub.f32 %v8451_v20, %v2557_v53  ;;  %1885 = vadd.xlane.f32.xlu1 %v1884_v47  ;;  %v9124_v4 = vmov 0.0  }
 0x2fd   :  { %v689_v3 = vpop.xlane.xlu1 %688 }
 0x2fe   :  { %v8604_v13 = vpop.eup %7743  ;;  %v2559_v18 = vmul.f32 1.442695, %v2558_v7  ;;  %7749 = vrcp.f32 %v689_v3 }
 0x2ff   :  { %v2054_v11 = vsel %vm680_vm3, %v8604_v13, 0.0 }
 0x300   :  { %7751 = vpow2.f32 %v2559_v18  ;;  %2055 = vadd.xlane.f32.xlu0 %v2054_v11 }
 0x301   :  { %v2728_v52 = vpop.xlane.xlu1 %2727 }
 0x302   :  { %v8608_v46 = vpop.eup %7745  ;;  %v2729_v14 = vsub.f32 %v8457_v30, %v2728_v52 }
 0x303   :  { %v2218_v16 = vsel %vm680_vm3, %v8608_v46, 0.0  ;;  %v2899_v47 = vpop.xlane.xlu0 %2898 }
 0x304   :  { %v2730_v20 = vmul.f32 1.442695, %v2729_v14  ;;  %2219 = vadd.xlane.f32.xlu1 %v2218_v16  ;;  %v2900_v52 = vsub.f32 %v8461_v36, %v2899_v47 }
 0x306   :  { %v8613_v57 = vpop.eup %7747  ;;  %7753 = vpow2.f32 %v2730_v20  ;;  %v2901_v20 = vmul.f32 1.442695, %v2900_v52 }
 0x307   :  { %v2390_v12 = vsel %vm680_vm3, %v8613_v57, 0.0  ;;  %v3070_v16 = vpop.xlane.xlu1 %3069 }
 0x308   :  { %v7750_v15 = vpop.eup %7749  ;;  %2391 = vadd.xlane.f32.xlu0 %v2390_v12  ;;  %7755 = vpow2.f32 %v2901_v20 }
 0x309   :  { %v691_v37 = vmul.f32 %v7750_v15, %v8455_v26 }
 0x30a   :  { %v8618_v62 = vpop.eup %7751 }
 0x30b   :  { %7219 = vmatmul.mubr.msk.f32.vlgmr.msra.gmra.mrb[8].mxu1 %vm680_vm3, %v691_v37  ;;  %v2561_v30 = vsel %vm680_vm3, %v8618_v62, 0.0  ;;  %v3241_v7 = vpop.xlane.xlu0 %3240  ;;  %v3071_v37 = vsub.f32 %v8467_v44, %v3070_v16 }
 0x30c   :  { %7227 = vmatpush3.msra.mxu1 %v8483_v5  ;;  %2562 = vadd.xlane.f32.xlu1 %v2561_v30  ;;  %v3242_v12 = vsub.f32 %v8471_v51, %v3241_v7 }
 0x30d   :  { %7228 = vmatprep.mubr.msk.f32.mxu1 %vm7885_vm1, %v9124_v4  ;;  %7236 = vmatprep.subr.mxu1 %v9124_v4  ;;  %v3072_v48 = vmul.f32 1.442695, %v3071_v37 }
 0x30f   :  { %v3410_v30 = vpop.xlane.xlu1 %3409 }
 0x310   :  { %v8627_v53 = vpop.eup %7753 }
 0x311   :  { %v2732_v26 = vsel %vm680_vm3, %v8627_v53, 0.0 }
 0x312   :  { %2733 = vadd.xlane.f32.xlu0 %v2732_v26  ;;  %v3243_v26 = vmul.f32 1.442695, %v3242_v12 }
 0x313   :  { %v3574_v3 = vpop.xlane.xlu0 %3573 }
 0x314   :  { %7757 = vpow2.f32 %v3243_v26  ;;  %v3575_v7 = vsub.f32 %v8479_v1, %v3574_v3 }
 0x315   :  { %7759 = vpow2.f32 %v3072_v48 }
 0x317   :  { %v3746_v44 = vpop.xlane.xlu1 %3745 }
 0x31b   :  { %v3917_v18 = vpop.xlane.xlu0 %3916 }
 0x31c   :  { %v3918_v3 = vsub.f32 %v8489_v6, %v3917_v18 }
 0x31d   :  { %4944 = vrot.lane.b32.xlu1 %v8073_v0, %s7887_s21 }
 0x323   :  { %v8633_v5 = vpop.xlane.xlu0 %4258 }
 0x327   :  { %v8635_v11 = vpop.xlane.xlu0 %4429 }
 0x328   :  { %4610 = vrot.lane.b32.xlu0 %v8057_v58, %s7892_s13  ;;  %v3411_v58 = vsub.f32 %v8475_v59, %v3410_v30  ;;  %v3576_v59 = vmul.f32 1.442695, %v3575_v7 }
 0x32a   :  { %v3412_v51 = vmul.f32 1.442695, %v3411_v58 }
 0x32b   :  { %v4601_v14 = vpop.xlane.xlu0 %4600 }
 0x32c   :  { %v4602_v41 = vsub.f32 %v8511_v61, %v4601_v14  ;;  %v8651_v14 = vpop.eup %7755 }
 0x32d   :  { %v2903_v58 = vsel %vm680_vm3, %v8651_v14, 0.0  ;;  %v8658_v1 = vpop.eup %7757 }
 0x32e   :  { %v4603_v36 = vmul.f32 1.442695, %v4602_v41  ;;  %v3747_v41 = vsub.f32 %v8485_v8, %v3746_v44  ;;  %v8661_v12 = vpop.eup %7759  ;;  %v3245_v30 = vsel %vm680_vm3, %v8658_v1, 0.0 }
 0x32f   :  { %v8641_v15 = vpop.xlane.xlu0 %4769  ;;  %v3074_v6 = vsel %vm680_vm3, %v8661_v12, 0.0 }
 0x330   :  { %7761 = vpow2.f32 %v4603_v36  ;;  %v3748_v48 = vmul.f32 1.442695, %v3747_v41  ;;  %v3919_v36 = vmul.f32 1.442695, %v3918_v3  ;;  %v4771_v3 = vsub.f32 %v8517_v9, %v8641_v15 }
 0x331   :  { %7763 = vpow2.f32 %v3412_v51 }
 0x333   :  { %v4934_v45 = vpop.xlane.xlu0 %4933 }
 0x334   :  { %v4935_v47 = vsub.f32 %v8521_v22, %v4934_v45 }
 0x336   :  { %v4936_v16 = vmul.f32 1.442695, %v4935_v47 }
 0x337   :  { %v8647_v52 = vpop.xlane.xlu0 %5105 }
 0x338   :  { %7765 = vpow2.f32 %v4936_v16  ;;  %v4260_v16 = vsub.f32 %v8501_v40, %v8633_v5 }
 0x339   :  { %7767 = vpow2.f32 %v3576_v59 }
 0x33a   :  { %v8666_v26 = vpop.eup %7761  ;;  %v4261_v41 = vmul.f32 1.442695, %v4260_v16 }
 0x33b   :  { %v5277_v20 = vpop.xlane.xlu0 %5276  ;;  %v8671_v18 = vpop.eup %7763 }
 0x33c   :  { %v5278_v61 = vsub.f32 %v8533_v60, %v5277_v20  ;;  %v4088_v60 = vpop.xlane.xlu1 %4087 }
 0x33d   :  { %v4089_v47 = vsub.f32 %v8495_v31, %v4088_v60  ;;  %v3414_v31 = vsel %vm680_vm3, %v8671_v18, 0.0 }
 0x33e   :  { %v5279_v45 = vmul.f32 1.442695, %v5278_v61 }
 0x33f   :  { %v8654_v22 = vpop.xlane.xlu0 %5447  ;;  %v4090_v44 = vmul.f32 1.442695, %v4089_v47 }
 0x340   :  { %7769 = vpow2.f32 %v5279_v45  ;;  %v4431_v45 = vsub.f32 %v8505_v50, %v8635_v11  ;;  %v5449_v47 = vsub.f32 %v8537_v10, %v8654_v22 }
 0x341   :  { %2904 = vadd.xlane.f32.xlu1 %v2903_v58  ;;  %7771 = vpow2.f32 %v3748_v48 }
 0x342   :  { %v8675_v7 = vpop.eup %7765  ;;  %v4432_v48 = vmul.f32 1.442695, %v4431_v45 }
 0x343   :  { %v5619_v37 = vpop.xlane.xlu0 %5618  ;;  %v8681_v20 = vpop.eup %7767  ;;  %v4938_v61 = vsel %vm680_vm3, %v8675_v7, 0.0 }
 0x344   :  { %v5620_v8 = vsub.f32 %v8543_v38, %v5619_v37  ;;  %v4605_v38 = vsel %vm680_vm3, %v8666_v26, 0.0  ;;  %v3578_v40 = vsel %vm680_vm3, %v8681_v20, 0.0 }
 0x345   :  { %3246 = vadd.xlane.f32.xlu1 %v3245_v30  ;;  %v5107_v30 = vsub.f32 %v8527_v43, %v8647_v52  ;;  %v5450_v43 = vmul.f32 1.442695, %v5449_v47 }
 0x346   :  { %v5621_v51 = vmul.f32 1.442695, %v5620_v8  ;;  %v4772_v8 = vmul.f32 1.442695, %v4771_v3 }
 0x347   :  { %3075 = vadd.xlane.f32.xlu0 %v3074_v6 }
 0x348   :  { %7773 = vpow2.f32 %v5621_v51  ;;  %v5790_v51 = vpop.xlane.xlu0 %5789 }
 0x349   :  { %7775 = vpow2.f32 %v3919_v36  ;;  %4606 = vadd.xlane.f32.xlu1 %v4605_v38  ;;  %v5108_v36 = vmul.f32 1.442695, %v5107_v30  ;;  %v5791_v52 = vsub.f32 %v8549_v2, %v5790_v51 }
 0x34a   :  { %v8685_v59 = vpop.eup %7769  ;;  %7777 = vpow2.f32 %v4090_v44 }
 0x34b   :  { %3415 = vadd.xlane.f32.xlu0 %v3414_v31  ;;  %v8691_v5 = vpop.eup %7771  ;;  %v5281_v58 = vsel %vm680_vm3, %v8685_v59, 0.0  ;;  %7779 = vpow2.f32 %v4261_v41  ;;  %v5792_v31 = vmul.f32 1.442695, %v5791_v52 }
 0x34c   :  { %v3750_v50 = vsel %vm680_vm3, %v8691_v5, 0.0  ;;  %7781 = vpow2.f32 %v4432_v48  ;;  %v5961_v30 = vpop.xlane.xlu0 %5960 }
 0x34d   :  { %4939 = vadd.xlane.f32.xlu1 %v4938_v61  ;;  %7783 = vpow2.f32 %v4772_v8  ;;  %v5962_v51 = vsub.f32 %v8553_v17, %v5961_v30 }
 0x34e   :  { %7785 = vpow2.f32 %v5108_v36 }
 0x34f   :  { %3579 = vadd.xlane.f32.xlu0 %v3578_v40  ;;  %7787 = vpow2.f32 %v5450_v43  ;;  %v5963_v52 = vmul.f32 1.442695, %v5962_v51 }
 0x350   :  { %7789 = vpow2.f32 %v5792_v31 }
 0x351   :  { %5282 = vadd.xlane.f32.xlu1 %v5281_v58 }
 0x352   :  { %v8697_v60 = vpop.eup %7773 }
 0x353   :  { %v8701_v11 = vpop.eup %7775  ;;  %3751 = vadd.xlane.f32.xlu0 %v3750_v50  ;;  %v5623_v37 = vsel %vm680_vm3, %v8697_v60, 0.0 }
 0x354   :  { %v3921_v9 = vsel %vm680_vm3, %v8701_v11, 0.0  ;;  %v8709_v15 = vpop.eup %7777 }
 0x355   :  { %5624 = vadd.xlane.f32.xlu1 %v5623_v37  ;;  %v4092_v6 = vsel %vm680_vm3, %v8709_v15, 0.0  ;;  %v8715_v38 = vpop.eup %7779 }
 0x356   :  { %v4263_v44 = vsel %vm680_vm3, %v8715_v38, 0.0  ;;  %v8720_v16 = vpop.eup %7781 }
 0x357   :  { %3922 = vadd.xlane.f32.xlu0 %v3921_v9  ;;  %v4434_v10 = vsel %vm680_vm3, %v8720_v16, 0.0  ;;  %v8724_v22 = vpop.eup %7783 }
 0x358   :  { %v4774_v2 = vsel %vm680_vm3, %v8724_v22, 0.0  ;;  %v8730_v61 = vpop.eup %7785 }
 0x359   :  { %v5110_v41 = vsel %vm680_vm3, %v8730_v61, 0.0  ;;  %v8736_v45 = vpop.eup %7787 }
 0x35a   :  { %v5452_v40 = vsel %vm680_vm3, %v8736_v45, 0.0  ;;  %v8742_v58 = vpop.eup %7789 }
 0x35b   :  { %4093 = vadd.xlane.f32.xlu0 %v4092_v6  ;;  %v5794_v3 = vsel %vm680_vm3, %v8742_v58, 0.0 }
 0x35f   :  { %4264 = vadd.xlane.f32.xlu0 %v4263_v44 }
 0x363   :  { %4435 = vadd.xlane.f32.xlu0 %v4434_v10 }
 0x366   :  { %5286 = vrot.lane.b32.xlu1 %v8073_v0, %s7888_s8 }
 0x367   :  { %4775 = vadd.xlane.f32.xlu0 %v4774_v2 }
 0x36a   :  { %5457 = vrot.lane.b32.xlu1 %v8073_v0, %s7889_s24 }
 0x36b   :  { %5111 = vadd.xlane.f32.xlu0 %v5110_v41 }
 0x36e   :  { %5628 = vrot.lane.b32.xlu1 %v8073_v0, %s7890_s28 }
 0x36f   :  { %5453 = vadd.xlane.f32.xlu0 %v5452_v40 }
 0x371   :  { %v853_v48 = vpop.xlane.xlu1 %852 }
 0x372   :  { %7791 = vrcp.f32 %v853_v48  ;;  %5799 = vrot.lane.b32.xlu1 %v8073_v0, %s7891_s29 }
 0x373   :  { %5795 = vadd.xlane.f32.xlu0 %v5794_v3 }
 0x375   :  { %v1026_v50 = vpop.xlane.xlu1 %1025 }
 0x376   :  { %7793 = vrcp.f32 %v1026_v50 }
 0x379   :  { %v1198_v37 = vpop.xlane.xlu1 %1197 }
 0x37a   :  { %7795 = vrcp.f32 %v1198_v37 }
 0x37c   :  { %v7792_v8 = vpop.eup %7791 }
 0x37d   :  { %v855_v9 = vmul.f32 %v7792_v8, %v8569_v49  ;;  %v1370_v36 = vpop.xlane.xlu1 %1369 }
 0x37e   :  { %7797 = vrcp.f32 %v1370_v36  ;;  %v9125_v36 = vld [vmem:[#allocation18_spill] sm:$0xff] }
 0x37f   :  { %7229 = vmatmul.mubr.msk.f32.vlgmr.msra.gmra.mrb[10].mxu1 %vm680_vm3, %v855_v9 }
 0x380   :  { %v7794_v47 = vpop.eup %7793  ;;  %7237 = vmatpush3.msra.mxu1 %v8396_v23  ;;  %7238 = vmatprep.mubr.msk.f32.mxu1 %vm7885_vm1, %v9124_v4 }
 0x381   :  { %v1028_v6 = vmul.f32 %v7794_v47, %v8574_v28  ;;  %v1542_v43 = vpop.xlane.xlu1 %1541  ;;  %7246 = vmatprep.subr.mxu1 %v9124_v4 }
 0x382   :  { %7799 = vrcp.f32 %v1542_v43 }
 0x383   :  { %7239 = vmatmul.mubr.msk.f32.vlgmr.msra.gmra.mrb[12].mxu1 %vm680_vm3, %v1028_v6 }
 0x384   :  { %v7796_v49 = vpop.eup %7795  ;;  %7247 = vmatpush3.msra.mxu1 %v8491_v21  ;;  %7248 = vmatprep.mubr.msk.f32.mxu1 %vm7885_vm1, %v9124_v4 }
 0x385   :  { %v1200_v17 = vmul.f32 %v7796_v49, %v8579_v42  ;;  %v1714_v23 = vpop.xlane.xlu1 %1713  ;;  %7256 = vmatprep.subr.mxu1 %v9124_v4 }
 0x386   :  { %7801 = vrcp.f32 %v1714_v23 }
 0x387   :  { %7249 = vmatmul.mubr.msk.f32.vlgmr.msra.gmra.mrb[14].mxu1 %vm680_vm3, %v1200_v17  ;;  %7803 = vpow2.f32 %v5963_v52  ;;  %v9126_v52 = vld [vmem:[#allocation19_spill] sm:$0xff] }
 0x388   :  { %v7798_v28 = vpop.eup %7797  ;;  %7257 = vmatpush3.msra.mxu1 %v8398_v24  ;;  %7258 = vmatprep.mubr.msk.f32.mxu1 %vm7885_vm1, %v9124_v4 }
 0x389   :  { %v1372_v21 = vmul.f32 %v7798_v28, %v8584_v54  ;;  %v1886_v44 = vpop.xlane.xlu1 %1885  ;;  %5115 = vrot.lane.b32.xlu0 %v8073_v0, %s7886_s20  ;;  %7266 = vmatprep.subr.mxu1 %v9124_v4 }
 0x38a   :  { %7805 = vrcp.f32 %v1886_v44 }
 0x38b   :  { %7259 = vmatmul.mubr.msk.f32.vlgmr.msra.gmra.mrb[16].mxu1 %vm680_vm3, %v1372_v21 }
 0x38c   :  { %v7800_v42 = vpop.eup %7799  ;;  %7267 = vmatpush3.msra.mxu1 %v8400_v27  ;;  %7268 = vmatprep.mubr.msk.f32.mxu1 %vm7885_vm1, %v9124_v4 }
 0x38d   :  { %v1544_v24 = vmul.f32 %v7800_v42, %v8589_v29  ;;  %v2056_v31 = vpop.xlane.xlu0 %2055  ;;  %7276 = vmatprep.subr.mxu1 %v9124_v4 }
 0x38e   :  { %7807 = vrcp.f32 %v2056_v31 }
 0x38f   :  { %7269 = vmatmul.mubr.msk.f32.vlgmr.msra.gmra.mrb[18].mxu1 %vm680_vm3, %v1544_v24 }
 0x390   :  { %v7802_v54 = vpop.eup %7801  ;;  %7277 = vmatpush3.msra.mxu1 %v8499_v39  ;;  %7278 = vmatprep.mubr.msk.f32.mxu1 %vm7885_vm1, %v9124_v4 }
 0x391   :  { %v1716_v10 = vmul.f32 %v7802_v54, %v8594_v32  ;;  %v2220_v27 = vpop.xlane.xlu1 %2219  ;;  %7286 = vmatprep.subr.mxu1 %v9124_v4  ;;  %v8782_v2 = vpop.eup %7803 }
 0x392   :  { %7809 = vrcp.f32 %v2220_v27  ;;  %v5965_v32 = vsel %vm680_vm3, %v8782_v2, 0.0 }
 0x393   :  { %7279 = vmatmul.mubr.msk.f32.vlgmr.msra.gmra.mrb[20].mxu1 %vm680_vm3, %v1716_v10 }
 0x394   :  { %v7806_v29 = vpop.eup %7805  ;;  %7287 = vmatpush3.msra.mxu1 %v8408_v34  ;;  %7288 = vmatprep.mubr.msk.f32.mxu1 %vm7885_vm1, %v9124_v4 }
 0x395   :  { %v1888_v39 = vmul.f32 %v7806_v29, %v8599_v56  ;;  %v2392_v41 = vpop.xlane.xlu0 %2391  ;;  %7296 = vmatprep.subr.mxu1 %v9124_v4 }
 0x396   :  { %7811 = vrcp.f32 %v2392_v41  ;;  %5966 = vadd.xlane.f32.xlu1 %v5965_v32 }
 0x397   :  { %7289 = vmatmul.mubr.msk.f32.vlgmr.msra.gmra.mrb[22].mxu1 %vm680_vm3, %v1888_v39 }
 0x398   :  { %v7808_v40 = vpop.eup %7807  ;;  %7297 = vmatpush3.msra.mxu1 %v8223_v25  ;;  %7298 = vmatprep.mubr.msk.f32.mxu1 %vm7885_vm1, %v9124_v4 }
 0x399   :  { %v2058_v34 = vmul.f32 %v7808_v40, %v8604_v13  ;;  %v2563_v48 = vpop.xlane.xlu1 %2562  ;;  %7306 = vmatprep.subr.mxu1 %v9124_v4 }
 0x39a   :  { %7813 = vrcp.f32 %v2563_v48 }
 0x39b   :  { %7299 = vmatmul.mubr.msk.f32.vlgmr.msra.gmra.mrb[24].mxu1 %vm680_vm3, %v2058_v34 }
 0x39c   :  { %v7810_v56 = vpop.eup %7809  ;;  %7307 = vmatpush3.msra.mxu1 %v8523_v33  ;;  %7308 = vmatprep.mubr.msk.f32.mxu1 %vm7885_vm1, %v9124_v4 }
 0x39d   :  { %v2222_v3 = vmul.f32 %v7810_v56, %v8608_v46  ;;  %7316 = vmatprep.subr.mxu1 %v9124_v4 }
 0x39f   :  { %7309 = vmatmul.mubr.msk.f32.vlgmr.msra.gmra.mrb[26].mxu1 %vm680_vm3, %v2222_v3  ;;  %v2734_v25 = vpop.xlane.xlu0 %2733 }
 0x3a0   :  { %v7812_v13 = vpop.eup %7811  ;;  %7317 = vmatpush3.msra.mxu1 %v8531_v55  ;;  %7815 = vrcp.f32 %v2734_v25  ;;  %7318 = vmatprep.mubr.msk.f32.mxu1 %vm7885_vm1, %v9124_v4 }
 0x3a1   :  { %v2394_v50 = vmul.f32 %v7812_v13, %v8613_v57  ;;  %7326 = vmatprep.subr.mxu1 %v9124_v4  ;;  %v8829_v57 = vpop.permute.xlu1 %4944 }
 0x3a3   :  { %7319 = vmatmul.mubr.msk.f32.vlgmr.msra.gmra.mrb[28].mxu1 %vm680_vm3, %v2394_v50 }
 0x3a4   :  { %v7814_v33 = vpop.eup %7813  ;;  %7327 = vmatpush3.msra.mxu1 %v8539_v19  ;;  %7328 = vmatprep.mubr.msk.f32.mxu1 %vm7885_vm1, %v9124_v4 }
 0x3a5   :  { %v2565_v46 = vmul.f32 %v7814_v33, %v8618_v62  ;;  %7336 = vmatprep.subr.mxu1 %v9124_v4  ;;  %v8831_v62 = vpop.permute.xlu0 %4610 }
 0x3a7   :  { %5970 = vrot.lane.b32.xlu1 %v8073_v0, %s7892_s13  ;;  %7329 = vmatmul.mubr.msk.f32.vlgmr.msra.gmra.mrb[30].mxu1 %vm680_vm3, %v2565_v46 }
 0x3a8   :  { %7337 = vmatpush3.msra.mxu1 %v8547_v63  ;;  %7338 = vmatprep.mubr.msk.f32.mxu1 %vm7885_vm1, %v9124_v4 }
 0x3a9   :  { %7346 = vmatprep.subr.mxu1 %v9124_v4 }
 0x3aa   :  { %v7816_v55 = vpop.eup %7815 }
 0x3ab   :  { %v2736_v19 = vmul.f32 %v7816_v55, %v8627_v53 }
 0x3ad   :  { %7339 = vmatmul.mubr.msk.f32.vlgmr.msra.gmra.mrb[32].mxu1 %vm680_vm3, %v2736_v19 }
 0x3ae   :  { %7347 = vmatpush3.msra.mxu1 %v8555_v35  ;;  %7348 = vmatprep.mubr.msk.f32.mxu1 %vm7885_vm1, %v9124_v4 }
 0x3af   :  { %7356 = vmatprep.subr.mxu1 %v9124_v4 }
 0x3ce   :  { %v2905_v63 = vpop.xlane.xlu1 %2904 }
 0x3cf   :  { %7817 = vrcp.f32 %v2905_v63 }
 0x3d2   :  { %v3247_v37 = vpop.xlane.xlu1 %3246 }
 0x3d4   :  { %v3076_v8 = vpop.xlane.xlu0 %3075 }
 0x3d5   :  { %7819 = vrcp.f32 %v3076_v8 }
 0x3d6   :  { %7821 = vrcp.f32 %v3247_v37  ;;  %v4607_v39 = vpop.xlane.xlu1 %4606 }
 0x3d8   :  { %v3416_v53 = vpop.xlane.xlu0 %3415 }
 0x3d9   :  { %v7818_v30 = vpop.eup %7817  ;;  %7823 = vrcp.f32 %v3416_v53 }
 0x3da   :  { %v2907_v9 = vmul.f32 %v7818_v30, %v8651_v14  ;;  %v4940_v56 = vpop.xlane.xlu1 %4939 }
 0x3dc   :  { %7349 = vmatmul.mubr.msk.f32.vlgmr.msra.gmra.mrb[34].mxu1 %vm680_vm3, %v2907_v9  ;;  %v3580_v35 = vpop.xlane.xlu0 %3579 }
 0x3dd   :  { %7357 = vmatpush3.msra.mxu1 %v9125_v36  ;;  %7358 = vmatprep.mubr.msk.f32.mxu1 %vm7885_vm1, %v9124_v4  ;;  %7825 = vrcp.f32 %v3580_v35 }
 0x3de   :  { %v761_v47 = vpop.f32.mrb[8].mxu1  ;;  %7366 = vmatprep.subr.mxu1 %v9124_v4  ;;  %v5283_v50 = vpop.xlane.xlu1 %5282 }
 0x3df   :  { %v7820_v51 = vpop.eup %7819  ;;  %765 = vst.msk [vmem:[#allocation2] sm:$0xff] %vm602_vm2, %v761_v47  ;;  %v7220_v6 = vpop.f32.mrb[9].mxu1 }
 0x3e0   :  { %v3078_v43 = vmul.f32 %v7820_v51, %v8661_v12  ;;  %v3752_v14 = vpop.xlane.xlu0 %3751  ;;  %v7822_v49 = vpop.eup %7821  ;;  %v9127_v12 = vld [vmem:[#allocation12_spill] sm:$0xff] }
 0x3e1   :  { %7827 = vrcp.f32 %v3752_v14  ;;  %v3249_v17 = vmul.f32 %v7822_v49, %v8658_v1  ;;  %v9128_v1 = vld [vmem:[#allocation13_spill] sm:$0xff] }
 0x3e2   :  { %7359 = vmatmul.mubr.msk.f32.vlgmr.msra.gmra.mrb[36].mxu1 %vm680_vm3, %v3078_v43  ;;  %v5625_v63 = vpop.xlane.xlu1 %5624 }
 0x3e3   :  { %7367 = vmatpush3.msra.mxu1 %v9126_v52  ;;  %7368 = vmatprep.mubr.msk.f32.mxu1 %vm7885_vm1, %v9124_v4  ;;  %v7824_v28 = vpop.eup %7823 }
 0x3e4   :  { %v3923_v23 = vpop.xlane.xlu0 %3922  ;;  %7376 = vmatprep.subr.mxu1 %v9124_v4  ;;  %v3418_v21 = vmul.f32 %v7824_v28, %v8671_v18  ;;  %v9129_v18 = vld [vmem:[#allocation16_spill] sm:$0xff] }
 0x3e5   :  { %7829 = vrcp.f32 %v3923_v23 }
 0x3e6   :  { %7369 = vmatmul.mubr.msk.f32.vlgmr.msra.gmra.mrb[38].mxu1 %vm680_vm3, %v3249_v17 }
 0x3e7   :  { %7377 = vmatpush3.msra.mxu1 %v9127_v12  ;;  %7378 = vmatprep.mubr.msk.f32.mxu1 %vm7885_vm1, %v9124_v4  ;;  %v7826_v42 = vpop.eup %7825 }
 0x3e8   :  { %v4094_v44 = vpop.xlane.xlu0 %4093  ;;  %7386 = vmatprep.subr.mxu1 %v9124_v4  ;;  %v3582_v24 = vmul.f32 %v7826_v42, %v8681_v20  ;;  %v9130_v20 = vld [vmem:[#allocation14_spill] sm:$0xff] }
 0x3e9   :  { %7831 = vrcp.f32 %v4094_v44 }
 0x3ea   :  { %7379 = vmatmul.mubr.msk.f32.vlgmr.msra.gmra.mrb[40].mxu1 %vm680_vm3, %v3418_v21 }
 0x3eb   :  { %7387 = vmatpush3.msra.mxu1 %v9128_v1  ;;  %7388 = vmatprep.mubr.msk.f32.mxu1 %vm7885_vm1, %v9124_v4  ;;  %v7828_v54 = vpop.eup %7827 }
 0x3ec   :  { %v4265_v31 = vpop.xlane.xlu0 %4264  ;;  %7396 = vmatprep.subr.mxu1 %v9124_v4  ;;  %v3754_v10 = vmul.f32 %v7828_v54, %v8691_v5  ;;  %v9131_v5 = vld [vmem:[#allocation17_spill] sm:$0xff] }
 0x3ed   :  { %7833 = vrcp.f32 %v4265_v31 }
 0x3ee   :  { %7389 = vmatmul.mubr.msk.f32.vlgmr.msra.gmra.mrb[42].mxu1 %vm680_vm3, %v3582_v24 }
 0x3ef   :  { %7397 = vmatpush3.msra.mxu1 %v9129_v18  ;;  %7398 = vmatprep.mubr.msk.f32.mxu1 %vm7885_vm1, %v9124_v4  ;;  %v7830_v29 = vpop.eup %7829 }
 0x3f0   :  { %v4436_v27 = vpop.xlane.xlu0 %4435  ;;  %7406 = vmatprep.subr.mxu1 %v9124_v4  ;;  %v3925_v41 = vmul.f32 %v7830_v29, %v8701_v11  ;;  %v9132_v11 = vld [vmem:[#allocation15_spill] sm:$0xff] }
 0x3f1   :  { %7835 = vrcp.f32 %v4436_v27 }
 0x3f2   :  { %7399 = vmatmul.mubr.msk.f32.vlgmr.msra.gmra.mrb[44].mxu1 %vm680_vm3, %v3754_v10  ;;  %7837 = vrcp.f32 %v4607_v39 }
 0x3f3   :  { %7407 = vmatpush3.msra.mxu1 %v9130_v20  ;;  %7408 = vmatprep.mubr.msk.f32.mxu1 %vm7885_vm1, %v9124_v4  ;;  %v7832_v32 = vpop.eup %7831 }
 0x3f4   :  { %7416 = vmatprep.subr.mxu1 %v9124_v4  ;;  %v4776_v40 = vpop.xlane.xlu0 %4775  ;;  %v4096_v34 = vmul.f32 %v7832_v32, %v8709_v15  ;;  %v9133_v15 = vld [vmem:[#allocation20_spill] sm:$0xff] }
 0x3f5   :  { %7839 = vrcp.f32 %v4776_v40 }
 0x3f6   :  { %7409 = vmatmul.mubr.msk.f32.vlgmr.msra.gmra.mrb[46].mxu1 %vm680_vm3, %v3925_v41  ;;  %7841 = vrcp.f32 %v4940_v56 }
 0x3f7   :  { %7417 = vmatpush3.msra.mxu1 %v9131_v5  ;;  %7418 = vmatprep.mubr.msk.f32.mxu1 %vm7885_vm1, %v9124_v4  ;;  %v7834_v48 = vpop.eup %7833 }
 0x3f8   :  { %7426 = vmatprep.subr.mxu1 %v9124_v4  ;;  %v4267_v3 = vmul.f32 %v7834_v48, %v8715_v38  ;;  %v5112_v25 = vpop.xlane.xlu0 %5111 }
 0x3f9   :  { %7843 = vrcp.f32 %v5112_v25 }
 0x3fa   :  { %7419 = vmatmul.mubr.msk.f32.vlgmr.msra.gmra.mrb[48].mxu1 %vm680_vm3, %v4096_v34  ;;  %7845 = vrcp.f32 %v5283_v50 }
 0x3fb   :  { %7427 = vmatpush3.msra.mxu1 %v9132_v11  ;;  %7428 = vmatprep.mubr.msk.f32.mxu1 %vm7885_vm1, %v9124_v4  ;;  %v7836_v13 = vpop.eup %7835 }
 0x3fc   :  { %7436 = vmatprep.subr.mxu1 %v9124_v4  ;;  %v4438_v33 = vmul.f32 %v7836_v13, %v8720_v16  ;;  %v7838_v46 = vpop.eup %7837  ;;  %v5454_v55 = vpop.xlane.xlu0 %5453 }
 0x3fd   :  { %v4609_v38 = vmul.f32 %v7838_v46, %v8666_v26  ;;  %7847 = vrcp.f32 %v5454_v55 }
 0x3fe   :  { %7429 = vmatmul.mubr.msk.f32.vlgmr.msra.gmra.mrb[50].mxu1 %vm680_vm3, %v4267_v3  ;;  %7849 = vrcp.f32 %v5625_v63 }
 0x3ff   :  { %7437 = vmatpush3.msra.mxu1 %v9133_v15  ;;  %7438 = vmatprep.mubr.msk.f32.mxu1 %vm7885_vm1, %v9124_v4  ;;  %v7840_v19 = vpop.eup %7839 }
 0x400   :  { %7446 = vmatprep.subr.mxu1 %v9124_v4  ;;  %v4778_v16 = vmul.f32 %v7840_v19, %v8724_v22  ;;  %v7842_v37 = vpop.eup %7841 }
 0x401   :  { %v4942_v26 = vmul.f32 %v7842_v37, %v8675_v7 }
 0x402   :  { %7439 = vmatmul.mubr.msk.f32.vlgmr.msra.gmra.mrb[52].mxu1 %vm680_vm3, %v4438_v33 }
 0x403   :  { %7447 = vmatpush3.msra.mxu1 %v8831_v62  ;;  %7448 = vmatprep.mubr.msk.f32.mxu1 %vm7885_vm1, %v9124_v4  ;;  %v5796_v62 = vpop.xlane.xlu0 %5795  ;;  %v7844_v8 = vpop.eup %7843 }
 0x404   :  { %7456 = vmatprep.subr.mxu1 %v9124_v4  ;;  %v5114_v22 = vmul.f32 %v7844_v8, %v8730_v61  ;;  %7851 = vrcp.f32 %v5796_v62  ;;  %v6055_v62 = vld [vmem:[#allocation5 + $0x68] sm:$0xff]  ;;  %v6056_v8 = vld [vmem:[#allocation5 + $0x70] sm:$0xff] }
 0x406   :  { %7449 = vmatmul.mubr.msk.f32.vlgmr.msra.gmra.mrb[54].mxu1 %vm680_vm3, %v4609_v38 }
 0x407   :  { %7457 = vmatpush3.msra.mxu1 %v8073_v0  ;;  %7458 = vmatprep.mubr.msk.f32.mxu1 %vm7885_vm1, %v9124_v4  ;;  %v5287_v0 = vpop.permute.xlu1 %5286  ;;  %v5116_v53 = vpop.permute.xlu0 %5115 }
 0x408   :  { %7466 = vmatprep.subr.mxu1 %v9124_v4 }
 0x40a   :  { %7459 = vmatmul.mubr.msk.f32.vlgmr.msra.gmra.mrb[56].mxu1 %vm680_vm3, %v4778_v16  ;;  %v6054_v16 = vld [vmem:[#allocation5 + $0x60] sm:$0xff] }
 0x40b   :  { %7467 = vmatpush3.msra.mxu1 %v8829_v57  ;;  %7468 = vmatprep.mubr.msk.f32.mxu1 %vm7885_vm1, %v9124_v4  ;;  %v7846_v57 = vpop.eup %7845  ;;  %v5458_v30 = vpop.permute.xlu1 %5457  ;;  %v7662_v37 = vpack.c.bf16 %v6055_v62, %v6054_v16 }
 0x40c   :  { %7476 = vmatprep.subr.mxu1 %v9124_v4  ;;  %v5285_v7 = vmul.f32 %v7846_v57, %v8685_v59  ;;  %v7848_v9 = vpop.eup %7847 }
 0x40d   :  { %v5456_v35 = vmul.f32 %v7848_v9, %v8736_v45  ;;  %v7850_v36 = vpop.eup %7849  ;;  %7663 = vmatprep.subr.bf16.mxu0 %v7662_v37 }
 0x40e   :  { %7469 = vmatmul.mubr.msk.f32.vlgmr.msra.gmra.mrb[58].mxu1 %vm680_vm3, %v4942_v26  ;;  %v5627_v59 = vmul.f32 %v7850_v36, %v8697_v60  ;;  %v7852_v47 = vpop.eup %7851  ;;  %7665 = vmatpush3.bf16.msra.mxu0 %v7662_v37 }
 0x40f   :  { %7477 = vmatpush3.msra.mxu1 %v5116_v53  ;;  %7478 = vmatprep.mubr.msk.f32.mxu1 %vm7885_vm1, %v9124_v4  ;;  %v5629_v61 = vpop.permute.xlu1 %5628  ;;  %v5798_v45 = vmul.f32 %v7852_v47, %v8742_v58  ;;  %v6057_v53 = vld [vmem:[#allocation5 + $0x78] sm:$0xff] }
 0x410   :  { %7486 = vmatprep.subr.mxu1 %v9124_v4  ;;  %v7666_v57 = vpack.c.bf16 %v6057_v53, %v6056_v8  ;;  %v9135_v8 = vld [vmem:[#allocation8_spill] sm:$0xff] }
 0x412   :  { %7479 = vmatmul.mubr.msk.f32.vlgmr.msra.gmra.mrb[60].mxu1 %vm680_vm3, %v5114_v22  ;;  %7667 = vmatprep.subr.bf16.mxu0 %v7666_v57 }
 0x413   :  { %7487 = vmatpush3.msra.mxu1 %v5287_v0  ;;  %7488 = vmatprep.mubr.msk.f32.mxu1 %vm7885_vm1, %v9124_v4  ;;  %v5800_v51 = vpop.permute.xlu1 %5799 }
 0x414   :  { %7496 = vmatprep.subr.mxu1 %v9124_v4  ;;  %7669 = vmatpush3.bf16.msra.mxu0 %v7666_v57  ;;  %v9138_v57 = vld [vmem:[#allocation9_spill] sm:$0xff] }
 0x416   :  { %7489 = vmatmul.mubr.msk.f32.vlgmr.msra.gmra.mrb[62].mxu1 %vm680_vm3, %v5285_v7 }
 0x417   :  { %7497 = vmatpush3.msra.mxu1 %v5458_v30  ;;  %7498 = vmatprep.mubr.msk.f32.mxu1 %vm7885_vm1, %v9124_v4 }
 0x418   :  { %7506 = vmatprep.subr.mxu1 %v9124_v4 }
 0x41a   :  { %7499 = vmatmul.mubr.msk.f32.vlgmr.msra.gmra.mrb[64].mxu1 %vm680_vm3, %v5456_v35 }
 0x41b   :  { %7507 = vmatpush3.msra.mxu1 %v5629_v61  ;;  %7508 = vmatprep.mubr.msk.f32.mxu1 %vm7885_vm1, %v9124_v4 }
 0x41c   :  { %7516 = vmatprep.subr.mxu1 %v9124_v4 }
 0x41e   :  { %7509 = vmatmul.mubr.msk.f32.vlgmr.msra.gmra.mrb[66].mxu1 %vm680_vm3, %v5627_v59 }
 0x41f   :  { %7517 = vmatpush3.msra.mxu1 %v5800_v51  ;;  %7518 = vmatprep.mubr.msk.f32.mxu1 %vm7885_vm1, %v9124_v4 }
 0x420   :  { %7526 = vmatprep.subr.mxu1 %v9124_v4 }
 0x422   :  { %7519 = vmatmul.mubr.msk.f32.vlgmr.msra.gmra.mrb[68].mxu1 %vm680_vm3, %v5798_v45 }
 0x423   :  { %v5967_v6 = vpop.xlane.xlu1 %5966  ;;  %7528 = vmatprep.mubr.msk.f32.mxu1 %vm7885_vm1, %v9124_v4 }
 0x424   :  { %7853 = vrcp.f32 %v5967_v6 }
 0x427   :  { %v5971_v60 = vpop.permute.xlu1 %5970 }
 0x428   :  { %7527 = vmatpush3.msra.mxu1 %v5971_v60 }
 0x42e   :  { %v7854_v43 = vpop.eup %7853 }
 0x42f   :  { %v5969_v14 = vmul.f32 %v7854_v43, %v8782_v2 }
 0x431   :  { %7529 = vmatmul.mubr.msk.f32.vlgmr.msra.gmra.mrb[70].mxu1 %vm680_vm3, %v5969_v14 }
 0x452   :  { %v929_v49 = vpop.f32.mrb[10].mxu1 }
 0x453   :  { %934 = vrot.lane.b32.xlu0 %v929_v49, %s7893_s14  ;;  %v7230_v58 = vpop.f32.mrb[11].mxu1 }
 0x456   :  { %v1101_v52 = vpop.f32.mrb[12].mxu1 }
 0x457   :  { %1106 = vrot.lane.b32.xlu1 %v1101_v52, %s7883_s25  ;;  %v7240_v17 = vpop.f32.mrb[13].mxu1 }
 0x45a   :  { %v1273_v23 = vpop.f32.mrb[14].mxu1 }
 0x45b   :  { %1278 = vrot.lane.b32.xlu1 %v1273_v23, %s7894_s0  ;;  %v7250_v28 = vpop.f32.mrb[15].mxu1 }
 0x45e   :  { %v1445_v12 = vpop.f32.mrb[16].mxu1 }
 0x45f   :  { %1450 = vrot.lane.b32.xlu1 %v1445_v12, %s7895_s1  ;;  %v7260_v2 = vpop.f32.mrb[17].mxu1 }
 0x462   :  { %v1617_v21 = vpop.f32.mrb[18].mxu1 }
 0x463   :  { %1622 = vrot.lane.b32.xlu0 %v1617_v21, %s7896_s15  ;;  %v7270_v44 = vpop.f32.mrb[19].mxu1 }
 0x466   :  { %v1789_v42 = vpop.f32.mrb[20].mxu1 }
 0x467   :  { %1794 = vrot.lane.b32.xlu0 %v1789_v42, %s7897_s16  ;;  %v7280_v1 = vpop.f32.mrb[21].mxu1 }
 0x46a   :  { %v1961_v24 = vpop.f32.mrb[22].mxu1 }
 0x46b   :  { %1966 = vrot.lane.b32.xlu0 %v1961_v24, %s7898_s17  ;;  %v7290_v31 = vpop.f32.mrb[23].mxu1 }
 0x46e   :  { %v2128_v54 = vpop.f32.mrb[24].mxu1 }
 0x46f   :  { %2132 = vst.msk [vmem:[#allocation3] sm:$0xff] %vm602_vm2, %v2128_v54  ;;  %v7300_v18 = vpop.f32.mrb[25].mxu1 }
 0x470   :  { %v6150_v18 = vld [vmem:[#allocation5 + $0xe0] sm:$0xff] }
 0x472   :  { %v2296_v10 = vpop.f32.mrb[26].mxu1 }
 0x473   :  { %2301 = vrot.lane.b32.xlu0 %v2296_v10, %s7893_s14  ;;  %v7310_v27 = vpop.f32.mrb[27].mxu1  ;;  %v6151_v10 = vld [vmem:[#allocation5 + $0xe8] sm:$0xff] }
 0x474   :  { %v7670_v27 = vpack.c.bf16 %v6151_v10, %v6150_v18  ;;  %v6545_v10 = vld [vmem:[%s9098_s5 + $0x40] sm:$0xff] }
 0x476   :  { %v2467_v29 = vpop.f32.mrb[28].mxu1  ;;  %7671 = vmatprep.subr.bf16.mxu1 %v7670_v27 }
 0x477   :  { %2472 = vrot.lane.b32.xlu1 %v2467_v29, %s7883_s25  ;;  %v7320_v20 = vpop.f32.mrb[29].mxu1  ;;  %v6152_v29 = vld [vmem:[#allocation5 + $0xf0] sm:$0xff]  ;;  %7673 = vmatpush3.bf16.msra.mxu1 %v7670_v27  ;;  %v6546_v27 = vld [vmem:[%s9098_s5 + $0x48] sm:$0xff] }
 0x478   :  { %v6153_v20 = vld [vmem:[#allocation5 + $0xf8] sm:$0xff] }
 0x47a   :  { %v2638_v39 = vpop.f32.mrb[30].mxu1 }
 0x47b   :  { %2643 = vrot.lane.b32.xlu1 %v2638_v39, %s7894_s0  ;;  %v7330_v41 = vpop.f32.mrb[31].mxu1  ;;  %v7674_v39 = vpack.c.bf16 %v6153_v20, %v6152_v29  ;;  %v7703_v29 = vpack.c.bf16 %v6546_v27, %v6545_v10  ;;  %v6547_v20 = vld [vmem:[%s9098_s5 + $0x50] sm:$0xff] }
 0x47d   :  { %7675 = vmatprep.subr.bf16.mxu1 %v7674_v39 }
 0x47e   :  { %7677 = vmatpush3.bf16.msra.mxu1 %v7674_v39  ;;  %v6548_v39 = vld [vmem:[%s9098_s5 + $0x58] sm:$0xff] }
 0x480   :  { %v2809_v32 = vpop.f32.mrb[32].mxu1 }
 0x481   :  { %2814 = vrot.lane.b32.xlu1 %v2809_v32, %s7895_s1  ;;  %v7340_v40 = vpop.f32.mrb[33].mxu1 }
 0x4af   :  { %v2980_v5 = vpop.f32.mrb[34].mxu1 }
 0x4b0   :  { %2985 = vrot.lane.b32.xlu0 %v2980_v5, %s7896_s15  ;;  %v7350_v34 = vpop.f32.mrb[35].mxu1 }
 0x4b5   :  { %v3151_v48 = vpop.f32.mrb[36].mxu1 }
 0x4b6   :  { %3156 = vrot.lane.b32.xlu1 %v3151_v48, %s7897_s16  ;;  %v7360_v56 = vpop.f32.mrb[37].mxu1 }
 0x4b9   :  { %v3322_v11 = vpop.f32.mrb[38].mxu1 }
 0x4ba   :  { %3327 = vrot.lane.b32.xlu1 %v3322_v11, %s7898_s17  ;;  %v7370_v3 = vpop.f32.mrb[39].mxu1 }
 0x4bd   :  { %v3488_v25 = vpop.f32.mrb[40].mxu1 }
 0x4be   :  { %3492 = vst.msk [vmem:[#allocation2 + $0x8] sm:$0xff] %vm602_vm2, %v3488_v25  ;;  %v7380_v13 = vpop.f32.mrb[41].mxu1 }
 0x4c1   :  { %v3656_v15 = vpop.f32.mrb[42].mxu1 }
 0x4c2   :  { %3661 = vrot.lane.b32.xlu0 %v3656_v15, %s7893_s14  ;;  %v7390_v50 = vpop.f32.mrb[43].mxu1 }
 0x4c5   :  { %v935_v33 = vpop.permute.xlu0 %934  ;;  %v3827_v46 = vpop.f32.mrb[44].mxu1 }
 0x4c6   :  { %938 = vst.msk [vmem:[#allocation2] sm:$0xff] %vm937_vm4, %v935_v33  ;;  %3832 = vrot.lane.b32.xlu0 %v3827_v46, %s7883_s25  ;;  %v7400_v55 = vpop.f32.mrb[45].mxu1 }
 0x4c9   :  { %v1107_v38 = vpop.permute.xlu1 %1106  ;;  %v3998_v19 = vpop.f32.mrb[46].mxu1 }
 0x4ca   :  { %1110 = vst.msk [vmem:[#allocation2] sm:$0xff] %vm1109_vm5, %v1107_v38  ;;  %4003 = vrot.lane.b32.xlu1 %v3998_v19, %s7894_s0  ;;  %v7410_v63 = vpop.f32.mrb[47].mxu1 }
 0x4cd   :  { %v1279_v26 = vpop.permute.xlu1 %1278  ;;  %v4169_v0 = vpop.f32.mrb[48].mxu1 }
 0x4ce   :  { %1282 = vst.msk [vmem:[#allocation2] sm:$0xff] %vm1281_vm6, %v1279_v26  ;;  %4174 = vrot.lane.b32.xlu0 %v4169_v0, %s7895_s1  ;;  %v7420_v22 = vpop.f32.mrb[49].mxu1  ;;  %v7899_v26 = vmov 0.0|0.0   ;;  %v9134_v0 = vld [vmem:[#allocation10_spill] sm:$0xff] }
 0x4cf   :  { %7681 = vmatprep.subr.bf16.mxu1 %v7899_v26  ;;  %7678 = vmatprep.subr.bf16.mxu0 %v7899_v26  ;;  %v9136_v53 = vsub.f32 %v9134_v0, %v9135_v8  ;;  %v9137_v22 = vld [vmem:[#allocation11_spill] sm:$0xff] }
 0x4d0   :  { %v6941_v8 = vld [vmem:[#allocation4] ss:$0 sm:$0xff] }
 0x4d1   :  { %v1451_v30 = vpop.permute.xlu1 %1450  ;;  %v4340_v7 = vpop.f32.mrb[50].mxu1 }
 0x4d2   :  { %1454 = vst.msk [vmem:[#allocation2] sm:$0xff] %vm1453_vm7, %v1451_v30  ;;  %4345 = vrot.lane.b32.xlu0 %v4340_v7, %s7896_s15  ;;  %v7430_v9 = vpop.f32.mrb[51].mxu1  ;;  %v9139_v30 = vsub.f32 %v9137_v22, %v9138_v57 }
 0x4d3   :  { %v6925_v9 = vld [vmem:[%s9097_s4 + $0x3] ss:$0 sm:$0xff] }
 0x4d4   :  { %v7685_v7 = vpack.c.bf16 %v9139_v30, %v9136_v53 }
 0x4d5   :  { %v1623_v61 = vpop.permute.xlu0 %1622  ;;  %v4511_v35 = vpop.f32.mrb[52].mxu1 }
 0x4d6   :  { %1626 = vst.msk [vmem:[#allocation2] sm:$0xff] %vm1625_vm8, %v1623_v61  ;;  %4516 = vrot.lane.b32.xlu0 %v4511_v35, %s7897_s16  ;;  %v7440_v36 = vpop.f32.mrb[53].mxu1 }
 0x4d9   :  { %v1795_v59 = vpop.permute.xlu0 %1794  ;;  %v4682_v47 = vpop.f32.mrb[54].mxu1 }
 0x4da   :  { %1798 = vst.msk [vmem:[#allocation2] sm:$0xff] %vm1797_vm9, %v1795_v59  ;;  %4687 = vrot.lane.b32.xlu1 %v4682_v47, %s7898_s17  ;;  %v7450_v51 = vpop.f32.mrb[55].mxu1 }
 0x4db   :  { %v6245_v51 = vld [vmem:[%s9102_s9] sm:$0x3] }
 0x4dd   :  { %v1967_v45 = vpop.permute.xlu0 %1966  ;;  %v4848_v6 = vpop.f32.mrb[56].mxu1 }
 0x4de   :  { %1970 = vst.msk [vmem:[#allocation2] sm:$0xff] %vm1969_vm10, %v1967_v45  ;;  %v7460_v60 = vpop.f32.mrb[57].mxu1  ;;  %v6929_v45 = vld [vmem:[%s9097_s4 + $0x7] ss:$0 sm:$0xff] }
 0x4df   :  { %4852 = vst.msk [vmem:[#allocation3 + $0x8] sm:$0xff] %vm602_vm2, %v4848_v6 }
 0x4e1   :  { %v5016_v43 = vpop.f32.mrb[58].mxu1 }
 0x4e2   :  { %5021 = vrot.lane.b32.xlu1 %v5016_v43, %s7893_s14  ;;  %v7470_v14 = vpop.f32.mrb[59].mxu1 }
 0x4e5   :  { %v2302_v49 = vpop.permute.xlu0 %2301  ;;  %v5187_v58 = vpop.f32.mrb[60].mxu1  ;;  %v6051_v52 = vld [vmem:[#allocation2] sm:$0xff] }
 0x4e6   :  { %2304 = vst.msk [vmem:[#allocation3] sm:$0xff] %vm937_vm4, %v2302_v49  ;;  %7539 = vmatprep.mubr.msk.f32.mxu0 %vm68_vm0, %v6051_v52  ;;  %5192 = vrot.lane.b32.xlu1 %v5187_v58, %s7883_s25  ;;  %v7480_v17 = vpop.f32.mrb[61].mxu1 }
 0x4e7   :  { %v6537_v17 = vld [vmem:[%s9098_s5] sm:$0xff] }
 0x4e9   :  { %v2473_v23 = vpop.permute.xlu1 %2472  ;;  %v5358_v28 = vpop.f32.mrb[62].mxu1 }
 0x4ea   :  { %2475 = vst.msk [vmem:[#allocation3] sm:$0xff] %vm1109_vm5, %v2473_v23  ;;  %5363 = vrot.lane.b32.xlu1 %v5358_v28, %s7894_s0  ;;  %v7490_v12 = vpop.f32.mrb[63].mxu1  ;;  %v6538_v23 = vld [vmem:[%s9098_s5 + $0x8] sm:$0xff] }
 0x4eb   :  { %v6541_v12 = vld [vmem:[%s9098_s5 + $0x20] sm:$0xff] }
 0x4ed   :  { %v2644_v2 = vpop.permute.xlu1 %2643  ;;  %v5529_v21 = vpop.f32.mrb[64].mxu1 }
 0x4ee   :  { %2646 = vst.msk [vmem:[#allocation3] sm:$0xff] %vm1281_vm6, %v2644_v2  ;;  %5534 = vrot.lane.b32.xlu0 %v5529_v21, %s7895_s1  ;;  %v7500_v44 = vpop.f32.mrb[65].mxu1  ;;  %v6542_v2 = vld [vmem:[%s9098_s5 + $0x28] sm:$0xff]  ;;  %v7697_v21 = vpack.c.bf16 %v6538_v23, %v6537_v17 }
 0x4ef   :  { %v7691_v44 = vpack.c.bf16 %v6542_v2, %v6541_v12 }
 0x4f1   :  { %v5700_v42 = vpop.f32.mrb[66].mxu1 }
 0x4f2   :  { %5705 = vrot.lane.b32.xlu0 %v5700_v42, %s7896_s15  ;;  %v7510_v1 = vpop.f32.mrb[67].mxu1  ;;  %v6543_v42 = vld [vmem:[%s9098_s5 + $0x30] sm:$0xff] }
 0x4f3   :  { %v2815_v24 = vpop.permute.xlu1 %2814  ;;  %v6544_v1 = vld [vmem:[%s9098_s5 + $0x38] sm:$0xff] }
 0x4f4   :  { %2817 = vst.msk [vmem:[#allocation3] sm:$0xff] %vm1453_vm7, %v2815_v24  ;;  %v7694_v24 = vpack.c.bf16 %v6544_v1, %v6543_v42 }
 0x4f5   :  { %v5871_v31 = vpop.f32.mrb[68].mxu1 }
 0x4f6   :  { %5876 = vrot.lane.b32.xlu0 %v5871_v31, %s7897_s16  ;;  %v7520_v54 = vpop.f32.mrb[69].mxu1  ;;  %v6539_v31 = vld [vmem:[%s9098_s5 + $0x10] sm:$0xff] }
 0x4f7   :  { %v6540_v54 = vld [vmem:[%s9098_s5 + $0x18] sm:$0xff] }
 0x4f8   :  { %v7700_v18 = vpack.c.bf16 %v6540_v54, %v6539_v31 }
 0x504   :  { %v6042_v41 = vpop.f32.mrb[70].mxu1 }
 0x505   :  { %6047 = vrot.lane.b32.xlu1 %v6042_v41, %s7898_s17  ;;  %v7530_v32 = vpop.f32.mrb[71].mxu1 }
 0x522   :  { %v2986_v40 = vpop.permute.xlu0 %2985 }
 0x523   :  { %2988 = vst.msk [vmem:[#allocation3] sm:$0xff] %vm1625_vm8, %v2986_v40  ;;  %v7706_v40 = vpack.c.bf16 %v6548_v39, %v6547_v20 }
 0x528   :  { %v3157_v5 = vpop.permute.xlu1 %3156 }
 0x529   :  { %3159 = vst.msk [vmem:[#allocation3] sm:$0xff] %vm1797_vm9, %v3157_v5 }
 0x52c   :  { %v3328_v34 = vpop.permute.xlu1 %3327 }
 0x52d   :  { %3330 = vst.msk [vmem:[#allocation3] sm:$0xff] %vm1969_vm10, %v3328_v34 }
 0x534   :  { %v3662_v48 = vpop.permute.xlu0 %3661  ;;  %v6147_v56 = vld [vmem:[#allocation3] sm:$0xff] }
 0x535   :  { %3664 = vst.msk [vmem:[#allocation2 + $0x8] sm:$0xff] %vm937_vm4, %v3662_v48  ;;  %7550 = vmatprep.mubr.msk.f32.mxu1 %vm68_vm0, %v6147_v56 }
 0x538   :  { %v3833_v11 = vpop.permute.xlu0 %3832 }
 0x539   :  { %3835 = vst.msk [vmem:[#allocation2 + $0x8] sm:$0xff] %vm1109_vm5, %v3833_v11 }
 0x53c   :  { %v4004_v3 = vpop.permute.xlu1 %4003 }
 0x53d   :  { %4006 = vst.msk [vmem:[#allocation2 + $0x8] sm:$0xff] %vm1281_vm6, %v4004_v3 }
 0x540   :  { %v4175_v25 = vpop.permute.xlu0 %4174 }
 0x541   :  { %4177 = vst.msk [vmem:[#allocation2 + $0x8] sm:$0xff] %vm1453_vm7, %v4175_v25 }
 0x544   :  { %v4346_v13 = vpop.permute.xlu0 %4345 }
 0x545   :  { %4348 = vst.msk [vmem:[#allocation2 + $0x8] sm:$0xff] %vm1625_vm8, %v4346_v13 }
 0x548   :  { %v4517_v15 = vpop.permute.xlu0 %4516 }
 0x549   :  { %4519 = vst.msk [vmem:[#allocation2 + $0x8] sm:$0xff] %vm1797_vm9, %v4517_v15 }
 0x54c   :  { %v4688_v50 = vpop.permute.xlu1 %4687 }
 0x54d   :  { %4690 = vst.msk [vmem:[#allocation2 + $0x8] sm:$0xff] %vm1969_vm10, %v4688_v50 }
 0x554   :  { %v5022_v33 = vpop.permute.xlu1 %5021  ;;  %v6052_v46 = vld [vmem:[#allocation2 + $0x8] sm:$0xff] }
 0x555   :  { %5024 = vst.msk [vmem:[#allocation3 + $0x8] sm:$0xff] %vm937_vm4, %v5022_v33  ;;  %7540 = vmatmul.mubr.msk.f32.vlgmr.msra.gmra.mrb[68].mxu0 %vm68_vm0, %v6052_v46 }
 0x556   :  { %7557 = vmatprep.mubr.msk.f32.mxu0 %vm7885_vm1, %v9124_v4 }
 0x558   :  { %v5193_v55 = vpop.permute.xlu1 %5192 }
 0x559   :  { %5195 = vst.msk [vmem:[#allocation3 + $0x8] sm:$0xff] %vm1109_vm5, %v5193_v55  ;;  %v6939_v55 = vld [vmem:[%s9099_s6] ss:$0 sm:$0xff] }
 0x55c   :  { %v5364_v38 = vpop.permute.xlu1 %5363 }
 0x55d   :  { %5366 = vst.msk [vmem:[#allocation3 + $0x8] sm:$0xff] %vm1281_vm6, %v5364_v38 }
 0x560   :  { %v5535_v19 = vpop.permute.xlu0 %5534 }
 0x561   :  { %5537 = vst.msk [vmem:[#allocation3 + $0x8] sm:$0xff] %vm1453_vm7, %v5535_v19 }
 0x564   :  { %v5706_v63 = vpop.permute.xlu0 %5705 }
 0x565   :  { %5708 = vst.msk [vmem:[#allocation3 + $0x8] sm:$0xff] %vm1625_vm8, %v5706_v63 }
 0x568   :  { %v5877_v16 = vpop.permute.xlu0 %5876 }
 0x569   :  { %5879 = vst.msk [vmem:[#allocation3 + $0x8] sm:$0xff] %vm1797_vm9, %v5877_v16  ;;  %v6940_v16 = vld [vmem:[%s9100_s7] ss:$0 sm:$0xff] }
 0x577   :  { %v6048_v62 = vpop.permute.xlu1 %6047 }
 0x578   :  { %6050 = vst.msk [vmem:[#allocation3 + $0x8] sm:$0xff] %vm1969_vm10, %v6048_v62 }
 0x57f   :  { %v6148_v37 = vld [vmem:[#allocation3 + $0x8] sm:$0xff] }
 0x580   :  { %7551 = vmatmul.mubr.msk.f32.vlgmr.msra.gmra.mrb[72].mxu1 %vm68_vm0, %v6148_v37 }
 0x581   :  { %7564 = vmatprep.mubr.msk.f32.mxu1 %vm7885_vm1, %v9124_v4 }
 0x628   :  { %v7541_v61 = vpop.f32.mrb[68].mxu0 }
 0x629   :  { %v6144_v35 = vadd.f32 %v7541_v61, %v6925_v9  ;;  %v6138_v36 = vpop.f32.mrb[69].mxu0 }
 0x62a   :  { %v6139_v59 = vadd.f32 %v6925_v9, %v6138_v36 }
 0x62c   :  { %v7682_v47 = vpack.c.bf16 %v6144_v35, %v6139_v59 }
 0x62e   :  { %7683 = vmatpush3.bf16.msra.mxu1 %v7682_v47 }
 0x62f   :  { %7687 = vmatprep.subr.bf16.mxu1 %v7899_v26 }
 0x631   :  { %7565 = vmatmul.mubr.msk.f32.vlgmr.msra.gmra.mrb[74].mxu1 %vm6246_vm11, %v6245_v51 }
 0x632   :  { %7578 = vmatprep.mubr.msk.f32.mxu1 %vm7885_vm1, %v9124_v4 }
 0x653   :  { %v7552_v6 = vpop.f32.mrb[72].mxu1 }
 0x654   :  { %v6240_v60 = vadd.f32 %v7552_v6, %v6929_v45  ;;  %v6234_v43 = vpop.f32.mrb[73].mxu1 }
 0x655   :  { %v6235_v14 = vadd.f32 %v6929_v45, %v6234_v43 }
 0x656   :  { %v6461_v49 = vmul.f32 %v6240_v60, %v6144_v35 }
 0x657   :  { %v7679_v58 = vpack.c.bf16 %v6240_v60, %v6235_v14  ;;  %v6460_v52 = vmul.f32 %v6235_v14, %v6139_v59 }
 0x659   :  { %v7688_v28 = vpack.c.bf16 %v6461_v49, %v6460_v52  ;;  %7680 = vmatpush3.bf16.msra.mxu0 %v7679_v58 }
 0x65a   :  { %7684 = vmatprep.subr.bf16.mxu0 %v7899_v26 }
 0x65b   :  { %7689 = vmatpush3.bf16.msra.mxu1 %v7688_v28 }
 0x65c   :  { %7558 = vmatmul.mubr.msk.f32.vlgmr.msra.gmra.mrb[70].mxu0 %vm6246_vm11, %v6245_v51  ;;  %7696 = vmatprep.subr.bf16.mxu1 %v7899_v26 }
 0x65d   :  { %7686 = vmatpush3.bf16.msra.mxu0 %v7685_v7  ;;  %7571 = vmatprep.mubr.msk.f32.mxu0 %vm7885_vm1, %v9124_v4 }
 0x65e   :  { %7690 = vmatprep.subr.bf16.mxu0 %v7899_v26  ;;  %7579 = vmatmul.mubr.msk.f32.vlgmr.msra.gmra.mrb[76].mxu1 %vm6246_vm11, %v6245_v51 }
 0x65f   :  { %7698 = vmatpush3.bf16.msra.mxu1 %v7697_v21  ;;  %7600 = vmatprep.mubr.msk.f32.mxu1 %vm7885_vm1, %v9124_v4 }
 0x660   :  { %7572 = vmatmul.mubr.msk.f32.vlgmr.msra.gmra.mrb[72].mxu0 %vm6246_vm11, %v6245_v51  ;;  %7699 = vmatprep.subr.bf16.mxu1 %v7899_v26 }
 0x661   :  { %7692 = vmatpush3.bf16.msra.mxu0 %v7691_v44  ;;  %7589 = vmatprep.mubr.msk.f32.mxu0 %vm7885_vm1, %v9124_v4 }
 0x662   :  { %7693 = vmatprep.subr.bf16.mxu0 %v7899_v26 }
 0x663   :  { %7701 = vmatpush3.bf16.msra.mxu1 %v7700_v18 }
 0x665   :  { %7695 = vmatpush3.bf16.msra.mxu0 %v7694_v24 }
 0x666   :  { %7702 = vmatprep.subr.bf16.mxu0 %v7899_v26 }
 0x704   :  { %v6386_v41 = vpop.f32.mrb[74].mxu1 }
 0x705   :  { %v7566_v32 = vpop.f32.mrb[75].mxu1  ;;  %7590 = vmatmul.mubr.msk.f32.vlgmr.msra.gmra.mrb[74].mxu0 %vm68_vm0, %v6386_v41 }
 0x706   :  { %7704 = vmatpush3.bf16.msra.mxu0 %v7703_v29  ;;  %7611 = vmatprep.mubr.msk.f32.mxu0 %vm7885_vm1, %v9124_v4 }
 0x707   :  { %7705 = vmatprep.subr.bf16.mxu0 %v7899_v26 }
 0x70a   :  { %7707 = vmatpush3.bf16.msra.mxu0 %v7706_v40 }
 0x72f   :  { %v6316_v5 = vpop.f32.mrb[70].mxu0 }
 0x730   :  { %v7559_v34 = vpop.f32.mrb[71].mxu0  ;;  %7601 = vmatmul.mubr.msk.f32.vlgmr.msra.gmra.mrb[78].mxu1 %vm68_vm0, %v6316_v5 }
 0x731   :  { %v6528_v48 = vpop.f32.mrb[76].mxu1 }
 0x732   :  { %v6533_v56 = vsel %vm6532_vm12, %v6528_v48, 0.0  ;;  %v7580_v11 = vpop.f32.mrb[77].mxu1 }
 0x733   :  { %v6456_v3 = vpop.f32.mrb[72].mxu0  ;;  %6534 = vadd.xlane.f32.xlu0 %v6533_v56 }
 0x734   :  { %v7573_v25 = vpop.f32.mrb[73].mxu0  ;;  %7612 = vmatmul.mubr.msk.f32.vlgmr.msra.gmra.mrb[76].mxu0 %vm68_vm0, %v6456_v3 }
 0x7c0   :  { %v6535_v0 = vpop.xlane.xlu0 %6534 }
 0x7c1   :  { %v6536_v22 = vmul.f32 8.0, %v6535_v0 }
 0x7d8   :  { %v6618_v13 = vpop.f32.mrb[74].mxu0 }
 0x7d9   :  { %v7591_v15 = vpop.f32.mrb[75].mxu0 }
 0x803   :  { %v6691_v4 = vpop.f32.mrb[78].mxu1 }
 0x804   :  { %v6692_v50 = vadd.f32 %v6691_v4, %v6618_v13  ;;  %v7602_v33 = vpop.f32.mrb[79].mxu1 }
 0x807   :  { %v6764_v46 = vpop.f32.mrb[76].mxu0 }
 0x808   :  { %v6768_v38 = vadd.f32 %v6764_v46, %v6692_v50  ;;  %v7613_v19 = vpop.f32.mrb[77].mxu0 }
 0x80a   :  { %v6776_v63 = vadd.f32 %v6939_v55, %v6768_v38 }
 0x80c   :  { %7855 = vtanh.f32 %v6776_v63 }
 0x816   :  { %v7856_v62 = vpop.eup %7855 }
 0x817   :  { %v6785_v37 = vmul.f32 %v7856_v62, %v6940_v16 }
 0x819   :  { %v6786_v26 = vsel %vm6532_vm12, %v6785_v37, 0.0 }
 0x81a   :  { %6787 = vadd.xlane.f32.xlu1 %v6786_v26 }
 0x8a7   :  { %v6788_v53 = vpop.xlane.xlu1 %6787 }
 0x8a8   :  { %v6796_v57 = vadd.f32 %v6941_v8, %v6788_v53 }
 0x8aa   :  { %v6797_v30 = vadd.f32 %v6796_v57, %v6536_v22 }
 0x8ac   :  { %6799 = vst.msk [vmem:[%s9103_s10] sm:$0x3] %vm6798_vm13, %v6797_v30 }
 0x8ad   :  { %6804 = vsyncpa [#allocation6], 1 }

</bundles_post_ra>
